<compile_context>
chip_gen: v6e
topology: v6e:2x2x1
jax: 0.10.0
libtpu: 0.0.40
codegen_flags: <defaults>
</compile_context>

<pallas_src>
import functools

import jax
import jax.numpy as jnp
from jax import lax
from jax.experimental import pallas as pl
from jax.experimental.pallas import tpu as pltpu


def _round_up(x, m):
    return (x + m - 1) // m * m


def _block_vmem_bytes(bt, tt, t_total, e_dim, h_pad, c_pad):
    g = 4 * h_pad
    elmo = 2 * 3 * tt * bt * e_dim * 2          # 3 bf16 streams, double-buffered
    tok = 2 * bt * _round_up(t_total, tt) * 4   # int32 token block (full T)
    xg = tt * bt * g * 4                        # f32 pre-activation scratch
    state = 3 * bt * h_pad * 4                  # h / c / acc scratch
    outb = 2 * bt * c_pad * 4
    weights = (e_dim * g + h_pad * g) * 2 + (g + h_pad * c_pad + c_pad) * 4
    return elmo + tok + xg + state + outb + weights


def _choose_tiles(batch, t_total, e_dim, h_pad, c_pad,
                  budget_bytes=20 * 1024 * 1024):
    """Largest (B_tile, T_tile) fitting a v7x-safe VMEM budget."""
    b_cap = _round_up(max(batch, 1), 16)        # bf16 second-minor: multiple of 16
    t_full = _round_up(t_total, 8)
    t_opts = [t_full] if t_full <= 128 else [128, 64, 32]
    for tt in t_opts:
        for bt in (256, 128, 64, 32, 16):
            bt_eff = min(bt, b_cap)
            if _block_vmem_bytes(bt_eff, tt, t_total, e_dim, h_pad,
                                 c_pad) <= budget_bytes:
                return bt_eff, tt
    return min(16, b_cap), t_opts[-1]


def lstm_classifier_kernel(x_tok_ref, e1_ref, e2_ref, e3_ref, comb_w_ref,
                           w_ih_ref, w_hh_ref, b_ref, w_out_ref, b_out_ref,
                           out_ref, xg_ref, h_ref, c_ref, acc_ref,
                           *, vocab_size, h_pad):
    t_idx = pl.program_id(1)
    n_t = pl.num_programs(1)
    tt, bt, e_dim = e1_ref.shape
    g_dim = 4 * h_pad
    H = h_pad

    # ---- init persistent state at the first time block of each batch block ----
    @pl.when(t_idx == 0)
    def _():
        h_ref[...] = jnp.zeros_like(h_ref)
        c_ref[...] = jnp.zeros_like(c_ref)
        acc_ref[...] = jnp.zeros_like(acc_ref)

    # ---- combine the three ELMo layers (f32 on the VPU), bf16 into the MXU ----
    w0 = comb_w_ref[0]
    w1 = comb_w_ref[1]
    w2 = comb_w_ref[2]
    inp = w0 * e1_ref[...] + w1 * e2_ref[...] + w2 * e3_ref[...]   # (tt,bt,E) f32

    # ---- input-side gate pre-activations for this time block, time-major ----
    xg = jnp.dot(inp.reshape(tt * bt, e_dim).astype(jnp.bfloat16),
                 w_ih_ref[...], preferred_element_type=jnp.float32)
    xg_ref[...] = xg.reshape(tt, bt, g_dim) + b_ref[...]           # (tt,bt,4Hp)

    # ---- sequence lengths (padding id == vocab_size, tail-only padding) ----
    valid = (x_tok_ref[...] != vocab_size).astype(jnp.float32)     # (bt, T)
    lengths = jnp.sum(valid, axis=1, keepdims=True)                # (bt, 1)

    w_hh = w_hh_ref[...]                                           # (Hp, 4Hp) bf16
    t_off = t_idx * tt

    def step(s, carry):
        h, c, acc = carry
        g_all = xg_ref[s] + jnp.dot(h.astype(jnp.bfloat16), w_hh,
                                    preferred_element_type=jnp.float32)
        # lane-aligned 128-wide gate chunks (PyTorch order i, f, g, o)
        i = jax.nn.sigmoid(g_all[:, 0 * H:1 * H])
        f = jax.nn.sigmoid(g_all[:, 1 * H:2 * H])
        g = jnp.tanh(g_all[:, 2 * H:3 * H])
        o = jax.nn.sigmoid(g_all[:, 3 * H:4 * H])
        c = f * c + i * g
        h = o * jnp.tanh(c)
        m = (lengths > (t_off + s)).astype(jnp.float32)            # mean mask
        acc = acc + h * m
        return h, c, acc

    unroll = True if tt <= 16 else 4
    h, c, acc = lax.fori_loop(0, tt, step,
                              (h_ref[...], c_ref[...], acc_ref[...]),
                              unroll=unroll)
    h_ref[...] = h
    c_ref[...] = c
    acc_ref[...] = acc

    # ---- finalize: masked mean over time + lane-dense output projection ----
    @pl.when(t_idx == n_t - 1)
    def _():
        denom = jnp.maximum(lengths, 1.0)     # guard all-padding rows (no NaN)
        mean_h = acc / denom
        out_ref[...] = (jnp.dot(mean_h, w_out_ref[...],
                                preferred_element_type=jnp.float32)
                        + b_out_ref[...])


def _pad_gate_cols(w, h, h_pad):
    """(rows, 4h) -> (rows, 4*h_pad): gate k moved to columns [k*h_pad, k*h_pad+h)."""
    out = jnp.zeros((w.shape[0], 4 * h_pad), w.dtype)
    for k in range(4):
        out = out.at[:, k * h_pad:k * h_pad + h].set(w[:, k * h:(k + 1) * h])
    return out


def lstm_classifier_forward(x_tok, e1, e2, e3, comb_w, w_ih, w_hh, b,
                            w_out, b_out, *, vocab_size):
    """LSTMClassifier forward (combine='trainable', classification='mean').

    x_tok    : (B, T) int32 token ids, padding id == vocab_size (tail padding)
    e1/e2/e3 : (B, T, E) f32 frozen ELMo layers (lstm1, lstm2, embedding_layer)
    comb_w   : (3,) f32 trainable combine weights
    w_ih     : (E, 4H)  = PyTorch weight_ih_l0.T, gate order [i, f, g, o]
    w_hh     : (H, 4H)  = PyTorch weight_hh_l0.T
    b        : (1, 4H)  = bias_ih + bias_hh
    w_out    : (H, C)   = PyTorch output_layer.weight.T
    b_out    : (1, C)
    returns  : (B, C) f32 logits
    """
    B, T = x_tok.shape
    E = e1.shape[-1]
    H = w_hh.shape[0]
    C = w_out.shape[1]

    h_pad = max(_round_up(H, 128), 128)     # lane-aligned gate chunks
    c_pad = max(_round_up(C, 128), 128)     # lane-dense output block
    g_dim = 4 * h_pad

    bt, tt = _choose_tiles(B, T, E, h_pad, c_pad)
    b_pad = _round_up(B, bt)
    t_pad = _round_up(T, tt)

    # --- host-side layout plumbing: padding / time-major transpose / bf16 cast ---
    x_tok_p = jnp.pad(x_tok.astype(jnp.int32),
                      ((0, b_pad - B), (0, t_pad - T)),
                      constant_values=vocab_size)

    def prep_elmo(e):
        et = jnp.transpose(e, (1, 0, 2)).astype(jnp.bfloat16)      # (T, B, E)
        return jnp.pad(et, ((0, t_pad - T), (0, b_pad - B), (0, 0)))

    e1_p, e2_p, e3_p = prep_elmo(e1), prep_elmo(e2), prep_elmo(e3)

    w_ih_p = _pad_gate_cols(w_ih, H, h_pad).astype(jnp.bfloat16)   # (E, 4Hp)
    w_hh_p = jnp.zeros((h_pad, g_dim), jnp.float32)
    w_hh_p = w_hh_p.at[:H].set(_pad_gate_cols(w_hh, H, h_pad)).astype(jnp.bfloat16)
    b_p = _pad_gate_cols(b.astype(jnp.float32), H, h_pad)          # (1, 4Hp) f32
    w_out_p = jnp.zeros((h_pad, c_pad), jnp.float32).at[:H, :C].set(w_out)
    b_out_p = jnp.zeros((1, c_pad), jnp.float32).at[:, :C].set(b_out)
    comb_w = comb_w.astype(jnp.float32)

    kernel = functools.partial(lstm_classifier_kernel,
                               vocab_size=vocab_size, h_pad=h_pad)

    grid = (b_pad // bt, t_pad // tt)
    full = lambda shape: pl.BlockSpec(shape, lambda bi, ti: (0,) * len(shape))

    out_p = pl.pallas_call(
        kernel,
        out_shape=jax.ShapeDtypeStruct((b_pad, c_pad), jnp.float32),
        grid_spec=pltpu.PrefetchScalarGridSpec(
            num_scalar_prefetch=0,
            grid=grid,
            in_specs=[
                pl.BlockSpec((bt, t_pad), lambda bi, ti: (bi, 0)),      # tokens
                pl.BlockSpec((tt, bt, E), lambda bi, ti: (ti, bi, 0)),  # elmo lstm1
                pl.BlockSpec((tt, bt, E), lambda bi, ti: (ti, bi, 0)),  # elmo lstm2
                pl.BlockSpec((tt, bt, E), lambda bi, ti: (ti, bi, 0)),  # elmo embed
                pl.BlockSpec(memory_space=pltpu.MemorySpace.SMEM),      # comb_w
                full((E, g_dim)),                                       # W_ih
                full((h_pad, g_dim)),                                   # W_hh
                full((1, g_dim)),                                       # bias
                full((h_pad, c_pad)),                                   # W_out
                full((1, c_pad)),                                       # b_out
            ],
            out_specs=pl.BlockSpec((bt, c_pad), lambda bi, ti: (bi, 0)),
            scratch_shapes=[
                pltpu.VMEM((tt, bt, g_dim), jnp.float32),   # time-major xg
                pltpu.VMEM((bt, h_pad), jnp.float32),       # h
                pltpu.VMEM((bt, h_pad), jnp.float32),       # c
                pltpu.VMEM((bt, h_pad), jnp.float32),       # masked sum of h
            ],
        ),
        compiler_params=pltpu.CompilerParams(
            dimension_semantics=("parallel", "arbitrary"),
            vmem_limit_bytes=32 * 1024 * 1024,
        ),
    )(x_tok_p, e1_p, e2_p, e3_p, comb_w, w_ih_p, w_hh_p, b_p, w_out_p, b_out_p)

    return out_p[:B, :C]


if __name__ == "__main__":
    B, T, E, H, C = 2, 8, 32, 32, 4
    vocab_size = 50

    key = jax.random.PRNGKey(0)
    keys = jax.random.split(key, 10)

    # token ids; row 1 gets tail padding (pad id == vocab_size) -> length 5
    x_tok = jax.random.randint(keys[0], (B, T), 0, vocab_size, dtype=jnp.int32)
    x_tok = x_tok.at[1, 5:].set(vocab_size)

    # frozen ELMo stand-in layers: lstm1, lstm2, embedding_layer
    e1 = jax.random.normal(keys[1], (B, T, E), jnp.float32)
    e2 = jax.random.normal(keys[2], (B, T, E), jnp.float32)
    e3 = jax.random.normal(keys[3], (B, T, E), jnp.float32)

    # combine='trainable' init: torch.ones(3)/3
    comb_w = jnp.ones((3,), jnp.float32) / 3.0

    # LSTM params (PyTorch init range +-1/sqrt(H)), pre-transposed for the kernel
    s = 1.0 / float(H) ** 0.5
    w_ih = jax.random.uniform(keys[4], (E, 4 * H), jnp.float32, -s, s)
    w_hh = jax.random.uniform(keys[5], (H, 4 * H), jnp.float32, -s, s)
    b_ih = jax.random.uniform(keys[6], (1, 4 * H), jnp.float32, -s, s)
    b_hh = jax.random.uniform(keys[7], (1, 4 * H), jnp.float32, -s, s)
    b = b_ih + b_hh

    # output Linear (h_dim -> classes), weight pre-transposed to (H, C)
    w_out = jax.random.uniform(keys[8], (H, C), jnp.float32, -s, s)
    b_out = jax.random.uniform(keys[9], (1, C), jnp.float32, -s, s)

    out = lstm_classifier_forward(x_tok, e1, e2, e3, comb_w, w_ih, w_hh, b,
                                  w_out, b_out, vocab_size=vocab_size)
    out = jax.block_until_ready(out)
    assert out.shape == (B, C) and out.dtype == jnp.float32
    assert bool(jnp.all(jnp.isfinite(out)))
    print("KERNEL_OK")
</pallas_src>

<mosaic_0001>
module attributes {stable_mosaic.version = 11 : i64} {
  func.func @lstm_classifier_kernel(%arg0: i32, %arg1: i32, %arg2: memref<16x8xi32, #tpu.memory_space<vmem>>, %arg3: memref<8x16x32xbf16, #tpu.memory_space<vmem>>, %arg4: memref<8x16x32xbf16, #tpu.memory_space<vmem>>, %arg5: memref<8x16x32xbf16, #tpu.memory_space<vmem>>, %arg6: memref<3xf32, #tpu.memory_space<smem>>, %arg7: memref<32x512xbf16, #tpu.memory_space<vmem>>, %arg8: memref<128x512xbf16, #tpu.memory_space<vmem>>, %arg9: memref<1x512xf32, #tpu.memory_space<vmem>>, %arg10: memref<128x128xf32, #tpu.memory_space<vmem>>, %arg11: memref<1x128xf32, #tpu.memory_space<vmem>>, %arg12: memref<16x128xf32, #tpu.memory_space<vmem>>, %arg13: memref<8x16x512xf32, #tpu.memory_space<vmem>>, %arg14: memref<16x128xf32, #tpu.memory_space<vmem>>, %arg15: memref<16x128xf32, #tpu.memory_space<vmem>>, %arg16: memref<16x128xf32, #tpu.memory_space<vmem>>) attributes {dimension_semantics = [#tpu.dimension_semantics<parallel>, #tpu.dimension_semantics<arbitrary>], iteration_bounds = array<i64: 1, 1>, scalar_prefetch = 0 : i64, scratch_operands = 4 : i64, tpu.core_type = #tpu.core_type<tc>, window_params = [{transform_indices = @transform_0, window_bounds = array<i64: 16, 8>}, {transform_indices = @transform_1, window_bounds = array<i64: 8, 16, 32>}, {transform_indices = @transform_2, window_bounds = array<i64: 8, 16, 32>}, {transform_indices = @transform_3, window_bounds = array<i64: 8, 16, 32>}, {transform_indices = @transform_4, window_bounds = array<i64: 3>}, {pipeline_mode = #tpu.pipeline_mode<synchronous>, transform_indices = @transform_5, window_bounds = array<i64: 32, 512>}, {pipeline_mode = #tpu.pipeline_mode<synchronous>, transform_indices = @transform_6, window_bounds = array<i64: 128, 512>}, {pipeline_mode = #tpu.pipeline_mode<synchronous>, transform_indices = @transform_7, window_bounds = array<i64: 1, 512>}, {pipeline_mode = #tpu.pipeline_mode<synchronous>, transform_indices = @transform_8, window_bounds = array<i64: 128, 128>}, {pipeline_mode = #tpu.pipeline_mode<synchronous>, transform_indices = @transform_9, window_bounds = array<i64: 1, 128>}, {transform_indices = @transform_10, window_bounds = array<i64: 16, 128>}]} {
    %c0_i32 = arith.constant 0 : i32
    %0 = arith.cmpi eq, %arg1, %c0_i32 : i32
    %1 = arith.extui %0 : i1 to i32
    %c0_i32_0 = arith.constant 0 : i32
    %2 = arith.cmpi ne, %1, %c0_i32_0 : i32
    scf.if %2 {
      %cst_86 = arith.constant 0.000000e+00 : f32
      %368 = vector.broadcast %cst_86 : f32 to vector<16x128xf32>
      %c0_87 = arith.constant 0 : index
      %c0_88 = arith.constant 0 : index
      %369 = vector.load %arg14[%c0_87, %c0_88] : memref<16x128xf32, #tpu.memory_space<vmem>>, vector<16x128xf32>
      tpu.vector_store %arg14[%c0_87, %c0_88], %368 {strides = array<i32>} : memref<16x128xf32, #tpu.memory_space<vmem>>, vector<16x128xf32>,
      %cst_89 = arith.constant 0.000000e+00 : f32
      %370 = vector.broadcast %cst_89 : f32 to vector<16x128xf32>
      %c0_90 = arith.constant 0 : index
      %c0_91 = arith.constant 0 : index
      %371 = vector.load %arg15[%c0_90, %c0_91] : memref<16x128xf32, #tpu.memory_space<vmem>>, vector<16x128xf32>
      tpu.vector_store %arg15[%c0_90, %c0_91], %370 {strides = array<i32>} : memref<16x128xf32, #tpu.memory_space<vmem>>, vector<16x128xf32>,
      %cst_92 = arith.constant 0.000000e+00 : f32
      %372 = vector.broadcast %cst_92 : f32 to vector<16x128xf32>
      %c0_93 = arith.constant 0 : index
      %c0_94 = arith.constant 0 : index
      %373 = vector.load %arg16[%c0_93, %c0_94] : memref<16x128xf32, #tpu.memory_space<vmem>>, vector<16x128xf32>
      tpu.vector_store %arg16[%c0_93, %c0_94], %372 {strides = array<i32>} : memref<16x128xf32, #tpu.memory_space<vmem>>, vector<16x128xf32>,
    } else {
    }
    %c0 = arith.constant 0 : index
    %3 = memref.load %arg6[%c0] : memref<3xf32, #tpu.memory_space<smem>>
    %c1 = arith.constant 1 : index
    %4 = memref.load %arg6[%c1] : memref<3xf32, #tpu.memory_space<smem>>
    %c2 = arith.constant 2 : index
    %5 = memref.load %arg6[%c2] : memref<3xf32, #tpu.memory_space<smem>>
    %c0_1 = arith.constant 0 : index
    %c0_2 = arith.constant 0 : index
    %c0_3 = arith.constant 0 : index
    %6 = vector.load %arg3[%c0_1, %c0_2, %c0_3] : memref<8x16x32xbf16, #tpu.memory_space<vmem>>, vector<8x16x32xbf16>
    %7 = arith.extf %6 : vector<8x16x32xbf16> to vector<8x16x32xf32>
    %8 = vector.broadcast %3 : f32 to vector<8x16x32xf32>
    %9 = arith.mulf %8, %7 : vector<8x16x32xf32>
    %c0_4 = arith.constant 0 : index
    %c0_5 = arith.constant 0 : index
    %c0_6 = arith.constant 0 : index
    %10 = vector.load %arg4[%c0_4, %c0_5, %c0_6] : memref<8x16x32xbf16, #tpu.memory_space<vmem>>, vector<8x16x32xbf16>
    %11 = arith.extf %10 : vector<8x16x32xbf16> to vector<8x16x32xf32>
    %12 = vector.broadcast %4 : f32 to vector<8x16x32xf32>
    %13 = arith.mulf %12, %11 : vector<8x16x32xf32>
    %14 = arith.addf %9, %13 : vector<8x16x32xf32>
    %c0_7 = arith.constant 0 : index
    %c0_8 = arith.constant 0 : index
    %c0_9 = arith.constant 0 : index
    %15 = vector.load %arg5[%c0_7, %c0_8, %c0_9] : memref<8x16x32xbf16, #tpu.memory_space<vmem>>, vector<8x16x32xbf16>
    %16 = arith.extf %15 : vector<8x16x32xbf16> to vector<8x16x32xf32>
    %17 = vector.broadcast %5 : f32 to vector<8x16x32xf32>
    %18 = arith.mulf %17, %16 : vector<8x16x32xf32>
    %19 = arith.addf %14, %18 : vector<8x16x32xf32>
    %20 = vector.shape_cast %19 : vector<8x16x32xf32> to vector<128x32xf32>
    %21 = arith.truncf %20 : vector<128x32xf32> to vector<128x32xbf16>
    %c0_10 = arith.constant 0 : index
    %c0_11 = arith.constant 0 : index
    %22 = vector.load %arg7[%c0_10, %c0_11] : memref<32x512xbf16, #tpu.memory_space<vmem>>, vector<32x512xbf16>
    %cst = arith.constant dense<0.000000e+00> : vector<128x512xf32>
    %23 = tpu.matmul %21, %22, %cst {dimension_numbers = #tpu.dot_dimension_numbers<[1], [0], [0], [1], [0, 0, 1, 1], [], []>} : vector<128x32xbf16>, vector<32x512xbf16>, vector<128x512xf32> -> vector<128x512xf32>
    %24 = vector.shape_cast %23 : vector<128x512xf32> to vector<8x16x512xf32>
    %c0_12 = arith.constant 0 : index
    %c0_13 = arith.constant 0 : index
    %25 = vector.load %arg9[%c0_12, %c0_13] : memref<1x512xf32, #tpu.memory_space<vmem>>, vector<1x512xf32>
    %26 = vector.shape_cast %25 : vector<1x512xf32> to vector<1x1x512xf32>
    %27 = vector.broadcast %26 : vector<1x1x512xf32> to vector<8x16x512xf32>
    %28 = arith.addf %24, %27 : vector<8x16x512xf32>
    %c0_14 = arith.constant 0 : index
    %c0_15 = arith.constant 0 : index
    %c0_16 = arith.constant 0 : index
    %29 = vector.load %arg13[%c0_14, %c0_15, %c0_16] : memref<8x16x512xf32, #tpu.memory_space<vmem>>, vector<8x16x512xf32>
    tpu.vector_store %arg13[%c0_14, %c0_15, %c0_16], %28 {strides = array<i32>} : memref<8x16x512xf32, #tpu.memory_space<vmem>>, vector<8x16x512xf32>,
    %c0_17 = arith.constant 0 : index
    %c0_18 = arith.constant 0 : index
    %30 = vector.load %arg2[%c0_17, %c0_18] : memref<16x8xi32, #tpu.memory_space<vmem>>, vector<16x8xi32>
    %c50_i32 = arith.constant 50 : i32
    %31 = vector.broadcast %c50_i32 : i32 to vector<16x8xi32>
    %32 = arith.cmpi ne, %30, %31 : vector<16x8xi32>
    %33 = arith.extui %32 : vector<16x8xi1> to vector<16x8xi32>
    %34 = arith.sitofp %33 : vector<16x8xi32> to vector<16x8xf32>
    %cst_19 = arith.constant dense<0.000000e+00> : vector<16xf32>
    %35 = vector.multi_reduction <add>, %34, %cst_19 [1] : vector<16x8xf32> to vector<16xf32>
    %36 = vector.shape_cast %35 : vector<16xf32> to vector<16x1xf32>
    %c0_20 = arith.constant 0 : index
    %c0_21 = arith.constant 0 : index
    %37 = vector.load %arg8[%c0_20, %c0_21] : memref<128x512xbf16, #tpu.memory_space<vmem>>, vector<128x512xbf16>
    %c8_i32 = arith.constant 8 : i32
    %38 = arith.muli %arg1, %c8_i32 : i32
    %c0_22 = arith.constant 0 : index
    %c0_23 = arith.constant 0 : index
    %39 = vector.load %arg14[%c0_22, %c0_23] : memref<16x128xf32, #tpu.memory_space<vmem>>, vector<16x128xf32>
    %c0_24 = arith.constant 0 : index
    %c0_25 = arith.constant 0 : index
    %40 = vector.load %arg15[%c0_24, %c0_25] : memref<16x128xf32, #tpu.memory_space<vmem>>, vector<16x128xf32>
    %c0_26 = arith.constant 0 : index
    %c0_27 = arith.constant 0 : index
    %41 = vector.load %arg16[%c0_26, %c0_27] : memref<16x128xf32, #tpu.memory_space<vmem>>, vector<16x128xf32>
    %c0_i32_28 = arith.constant 0 : i32
    %42 = arith.index_cast %c0_i32_28 : i32 to index
    %c0_29 = arith.constant 0 : index
    %c0_30 = arith.constant 0 : index
    %43 = vector.load %arg13[%42, %c0_29, %c0_30] : memref<8x16x512xf32, #tpu.memory_space<vmem>>, vector<1x16x512xf32>
    %44 = vector.shape_cast %43 : vector<1x16x512xf32> to vector<16x512xf32>
    %45 = arith.truncf %39 : vector<16x128xf32> to vector<16x128xbf16>
    %cst_31 = arith.constant dense<0.000000e+00> : vector<16x512xf32>
    %46 = tpu.matmul %45, %37, %cst_31 {dimension_numbers = #tpu.dot_dimension_numbers<[1], [0], [0], [1], [0, 0, 1, 1], [], []>} : vector<16x128xbf16>, vector<128x512xbf16>, vector<16x512xf32> -> vector<16x512xf32>
    %47 = arith.addf %44, %46 : vector<16x512xf32>
    %48 = vector.extract_strided_slice %47 {offsets = [0, 0], sizes = [16, 128], strides = [1, 1]} : vector<16x512xf32> to vector<16x128xf32>
    %49 = arith.negf %48 : vector<16x128xf32>
    %50 = math.exp %49 : vector<16x128xf32>
    %cst_32 = arith.constant 1.000000e+00 : f32
    %51 = vector.broadcast %cst_32 : f32 to vector<16x128xf32>
    %52 = arith.addf %51, %50 : vector<16x128xf32>
    %53 = arith.divf %51, %52 : vector<16x128xf32>
    %54 = vector.extract_strided_slice %47 {offsets = [0, 128], sizes = [16, 128], strides = [1, 1]} : vector<16x512xf32> to vector<16x128xf32>
    %55 = arith.negf %54 : vector<16x128xf32>
    %56 = math.exp %55 : vector<16x128xf32>
    %cst_33 = arith.constant 1.000000e+00 : f32
    %57 = vector.broadcast %cst_33 : f32 to vector<16x128xf32>
    %58 = arith.addf %57, %56 : vector<16x128xf32>
    %59 = arith.divf %57, %58 : vector<16x128xf32>
    %60 = vector.extract_strided_slice %47 {offsets = [0, 256], sizes = [16, 128], strides = [1, 1]} : vector<16x512xf32> to vector<16x128xf32>
    %61 = math.tanh %60 : vector<16x128xf32>
    %62 = vector.extract_strided_slice %47 {offsets = [0, 384], sizes = [16, 128], strides = [1, 1]} : vector<16x512xf32> to vector<16x128xf32>
    %63 = arith.negf %62 : vector<16x128xf32>
    %64 = math.exp %63 : vector<16x128xf32>
    %cst_34 = arith.constant 1.000000e+00 : f32
    %65 = vector.broadcast %cst_34 : f32 to vector<16x128xf32>
    %66 = arith.addf %65, %64 : vector<16x128xf32>
    %67 = arith.divf %65, %66 : vector<16x128xf32>
    %68 = arith.mulf %59, %40 : vector<16x128xf32>
    %69 = arith.mulf %53, %61 : vector<16x128xf32>
    %70 = arith.addf %68, %69 : vector<16x128xf32>
    %71 = math.tanh %70 : vector<16x128xf32>
    %72 = arith.mulf %67, %71 : vector<16x128xf32>
    %73 = arith.addi %38, %c0_i32_28 : i32
    %74 = arith.sitofp %73 : i32 to f32
    %75 = vector.broadcast %74 : f32 to vector<16x1xf32>
    %76 = arith.cmpf ogt, %36, %75 : vector<16x1xf32>
    %77 = arith.extui %76 : vector<16x1xi1> to vector<16x1xi32>
    %78 = arith.sitofp %77 : vector<16x1xi32> to vector<16x1xf32>
    %79 = vector.broadcast %78 : vector<16x1xf32> to vector<16x128xf32>
    %80 = arith.mulf %72, %79 : vector<16x128xf32>
    %81 = arith.addf %41, %80 : vector<16x128xf32>
    %c1_i32 = arith.constant 1 : i32
    %82 = arith.index_cast %c1_i32 : i32 to index
    %c0_35 = arith.constant 0 : index
    %c0_36 = arith.constant 0 : index
    %83 = vector.load %arg13[%82, %c0_35, %c0_36] : memref<8x16x512xf32, #tpu.memory_space<vmem>>, vector<1x16x512xf32>
    %84 = vector.shape_cast %83 : vector<1x16x512xf32> to vector<16x512xf32>
    %85 = arith.truncf %72 : vector<16x128xf32> to vector<16x128xbf16>
    %cst_37 = arith.constant dense<0.000000e+00> : vector<16x512xf32>
    %86 = tpu.matmul %85, %37, %cst_37 {dimension_numbers = #tpu.dot_dimension_numbers<[1], [0], [0], [1], [0, 0, 1, 1], [], []>} : vector<16x128xbf16>, vector<128x512xbf16>, vector<16x512xf32> -> vector<16x512xf32>
    %87 = arith.addf %84, %86 : vector<16x512xf32>
    %88 = vector.extract_strided_slice %87 {offsets = [0, 0], sizes = [16, 128], strides = [1, 1]} : vector<16x512xf32> to vector<16x128xf32>
    %89 = arith.negf %88 : vector<16x128xf32>
    %90 = math.exp %89 : vector<16x128xf32>
    %cst_38 = arith.constant 1.000000e+00 : f32
    %91 = vector.broadcast %cst_38 : f32 to vector<16x128xf32>
    %92 = arith.addf %91, %90 : vector<16x128xf32>
    %93 = arith.divf %91, %92 : vector<16x128xf32>
    %94 = vector.extract_strided_slice %87 {offsets = [0, 128], sizes = [16, 128], strides = [1, 1]} : vector<16x512xf32> to vector<16x128xf32>
    %95 = arith.negf %94 : vector<16x128xf32>
    %96 = math.exp %95 : vector<16x128xf32>
    %cst_39 = arith.constant 1.000000e+00 : f32
    %97 = vector.broadcast %cst_39 : f32 to vector<16x128xf32>
    %98 = arith.addf %97, %96 : vector<16x128xf32>
    %99 = arith.divf %97, %98 : vector<16x128xf32>
    %100 = vector.extract_strided_slice %87 {offsets = [0, 256], sizes = [16, 128], strides = [1, 1]} : vector<16x512xf32> to vector<16x128xf32>
    %101 = math.tanh %100 : vector<16x128xf32>
    %102 = vector.extract_strided_slice %87 {offsets = [0, 384], sizes = [16, 128], strides = [1, 1]} : vector<16x512xf32> to vector<16x128xf32>
    %103 = arith.negf %102 : vector<16x128xf32>
    %104 = math.exp %103 : vector<16x128xf32>
    %cst_40 = arith.constant 1.000000e+00 : f32
    %105 = vector.broadcast %cst_40 : f32 to vector<16x128xf32>
    %106 = arith.addf %105, %104 : vector<16x128xf32>
    %107 = arith.divf %105, %106 : vector<16x128xf32>
    %108 = arith.mulf %99, %70 : vector<16x128xf32>
    %109 = arith.mulf %93, %101 : vector<16x128xf32>
    %110 = arith.addf %108, %109 : vector<16x128xf32>
    %111 = math.tanh %110 : vector<16x128xf32>
    %112 = arith.mulf %107, %111 : vector<16x128xf32>
    %113 = arith.addi %38, %c1_i32 : i32
    %114 = arith.sitofp %113 : i32 to f32
    %115 = vector.broadcast %114 : f32 to vector<16x1xf32>
    %116 = arith.cmpf ogt, %36, %115 : vector<16x1xf32>
    %117 = arith.extui %116 : vector<16x1xi1> to vector<16x1xi32>
    %118 = arith.sitofp %117 : vector<16x1xi32> to vector<16x1xf32>
    %119 = vector.broadcast %118 : vector<16x1xf32> to vector<16x128xf32>
    %120 = arith.mulf %112, %119 : vector<16x128xf32>
    %121 = arith.addf %81, %120 : vector<16x128xf32>
    %c2_i32 = arith.constant 2 : i32
    %122 = arith.index_cast %c2_i32 : i32 to index
    %c0_41 = arith.constant 0 : index
    %c0_42 = arith.constant 0 : index
    %123 = vector.load %arg13[%122, %c0_41, %c0_42] : memref<8x16x512xf32, #tpu.memory_space<vmem>>, vector<1x16x512xf32>
    %124 = vector.shape_cast %123 : vector<1x16x512xf32> to vector<16x512xf32>
    %125 = arith.truncf %112 : vector<16x128xf32> to vector<16x128xbf16>
    %cst_43 = arith.constant dense<0.000000e+00> : vector<16x512xf32>
    %126 = tpu.matmul %125, %37, %cst_43 {dimension_numbers = #tpu.dot_dimension_numbers<[1], [0], [0], [1], [0, 0, 1, 1], [], []>} : vector<16x128xbf16>, vector<128x512xbf16>, vector<16x512xf32> -> vector<16x512xf32>
    %127 = arith.addf %124, %126 : vector<16x512xf32>
    %128 = vector.extract_strided_slice %127 {offsets = [0, 0], sizes = [16, 128], strides = [1, 1]} : vector<16x512xf32> to vector<16x128xf32>
    %129 = arith.negf %128 : vector<16x128xf32>
    %130 = math.exp %129 : vector<16x128xf32>
    %cst_44 = arith.constant 1.000000e+00 : f32
    %131 = vector.broadcast %cst_44 : f32 to vector<16x128xf32>
    %132 = arith.addf %131, %130 : vector<16x128xf32>
    %133 = arith.divf %131, %132 : vector<16x128xf32>
    %134 = vector.extract_strided_slice %127 {offsets = [0, 128], sizes = [16, 128], strides = [1, 1]} : vector<16x512xf32> to vector<16x128xf32>
    %135 = arith.negf %134 : vector<16x128xf32>
    %136 = math.exp %135 : vector<16x128xf32>
    %cst_45 = arith.constant 1.000000e+00 : f32
    %137 = vector.broadcast %cst_45 : f32 to vector<16x128xf32>
    %138 = arith.addf %137, %136 : vector<16x128xf32>
    %139 = arith.divf %137, %138 : vector<16x128xf32>
    %140 = vector.extract_strided_slice %127 {offsets = [0, 256], sizes = [16, 128], strides = [1, 1]} : vector<16x512xf32> to vector<16x128xf32>
    %141 = math.tanh %140 : vector<16x128xf32>
    %142 = vector.extract_strided_slice %127 {offsets = [0, 384], sizes = [16, 128], strides = [1, 1]} : vector<16x512xf32> to vector<16x128xf32>
    %143 = arith.negf %142 : vector<16x128xf32>
    %144 = math.exp %143 : vector<16x128xf32>
    %cst_46 = arith.constant 1.000000e+00 : f32
    %145 = vector.broadcast %cst_46 : f32 to vector<16x128xf32>
    %146 = arith.addf %145, %144 : vector<16x128xf32>
    %147 = arith.divf %145, %146 : vector<16x128xf32>
    %148 = arith.mulf %139, %110 : vector<16x128xf32>
    %149 = arith.mulf %133, %141 : vector<16x128xf32>
    %150 = arith.addf %148, %149 : vector<16x128xf32>
    %151 = math.tanh %150 : vector<16x128xf32>
    %152 = arith.mulf %147, %151 : vector<16x128xf32>
    %153 = arith.addi %38, %c2_i32 : i32
    %154 = arith.sitofp %153 : i32 to f32
    %155 = vector.broadcast %154 : f32 to vector<16x1xf32>
    %156 = arith.cmpf ogt, %36, %155 : vector<16x1xf32>
    %157 = arith.extui %156 : vector<16x1xi1> to vector<16x1xi32>
    %158 = arith.sitofp %157 : vector<16x1xi32> to vector<16x1xf32>
    %159 = vector.broadcast %158 : vector<16x1xf32> to vector<16x128xf32>
    %160 = arith.mulf %152, %159 : vector<16x128xf32>
    %161 = arith.addf %121, %160 : vector<16x128xf32>
    %c3_i32 = arith.constant 3 : i32
    %162 = arith.index_cast %c3_i32 : i32 to index
    %c0_47 = arith.constant 0 : index
    %c0_48 = arith.constant 0 : index
    %163 = vector.load %arg13[%162, %c0_47, %c0_48] : memref<8x16x512xf32, #tpu.memory_space<vmem>>, vector<1x16x512xf32>
    %164 = vector.shape_cast %163 : vector<1x16x512xf32> to vector<16x512xf32>
    %165 = arith.truncf %152 : vector<16x128xf32> to vector<16x128xbf16>
    %cst_49 = arith.constant dense<0.000000e+00> : vector<16x512xf32>
    %166 = tpu.matmul %165, %37, %cst_49 {dimension_numbers = #tpu.dot_dimension_numbers<[1], [0], [0], [1], [0, 0, 1, 1], [], []>} : vector<16x128xbf16>, vector<128x512xbf16>, vector<16x512xf32> -> vector<16x512xf32>
    %167 = arith.addf %164, %166 : vector<16x512xf32>
    %168 = vector.extract_strided_slice %167 {offsets = [0, 0], sizes = [16, 128], strides = [1, 1]} : vector<16x512xf32> to vector<16x128xf32>
    %169 = arith.negf %168 : vector<16x128xf32>
    %170 = math.exp %169 : vector<16x128xf32>
    %cst_50 = arith.constant 1.000000e+00 : f32
    %171 = vector.broadcast %cst_50 : f32 to vector<16x128xf32>
    %172 = arith.addf %171, %170 : vector<16x128xf32>
    %173 = arith.divf %171, %172 : vector<16x128xf32>
    %174 = vector.extract_strided_slice %167 {offsets = [0, 128], sizes = [16, 128], strides = [1, 1]} : vector<16x512xf32> to vector<16x128xf32>
    %175 = arith.negf %174 : vector<16x128xf32>
    %176 = math.exp %175 : vector<16x128xf32>
    %cst_51 = arith.constant 1.000000e+00 : f32
    %177 = vector.broadcast %cst_51 : f32 to vector<16x128xf32>
    %178 = arith.addf %177, %176 : vector<16x128xf32>
    %179 = arith.divf %177, %178 : vector<16x128xf32>
    %180 = vector.extract_strided_slice %167 {offsets = [0, 256], sizes = [16, 128], strides = [1, 1]} : vector<16x512xf32> to vector<16x128xf32>
    %181 = math.tanh %180 : vector<16x128xf32>
    %182 = vector.extract_strided_slice %167 {offsets = [0, 384], sizes = [16, 128], strides = [1, 1]} : vector<16x512xf32> to vector<16x128xf32>
    %183 = arith.negf %182 : vector<16x128xf32>
    %184 = math.exp %183 : vector<16x128xf32>
    %cst_52 = arith.constant 1.000000e+00 : f32
    %185 = vector.broadcast %cst_52 : f32 to vector<16x128xf32>
    %186 = arith.addf %185, %184 : vector<16x128xf32>
    %187 = arith.divf %185, %186 : vector<16x128xf32>
    %188 = arith.mulf %179, %150 : vector<16x128xf32>
    %189 = arith.mulf %173, %181 : vector<16x128xf32>
    %190 = arith.addf %188, %189 : vector<16x128xf32>
    %191 = math.tanh %190 : vector<16x128xf32>
    %192 = arith.mulf %187, %191 : vector<16x128xf32>
    %193 = arith.addi %38, %c3_i32 : i32
    %194 = arith.sitofp %193 : i32 to f32
    %195 = vector.broadcast %194 : f32 to vector<16x1xf32>
    %196 = arith.cmpf ogt, %36, %195 : vector<16x1xf32>
    %197 = arith.extui %196 : vector<16x1xi1> to vector<16x1xi32>
    %198 = arith.sitofp %197 : vector<16x1xi32> to vector<16x1xf32>
    %199 = vector.broadcast %198 : vector<16x1xf32> to vector<16x128xf32>
    %200 = arith.mulf %192, %199 : vector<16x128xf32>
    %201 = arith.addf %161, %200 : vector<16x128xf32>
    %c4_i32 = arith.constant 4 : i32
    %202 = arith.index_cast %c4_i32 : i32 to index
    %c0_53 = arith.constant 0 : index
    %c0_54 = arith.constant 0 : index
    %203 = vector.load %arg13[%202, %c0_53, %c0_54] : memref<8x16x512xf32, #tpu.memory_space<vmem>>, vector<1x16x512xf32>
    %204 = vector.shape_cast %203 : vector<1x16x512xf32> to vector<16x512xf32>
    %205 = arith.truncf %192 : vector<16x128xf32> to vector<16x128xbf16>
    %cst_55 = arith.constant dense<0.000000e+00> : vector<16x512xf32>
    %206 = tpu.matmul %205, %37, %cst_55 {dimension_numbers = #tpu.dot_dimension_numbers<[1], [0], [0], [1], [0, 0, 1, 1], [], []>} : vector<16x128xbf16>, vector<128x512xbf16>, vector<16x512xf32> -> vector<16x512xf32>
    %207 = arith.addf %204, %206 : vector<16x512xf32>
    %208 = vector.extract_strided_slice %207 {offsets = [0, 0], sizes = [16, 128], strides = [1, 1]} : vector<16x512xf32> to vector<16x128xf32>
    %209 = arith.negf %208 : vector<16x128xf32>
    %210 = math.exp %209 : vector<16x128xf32>
    %cst_56 = arith.constant 1.000000e+00 : f32
    %211 = vector.broadcast %cst_56 : f32 to vector<16x128xf32>
    %212 = arith.addf %211, %210 : vector<16x128xf32>
    %213 = arith.divf %211, %212 : vector<16x128xf32>
    %214 = vector.extract_strided_slice %207 {offsets = [0, 128], sizes = [16, 128], strides = [1, 1]} : vector<16x512xf32> to vector<16x128xf32>
    %215 = arith.negf %214 : vector<16x128xf32>
    %216 = math.exp %215 : vector<16x128xf32>
    %cst_57 = arith.constant 1.000000e+00 : f32
    %217 = vector.broadcast %cst_57 : f32 to vector<16x128xf32>
    %218 = arith.addf %217, %216 : vector<16x128xf32>
    %219 = arith.divf %217, %218 : vector<16x128xf32>
    %220 = vector.extract_strided_slice %207 {offsets = [0, 256], sizes = [16, 128], strides = [1, 1]} : vector<16x512xf32> to vector<16x128xf32>
    %221 = math.tanh %220 : vector<16x128xf32>
    %222 = vector.extract_strided_slice %207 {offsets = [0, 384], sizes = [16, 128], strides = [1, 1]} : vector<16x512xf32> to vector<16x128xf32>
    %223 = arith.negf %222 : vector<16x128xf32>
    %224 = math.exp %223 : vector<16x128xf32>
    %cst_58 = arith.constant 1.000000e+00 : f32
    %225 = vector.broadcast %cst_58 : f32 to vector<16x128xf32>
    %226 = arith.addf %225, %224 : vector<16x128xf32>
    %227 = arith.divf %225, %226 : vector<16x128xf32>
    %228 = arith.mulf %219, %190 : vector<16x128xf32>
    %229 = arith.mulf %213, %221 : vector<16x128xf32>
    %230 = arith.addf %228, %229 : vector<16x128xf32>
    %231 = math.tanh %230 : vector<16x128xf32>
    %232 = arith.mulf %227, %231 : vector<16x128xf32>
    %233 = arith.addi %38, %c4_i32 : i32
    %234 = arith.sitofp %233 : i32 to f32
    %235 = vector.broadcast %234 : f32 to vector<16x1xf32>
    %236 = arith.cmpf ogt, %36, %235 : vector<16x1xf32>
    %237 = arith.extui %236 : vector<16x1xi1> to vector<16x1xi32>
    %238 = arith.sitofp %237 : vector<16x1xi32> to vector<16x1xf32>
    %239 = vector.broadcast %238 : vector<16x1xf32> to vector<16x128xf32>
    %240 = arith.mulf %232, %239 : vector<16x128xf32>
    %241 = arith.addf %201, %240 : vector<16x128xf32>
    %c5_i32 = arith.constant 5 : i32
    %242 = arith.index_cast %c5_i32 : i32 to index
    %c0_59 = arith.constant 0 : index
    %c0_60 = arith.constant 0 : index
    %243 = vector.load %arg13[%242, %c0_59, %c0_60] : memref<8x16x512xf32, #tpu.memory_space<vmem>>, vector<1x16x512xf32>
    %244 = vector.shape_cast %243 : vector<1x16x512xf32> to vector<16x512xf32>
    %245 = arith.truncf %232 : vector<16x128xf32> to vector<16x128xbf16>
    %cst_61 = arith.constant dense<0.000000e+00> : vector<16x512xf32>
    %246 = tpu.matmul %245, %37, %cst_61 {dimension_numbers = #tpu.dot_dimension_numbers<[1], [0], [0], [1], [0, 0, 1, 1], [], []>} : vector<16x128xbf16>, vector<128x512xbf16>, vector<16x512xf32> -> vector<16x512xf32>
    %247 = arith.addf %244, %246 : vector<16x512xf32>
    %248 = vector.extract_strided_slice %247 {offsets = [0, 0], sizes = [16, 128], strides = [1, 1]} : vector<16x512xf32> to vector<16x128xf32>
    %249 = arith.negf %248 : vector<16x128xf32>
    %250 = math.exp %249 : vector<16x128xf32>
    %cst_62 = arith.constant 1.000000e+00 : f32
    %251 = vector.broadcast %cst_62 : f32 to vector<16x128xf32>
    %252 = arith.addf %251, %250 : vector<16x128xf32>
    %253 = arith.divf %251, %252 : vector<16x128xf32>
    %254 = vector.extract_strided_slice %247 {offsets = [0, 128], sizes = [16, 128], strides = [1, 1]} : vector<16x512xf32> to vector<16x128xf32>
    %255 = arith.negf %254 : vector<16x128xf32>
    %256 = math.exp %255 : vector<16x128xf32>
    %cst_63 = arith.constant 1.000000e+00 : f32
    %257 = vector.broadcast %cst_63 : f32 to vector<16x128xf32>
    %258 = arith.addf %257, %256 : vector<16x128xf32>
    %259 = arith.divf %257, %258 : vector<16x128xf32>
    %260 = vector.extract_strided_slice %247 {offsets = [0, 256], sizes = [16, 128], strides = [1, 1]} : vector<16x512xf32> to vector<16x128xf32>
    %261 = math.tanh %260 : vector<16x128xf32>
    %262 = vector.extract_strided_slice %247 {offsets = [0, 384], sizes = [16, 128], strides = [1, 1]} : vector<16x512xf32> to vector<16x128xf32>
    %263 = arith.negf %262 : vector<16x128xf32>
    %264 = math.exp %263 : vector<16x128xf32>
    %cst_64 = arith.constant 1.000000e+00 : f32
    %265 = vector.broadcast %cst_64 : f32 to vector<16x128xf32>
    %266 = arith.addf %265, %264 : vector<16x128xf32>
    %267 = arith.divf %265, %266 : vector<16x128xf32>
    %268 = arith.mulf %259, %230 : vector<16x128xf32>
    %269 = arith.mulf %253, %261 : vector<16x128xf32>
    %270 = arith.addf %268, %269 : vector<16x128xf32>
    %271 = math.tanh %270 : vector<16x128xf32>
    %272 = arith.mulf %267, %271 : vector<16x128xf32>
    %273 = arith.addi %38, %c5_i32 : i32
    %274 = arith.sitofp %273 : i32 to f32
    %275 = vector.broadcast %274 : f32 to vector<16x1xf32>
    %276 = arith.cmpf ogt, %36, %275 : vector<16x1xf32>
    %277 = arith.extui %276 : vector<16x1xi1> to vector<16x1xi32>
    %278 = arith.sitofp %277 : vector<16x1xi32> to vector<16x1xf32>
    %279 = vector.broadcast %278 : vector<16x1xf32> to vector<16x128xf32>
    %280 = arith.mulf %272, %279 : vector<16x128xf32>
    %281 = arith.addf %241, %280 : vector<16x128xf32>
    %c6_i32 = arith.constant 6 : i32
    %282 = arith.index_cast %c6_i32 : i32 to index
    %c0_65 = arith.constant 0 : index
    %c0_66 = arith.constant 0 : index
    %283 = vector.load %arg13[%282, %c0_65, %c0_66] : memref<8x16x512xf32, #tpu.memory_space<vmem>>, vector<1x16x512xf32>
    %284 = vector.shape_cast %283 : vector<1x16x512xf32> to vector<16x512xf32>
    %285 = arith.truncf %272 : vector<16x128xf32> to vector<16x128xbf16>
    %cst_67 = arith.constant dense<0.000000e+00> : vector<16x512xf32>
    %286 = tpu.matmul %285, %37, %cst_67 {dimension_numbers = #tpu.dot_dimension_numbers<[1], [0], [0], [1], [0, 0, 1, 1], [], []>} : vector<16x128xbf16>, vector<128x512xbf16>, vector<16x512xf32> -> vector<16x512xf32>
    %287 = arith.addf %284, %286 : vector<16x512xf32>
    %288 = vector.extract_strided_slice %287 {offsets = [0, 0], sizes = [16, 128], strides = [1, 1]} : vector<16x512xf32> to vector<16x128xf32>
    %289 = arith.negf %288 : vector<16x128xf32>
    %290 = math.exp %289 : vector<16x128xf32>
    %cst_68 = arith.constant 1.000000e+00 : f32
    %291 = vector.broadcast %cst_68 : f32 to vector<16x128xf32>
    %292 = arith.addf %291, %290 : vector<16x128xf32>
    %293 = arith.divf %291, %292 : vector<16x128xf32>
    %294 = vector.extract_strided_slice %287 {offsets = [0, 128], sizes = [16, 128], strides = [1, 1]} : vector<16x512xf32> to vector<16x128xf32>
    %295 = arith.negf %294 : vector<16x128xf32>
    %296 = math.exp %295 : vector<16x128xf32>
    %cst_69 = arith.constant 1.000000e+00 : f32
    %297 = vector.broadcast %cst_69 : f32 to vector<16x128xf32>
    %298 = arith.addf %297, %296 : vector<16x128xf32>
    %299 = arith.divf %297, %298 : vector<16x128xf32>
    %300 = vector.extract_strided_slice %287 {offsets = [0, 256], sizes = [16, 128], strides = [1, 1]} : vector<16x512xf32> to vector<16x128xf32>
    %301 = math.tanh %300 : vector<16x128xf32>
    %302 = vector.extract_strided_slice %287 {offsets = [0, 384], sizes = [16, 128], strides = [1, 1]} : vector<16x512xf32> to vector<16x128xf32>
    %303 = arith.negf %302 : vector<16x128xf32>
    %304 = math.exp %303 : vector<16x128xf32>
    %cst_70 = arith.constant 1.000000e+00 : f32
    %305 = vector.broadcast %cst_70 : f32 to vector<16x128xf32>
    %306 = arith.addf %305, %304 : vector<16x128xf32>
    %307 = arith.divf %305, %306 : vector<16x128xf32>
    %308 = arith.mulf %299, %270 : vector<16x128xf32>
    %309 = arith.mulf %293, %301 : vector<16x128xf32>
    %310 = arith.addf %308, %309 : vector<16x128xf32>
    %311 = math.tanh %310 : vector<16x128xf32>
    %312 = arith.mulf %307, %311 : vector<16x128xf32>
    %313 = arith.addi %38, %c6_i32 : i32
    %314 = arith.sitofp %313 : i32 to f32
    %315 = vector.broadcast %314 : f32 to vector<16x1xf32>
    %316 = arith.cmpf ogt, %36, %315 : vector<16x1xf32>
    %317 = arith.extui %316 : vector<16x1xi1> to vector<16x1xi32>
    %318 = arith.sitofp %317 : vector<16x1xi32> to vector<16x1xf32>
    %319 = vector.broadcast %318 : vector<16x1xf32> to vector<16x128xf32>
    %320 = arith.mulf %312, %319 : vector<16x128xf32>
    %321 = arith.addf %281, %320 : vector<16x128xf32>
    %c7_i32 = arith.constant 7 : i32
    %322 = arith.index_cast %c7_i32 : i32 to index
    %c0_71 = arith.constant 0 : index
    %c0_72 = arith.constant 0 : index
    %323 = vector.load %arg13[%322, %c0_71, %c0_72] : memref<8x16x512xf32, #tpu.memory_space<vmem>>, vector<1x16x512xf32>
    %324 = vector.shape_cast %323 : vector<1x16x512xf32> to vector<16x512xf32>
    %325 = arith.truncf %312 : vector<16x128xf32> to vector<16x128xbf16>
    %cst_73 = arith.constant dense<0.000000e+00> : vector<16x512xf32>
    %326 = tpu.matmul %325, %37, %cst_73 {dimension_numbers = #tpu.dot_dimension_numbers<[1], [0], [0], [1], [0, 0, 1, 1], [], []>} : vector<16x128xbf16>, vector<128x512xbf16>, vector<16x512xf32> -> vector<16x512xf32>
    %327 = arith.addf %324, %326 : vector<16x512xf32>
    %328 = vector.extract_strided_slice %327 {offsets = [0, 0], sizes = [16, 128], strides = [1, 1]} : vector<16x512xf32> to vector<16x128xf32>
    %329 = arith.negf %328 : vector<16x128xf32>
    %330 = math.exp %329 : vector<16x128xf32>
    %cst_74 = arith.constant 1.000000e+00 : f32
    %331 = vector.broadcast %cst_74 : f32 to vector<16x128xf32>
    %332 = arith.addf %331, %330 : vector<16x128xf32>
    %333 = arith.divf %331, %332 : vector<16x128xf32>
    %334 = vector.extract_strided_slice %327 {offsets = [0, 128], sizes = [16, 128], strides = [1, 1]} : vector<16x512xf32> to vector<16x128xf32>
    %335 = arith.negf %334 : vector<16x128xf32>
    %336 = math.exp %335 : vector<16x128xf32>
    %cst_75 = arith.constant 1.000000e+00 : f32
    %337 = vector.broadcast %cst_75 : f32 to vector<16x128xf32>
    %338 = arith.addf %337, %336 : vector<16x128xf32>
    %339 = arith.divf %337, %338 : vector<16x128xf32>
    %340 = vector.extract_strided_slice %327 {offsets = [0, 256], sizes = [16, 128], strides = [1, 1]} : vector<16x512xf32> to vector<16x128xf32>
    %341 = math.tanh %340 : vector<16x128xf32>
    %342 = vector.extract_strided_slice %327 {offsets = [0, 384], sizes = [16, 128], strides = [1, 1]} : vector<16x512xf32> to vector<16x128xf32>
    %343 = arith.negf %342 : vector<16x128xf32>
    %344 = math.exp %343 : vector<16x128xf32>
    %cst_76 = arith.constant 1.000000e+00 : f32
    %345 = vector.broadcast %cst_76 : f32 to vector<16x128xf32>
    %346 = arith.addf %345, %344 : vector<16x128xf32>
    %347 = arith.divf %345, %346 : vector<16x128xf32>
    %348 = arith.mulf %339, %310 : vector<16x128xf32>
    %349 = arith.mulf %333, %341 : vector<16x128xf32>
    %350 = arith.addf %348, %349 : vector<16x128xf32>
    %351 = math.tanh %350 : vector<16x128xf32>
    %352 = arith.mulf %347, %351 : vector<16x128xf32>
    %353 = arith.addi %38, %c7_i32 : i32
    %354 = arith.sitofp %353 : i32 to f32
    %355 = vector.broadcast %354 : f32 to vector<16x1xf32>
    %356 = arith.cmpf ogt, %36, %355 : vector<16x1xf32>
    %357 = arith.extui %356 : vector<16x1xi1> to vector<16x1xi32>
    %358 = arith.sitofp %357 : vector<16x1xi32> to vector<16x1xf32>
    %359 = vector.broadcast %358 : vector<16x1xf32> to vector<16x128xf32>
    %360 = arith.mulf %352, %359 : vector<16x128xf32>
    %361 = arith.addf %321, %360 : vector<16x128xf32>
    %c8_i32_77 = arith.constant 8 : i32
    %c0_78 = arith.constant 0 : index
    %c0_79 = arith.constant 0 : index
    %362 = vector.load %arg14[%c0_78, %c0_79] : memref<16x128xf32, #tpu.memory_space<vmem>>, vector<16x128xf32>
    tpu.vector_store %arg14[%c0_78, %c0_79], %352 {strides = array<i32>} : memref<16x128xf32, #tpu.memory_space<vmem>>, vector<16x128xf32>,
    %c0_80 = arith.constant 0 : index
    %c0_81 = arith.constant 0 : index
    %363 = vector.load %arg15[%c0_80, %c0_81] : memref<16x128xf32, #tpu.memory_space<vmem>>, vector<16x128xf32>
    tpu.vector_store %arg15[%c0_80, %c0_81], %350 {strides = array<i32>} : memref<16x128xf32, #tpu.memory_space<vmem>>, vector<16x128xf32>,
    %c0_82 = arith.constant 0 : index
    %c0_83 = arith.constant 0 : index
    %364 = vector.load %arg16[%c0_82, %c0_83] : memref<16x128xf32, #tpu.memory_space<vmem>>, vector<16x128xf32>
    tpu.vector_store %arg16[%c0_82, %c0_83], %361 {strides = array<i32>} : memref<16x128xf32, #tpu.memory_space<vmem>>, vector<16x128xf32>,
    %c0_i32_84 = arith.constant 0 : i32
    %365 = arith.cmpi eq, %arg1, %c0_i32_84 : i32
    %366 = arith.extui %365 : i1 to i32
    %c0_i32_85 = arith.constant 0 : i32
    %367 = arith.cmpi ne, %366, %c0_i32_85 : i32
    scf.if %367 {
      %cst_86 = arith.constant 1.000000e+00 : f32
      %368 = vector.broadcast %cst_86 : f32 to vector<16x1xf32>
      %369 = arith.maximumf %36, %368 : vector<16x1xf32>
      %370 = vector.broadcast %369 : vector<16x1xf32> to vector<16x128xf32>
      %371 = arith.divf %361, %370 : vector<16x128xf32>
      %c0_87 = arith.constant 0 : index
      %c0_88 = arith.constant 0 : index
      %372 = vector.load %arg10[%c0_87, %c0_88] : memref<128x128xf32, #tpu.memory_space<vmem>>, vector<128x128xf32>
      %cst_89 = arith.constant dense<0.000000e+00> : vector<16x128xf32>
      %373 = tpu.matmul %371, %372, %cst_89 {dimension_numbers = #tpu.dot_dimension_numbers<[1], [0], [0], [1], [0, 0, 1, 1], [], []>} : vector<16x128xf32>, vector<128x128xf32>, vector<16x128xf32> -> vector<16x128xf32>
      %c0_90 = arith.constant 0 : index
      %c0_91 = arith.constant 0 : index
      %374 = vector.load %arg11[%c0_90, %c0_91] : memref<1x128xf32, #tpu.memory_space<vmem>>, vector<1x128xf32>
      %375 = vector.broadcast %374 : vector<1x128xf32> to vector<16x128xf32>
      %376 = arith.addf %373, %375 : vector<16x128xf32>
      %c0_92 = arith.constant 0 : index
      %c0_93 = arith.constant 0 : index
      %377 = vector.load %arg12[%c0_92, %c0_93] : memref<16x128xf32, #tpu.memory_space<vmem>>, vector<16x128xf32>
      tpu.vector_store %arg12[%c0_92, %c0_93], %376 {strides = array<i32>} : memref<16x128xf32, #tpu.memory_space<vmem>>, vector<16x128xf32>,
    } else {
    }
    return
  }
  func.func @transform_0(%arg0: i32, %arg1: i32) -> (i32, i32) {
    %c0_i32 = arith.constant 0 : i32
    %c0_i32_0 = arith.constant 0 : i32
    return %arg0, %c0_i32 : i32, i32
  }
  func.func @transform_1(%arg0: i32, %arg1: i32) -> (i32, i32, i32) {
    %c0_i32 = arith.constant 0 : i32
    %c0_i32_0 = arith.constant 0 : i32
    return %arg1, %arg0, %c0_i32 : i32, i32, i32
  }
  func.func @transform_2(%arg0: i32, %arg1: i32) -> (i32, i32, i32) {
    %c0_i32 = arith.constant 0 : i32
    %c0_i32_0 = arith.constant 0 : i32
    return %arg1, %arg0, %c0_i32 : i32, i32, i32
  }
  func.func @transform_3(%arg0: i32, %arg1: i32) -> (i32, i32, i32) {
    %c0_i32 = arith.constant 0 : i32
    %c0_i32_0 = arith.constant 0 : i32
    return %arg1, %arg0, %c0_i32 : i32, i32, i32
  }
  func.func @transform_4(%arg0: i32, %arg1: i32) -> i32 {
    %c0_i32 = arith.constant 0 : i32
    %c0_i32_0 = arith.constant 0 : i32
    return %c0_i32 : i32
  }
  func.func @transform_5(%arg0: i32, %arg1: i32) -> (i32, i32) {
    %c0_i32 = arith.constant 0 : i32
    %c0_i32_0 = arith.constant 0 : i32
    %c0_i32_1 = arith.constant 0 : i32
    return %c0_i32, %c0_i32_0 : i32, i32
  }
  func.func @transform_6(%arg0: i32, %arg1: i32) -> (i32, i32) {
    %c0_i32 = arith.constant 0 : i32
    %c0_i32_0 = arith.constant 0 : i32
    %c0_i32_1 = arith.constant 0 : i32
    return %c0_i32, %c0_i32_0 : i32, i32
  }
  func.func @transform_7(%arg0: i32, %arg1: i32) -> (i32, i32) {
    %c0_i32 = arith.constant 0 : i32
    %c0_i32_0 = arith.constant 0 : i32
    %c0_i32_1 = arith.constant 0 : i32
    return %c0_i32, %c0_i32_0 : i32, i32
  }
  func.func @transform_8(%arg0: i32, %arg1: i32) -> (i32, i32) {
    %c0_i32 = arith.constant 0 : i32
    %c0_i32_0 = arith.constant 0 : i32
    %c0_i32_1 = arith.constant 0 : i32
    return %c0_i32, %c0_i32_0 : i32, i32
  }
  func.func @transform_9(%arg0: i32, %arg1: i32) -> (i32, i32) {
    %c0_i32 = arith.constant 0 : i32
    %c0_i32_0 = arith.constant 0 : i32
    %c0_i32_1 = arith.constant 0 : i32
    return %c0_i32, %c0_i32_0 : i32, i32
  }
  func.func @transform_10(%arg0: i32, %arg1: i32) -> (i32, i32) {
    %c0_i32 = arith.constant 0 : i32
    %c0_i32_0 = arith.constant 0 : i32
    return %arg0, %c0_i32 : i32, i32
  }
}

</mosaic_0001>

<bundles_post_ra>
// kernel: tpu_custom_call.1
= control target key start
LH: loop header
LB: loop body
LE: loop exit
PB: predicated region body
PF: predicated region fallthrough
CT: control target
= control target key end

     0   :  { %15 = vsyncpa [#allocation7], 0  ;;  %s4326_s0 = inlined_call_operand.vmem [shape: s32[16,8], index: 0, kind: input, shape index: {}]   ;;  %s4327_s1 = inlined_call_operand.hbm [shape: bf16[8,16,32], index: 1, kind: input, shape index: {}]   ;;  %s4328_s2 = inlined_call_operand.hbm [shape: bf16[8,16,32], index: 2, kind: input, shape index: {}]   ;;  %s4329_s3 = inlined_call_operand.hbm [shape: bf16[8,16,32], index: 3, kind: input, shape index: {}]   ;;  %s4330_s4 = inlined_call_operand.vmem [shape: f32[3], index: 4, kind: input, shape index: {}]   ;;  %s4331_s5 = inlined_call_operand.hbm [shape: bf16[32,512], index: 5, kind: input, shape index: {}]   ;;  %s4332_s6 = inlined_call_operand.hbm [shape: bf16[128,512], index: 6, kind: input, shape index: {}]   ;;  %s4333_s7 = inlined_call_operand.vmem [shape: f32[1,512], index: 7, kind: input, shape index: {}]   ;;  %s4334_s8 = inlined_call_operand.hbm [shape: f32[128,128], index: 8, kind: input, shape index: {}]   ;;  %s4335_s9 = inlined_call_operand.vmem [shape: f32[1,128], index: 9, kind: input, shape index: {}]   ;;  %s4336_s10 = inlined_call_operand.hbm [shape: f32[16,128], index: 10, kind: output, shape index: {}]  }
   0x1   :  { %16 = vsyncpa [#allocation11], 0 }
   0x2   :  { %17 = vsyncpa [#allocation9], 0 }
   0x3   :  { %18 = vsyncpa [#allocation15], 0 }
   0x4   :  { %19 = vsyncpa [#allocation18], 0 }
   0x5   :  { %20 = vsyncpa [#allocation8], 0  ;;  %s3281_s13 = smov [#allocation10]   ;;  %s3282_s15 = smov [#allocation14]  }
   0x6   :  { %s40_s14 = sshll.u32 %s3281_s13, 4  ;;  %s74_s16 = sshll.u32 %s3282_s15, 4  ;;  %s41_s14 = int_to_ptr.vmem [resolvable:$true] %s40_s14  ;;  %s75_s16 = int_to_ptr.vmem [resolvable:$true] %s74_s16 }
   0x7   :  { %s3125_s17 = scalar_lea.vmem %s41_s14, 1024  ;;  %p3130_p1 = scmp.lt.s32.totalorder %s41_s14, %s41_s14 }
   0x8   :  { %p3126_p0 = scmp.ne.s32.totalorder %s41_s14, %s3125_s17  ;;  %p3131_p2 = scmp.lt.s32.totalorder %s3125_s17, %s3125_s17 }
   0xa   :  { %p3132_p3 = por %p3131_p2, %p3130_p1 }
   0xc   :  { %p3133_p4 = pnand %p3132_p3, %p3126_p0 }
   0xe   :  { %3136 = shalt.err (!%p3133_p4)
}
   0xf   :  { %s3283_s18 = smov 64   ;;  %s3284_s19 = smov 4  }
  0x10   :  { %46 = dma.hbm_to_vmem [thread:$0]  %s4328_s2, 1024, %s41_s14, [#allocation11], %s3283_s18, %s3283_s18, %s3284_s19  }
  0x11   :  { %s3145_s22 = scalar_lea.vmem %s75_s16, 1024  ;;  %p3150_p6 = scmp.lt.s32.totalorder %s75_s16, %s75_s16 }
  0x12   :  { %p3146_p5 = scmp.ne.s32.totalorder %s75_s16, %s3145_s22  ;;  %p3151_p7 = scmp.lt.s32.totalorder %s3145_s22, %s3145_s22 }
  0x14   :  { %p3152_p8 = por %p3151_p7, %p3150_p6 }
  0x16   :  { %p3153_p9 = pnand %p3152_p8, %p3146_p5 }
  0x18   :  { %3156 = shalt.err (!%p3153_p9)
}
  0x19   :  { %s3285_s23 = smov 256   ;;  %s3286_s24 = smov 16  }
  0x1a   :  { %80 = dma.hbm_to_vmem [thread:$0]  %s4331_s5, 1024, %s75_s16, [#allocation15], %s3285_s23, %s3285_s23, %s3286_s24  }
  0x1b   :  { %s3287_s27 = smov [#allocation6]   ;;  %s3288_s29 = smov [#allocation12]  }
  0x1c   :  { %s28_s28 = sshll.u32 %s3287_s27, 4  ;;  %s52_s2 = sshll.u32 %s3288_s29, 4  ;;  %s29_s28 = int_to_ptr.vmem [resolvable:$true] %s28_s28  ;;  %s53_s2 = int_to_ptr.vmem [resolvable:$true] %s52_s2 }
  0x1d   :  { %s3165_s30 = scalar_lea.vmem %s29_s28, 1024  ;;  %p3170_p11 = scmp.lt.s32.totalorder %s29_s28, %s29_s28 }
  0x1e   :  { %p3166_p10 = scmp.ne.s32.totalorder %s29_s28, %s3165_s30  ;;  %p3171_p12 = scmp.lt.s32.totalorder %s3165_s30, %s3165_s30 }
  0x20   :  { %p3172_p13 = por %p3171_p12, %p3170_p11 }
  0x22   :  { %p3173_p0 = pnand %p3172_p13, %p3166_p10 }
  0x24   :  { %3176 = shalt.err (!%p3173_p0)
}
  0x25   :  { %34 = dma.hbm_to_vmem [thread:$0]  %s4327_s1, 1024, %s29_s28, [#allocation7], %s3283_s18, %s3283_s18, %s3284_s19  }
  0x26   :  { %s3185_s5 = scalar_lea.vmem %s53_s2, 1024  ;;  %p3190_p2 = scmp.lt.s32.totalorder %s53_s2, %s53_s2 }
  0x27   :  { %p3186_p1 = scmp.ne.s32.totalorder %s53_s2, %s3185_s5  ;;  %p3191_p3 = scmp.lt.s32.totalorder %s3185_s5, %s3185_s5 }
  0x29   :  { %p3192_p4 = por %p3191_p3, %p3190_p2 }
  0x2b   :  { %p3193_p5 = pnand %p3192_p4, %p3186_p1 }
  0x2d   :  { %3196 = shalt.err (!%p3193_p5)
}
  0x2e   :  { %58 = dma.hbm_to_vmem [thread:$0]  %s4329_s3, 1024, %s53_s2, [#allocation11], %s3283_s18, %s3283_s18, %s3284_s19  }
  0x2f   :  { %s65_s17 = sshll.u32 %s4330_s4, 4  ;;  %s66_s17 = int_to_ptr.vmem [resolvable:$true] %s65_s17 }
  0x30   :  { %s3197_s1 = scalar_lea.vmem %s66_s17, 16  ;;  %p3202_p7 = scmp.lt.s32.totalorder %s66_s17, %s66_s17 }
  0x31   :  { %p3198_p6 = scmp.ne.s32.totalorder %s66_s17, %s3197_s1  ;;  %p3203_p8 = scmp.lt.s32.totalorder %s3197_s1, %s3197_s1 }
  0x33   :  { %p3204_p9 = por %p3203_p8, %p3202_p7 }
  0x35   :  { %p3205_p10 = pnand %p3204_p9, %p3198_p6 }
  0x37   :  { %3208 = shalt.err (!%p3205_p10)
}
  0x38   :  { %s3289_s20 = smov [#allocation13]   ;;  %s3290_s21 = smov [#allocation16]  }
  0x39   :  { %68 = dma.vmem_to_smem %s66_s17, 16, %s3289_s20, [#allocation9]  }
  0x3a   :  { %s86_s22 = sshll.u32 %s3290_s21, 4  ;;  %s3291_s25 = smov [#allocation17]   ;;  %s87_s22 = int_to_ptr.vmem [resolvable:$true] %s86_s22 }
  0x3b   :  { %s100_s26 = sshll.u32 %s3291_s25, 4  ;;  %s3217_s3 = scalar_lea.vmem %s87_s22, 4096  ;;  %s101_s26 = int_to_ptr.vmem [resolvable:$true] %s100_s26 }
  0x3c   :  { %p3218_p11 = scmp.ne.s32.totalorder %s87_s22, %s3217_s3  ;;  %p3222_p12 = scmp.lt.s32.totalorder %s87_s22, %s87_s22 }
  0x3d   :  { %p3223_p13 = scmp.lt.s32.totalorder %s3217_s3, %s3217_s3 }
  0x3f   :  { %p3224_p0 = por %p3223_p13, %p3222_p12 }
  0x41   :  { %p3225_p1 = pnand %p3224_p0, %p3218_p11 }
  0x43   :  { %3228 = shalt.err (!%p3225_p1)
}
  0x44   :  { %92 = dma.hbm_to_vmem [thread:$0]  %s4332_s6, 4096, %s87_s22, [#allocation15], %s3285_s23, %s3285_s23, %s3286_s24  }
  0x45   :  { %s3237_s19 = scalar_lea.vmem %s101_s26, 2048  ;;  %p3242_p3 = scmp.lt.s32.totalorder %s101_s26, %s101_s26 }
  0x46   :  { %p3238_p2 = scmp.ne.s32.totalorder %s101_s26, %s3237_s19  ;;  %p3243_p4 = scmp.lt.s32.totalorder %s3237_s19, %s3237_s19 }
  0x48   :  { %p3244_p5 = por %p3243_p4, %p3242_p3 }
  0x4a   :  { %p3245_p6 = pnand %p3244_p5, %p3238_p2 }
  0x4c   :  { %3248 = shalt.err (!%p3245_p6)
}
  0x4d   :  { %s3292_s27 = smov 128   ;;  %s3293_s28 = smov 8  }
  0x4e   :  { %106 = dma.hbm_to_vmem [thread:$0]  %s4334_s8, 2048, %s101_s26, [#allocation18], %s3292_s27, %s3292_s27, %s3293_s28  }
  0x4f   :  { %3269 = dma.done.wait [#allocation7], 1024  }
  0x50   :  { %3270 = vsyncadd [#allocation7], 4294966272 }
  0x51   :  { %3271 = dma.done.wait [#allocation11], 2048  }
  0x52   :  { %3272 = vsyncadd [#allocation11], 4294965248 }
  0x53   :  { %3273 = dma.done.wait [#allocation9], 16  }
  0x54   :  { %3274 = vsyncadd [#allocation9], 4294967280 }
  0x55   :  { %3275 = dma.done.wait [#allocation15], 5120  }
  0x56   :  { %3276 = vsyncadd [#allocation15], 4294962176 }
  0x57   :  { %3277 = dma.done.wait [#allocation18], 2048  }
  0x58   :  { %3278 = vsyncadd [#allocation18], 4294965248 }
  0x59   :  { %130 = sfence }
  0x5a   :  { %v2765_v0 = vld [vmem:[#allocation14 + $0x24] ss:$16 sps:$4 sm:$0xff]   ;;  %v2767_v1 = vld [vmem:[#allocation14 + $0x20] ss:$16 sps:$4 sm:$0xff]   ;;  %v4339_v2 = vmov 0   ;;  %s142_s6 = sld [smem:[#allocation13]] }
  0x5b   :  { %437 = vmatprep.mubr.bf16.mxu0 %v4339_v2  ;;  %507 = vmatprep.mubr.bf16.mxu1 %v4339_v2  ;;  %v2768_v3 = vld [vmem:[#allocation14 + $0x4] ss:$16 sps:$4 sm:$0xff]   ;;  %v2770_v4 = vld [vmem:[#allocation14] ss:$16 sps:$4 sm:$0xff]   ;;  %s2449_s8 = sld [smem:[#allocation13 + $0x1]]  ;;  %v2676_v11 = vld [vmem:[#allocation6 + $0x38] sm:$0xff]  }
  0x5c   :  { %417 = vmatprep.subr.bf16.mxu0 %v2765_v0  ;;  %2744 = vmatprep.subr.bf16.mxu1 %v2765_v0  ;;  %v3394_v5 = vld [vmem:[#allocation16 + $0xe4] ss:$16 sps:$4 sm:$0xff]   ;;  %s3396_s23 = sld [smem:[#allocation13 + $0x2]]  ;;  %v2683_v14 = vld [vmem:[#allocation10 + $0x38] sm:$0xff]   ;;  %v2604_v17 = vunpack.c.l.bf16 %v2676_v11  ;;  %v2605_v18 = vunpack.c.h.bf16 %v2676_v11  ;;  %vm380_vm0 = vcmask 261120   ;;  %v2670_v35 = vld [vmem:[#allocation6 + $0x8] sm:$0xff]  }
  0x5d   :  { %418 = vmatpush1.bf16.msra.mxu0 %v2767_v1  ;;  %2746 = vmatpush1.bf16.msra.mxu1 %v2767_v1  ;;  %v2575_v6 = vld [vmem:[#allocation6] sm:$0xff]   ;;  %v2690_v15 = vld [vmem:[#allocation12 + $0x38] sm:$0xff]   ;;  %v2636_v19 = vunpack.c.l.bf16 %v2683_v14  ;;  %v2637_v23 = vunpack.c.h.bf16 %v2683_v14  ;;  %v2677_v36 = vld [vmem:[#allocation10 + $0x8] sm:$0xff]   ;;  %v2580_v46 = vunpack.c.l.bf16 %v2670_v35  ;;  %v2581_v47 = vunpack.c.h.bf16 %v2670_v35  ;;  %s3297_s14 = smov [#allocation19]  }
  0x5e   :  { %419 = vmatprep.subr.bf16.mxu0 %v2768_v3  ;;  %2745 = vmatprep.subr.bf16.mxu1 %v2768_v3  ;;  %v2576_v7 = vunpack.c.l.bf16 %v2575_v6  ;;  %v2577_v8 = vunpack.c.h.bf16 %v2575_v6  ;;  %v2607_v9 = vld [vmem:[#allocation10] sm:$0xff]   ;;  %v2775_v20 = vld [vmem:[#allocation14 + $0x2c] ss:$16 sps:$4 sm:$0xff]   ;;  %v2668_v24 = vunpack.c.l.bf16 %v2690_v15  ;;  %v2669_v28 = vunpack.c.h.bf16 %v2690_v15  ;;  %v2773_v53 = vld [vmem:[#allocation14 + $0x28] ss:$16 sps:$4 sm:$0xff]   ;;  %s2433_s15 = sshll.u32 %s3297_s14, 4  ;;  %s2434_s15 = int_to_ptr.vmem [resolvable:$true] %s2433_s15 }
  0x5f   :  { %v2639_v10 = vld [vmem:[#allocation12] sm:$0xff]   ;;  %v2608_v12 = vunpack.c.l.bf16 %v2607_v9  ;;  %v2609_v13 = vunpack.c.h.bf16 %v2607_v9  ;;  %v2612_v48 = vunpack.c.l.bf16 %v2677_v36  ;;  %v2684_v49 = vld [vmem:[#allocation12 + $0x8] sm:$0xff]   ;;  %v2613_v55 = vunpack.c.h.bf16 %v2677_v36  ;;  %v2671_v56 = vld [vmem:[#allocation6 + $0x10] sm:$0xff]   ;;  %s3249_s16 = scalar_lea.vmem %s2434_s15, 256  ;;  %p3254_p8 = scmp.lt.s32.totalorder %s2434_s15, %s2434_s15 }
  0x60   :  { %v2640_v16 = vunpack.c.l.bf16 %v2639_v10  ;;  %v3398_v21 = vstv %s142_s6  ;;  %v2641_v22 = vunpack.c.h.bf16 %v2639_v10  ;;  %v3418_v54 = vld [vmem:[#allocation16 + $0xe0] ss:$16 sps:$4 sm:$0xff]   ;;  %v3420_v58 = vld [vmem:[#allocation16 + $0xc4] ss:$16 sps:$4 sm:$0xff]   ;;  %v2644_v1 = vunpack.c.l.bf16 %v2684_v49  ;;  %v2672_v15 = vld [vmem:[#allocation6 + $0x18] sm:$0xff]   ;;  %p3250_p7 = scmp.ne.s32.totalorder %s2434_s15, %s3249_s16  ;;  %p3255_p9 = scmp.lt.s32.totalorder %s3249_s16, %s3249_s16 }
  0x61   :  { %420 = vmatpush1.bf16.msra.mxu0 %v2770_v4  ;;  %2747 = vmatpush1.bf16.msra.mxu1 %v2770_v4  ;;  %v178_v25 = vmul.f32 %v2576_v7, %v3398_v21  ;;  %v179_v26 = vmul.f32 %v2577_v8, %v3398_v21  ;;  %v192_v27 = vmul.f32 %v2604_v17, %v3398_v21  ;;  %v3404_v29 = vstv %s2449_s8  ;;  %v2678_v62 = vld [vmem:[#allocation10 + $0x10] sm:$0xff]   ;;  %v2779_v7 = vld [vmem:[#allocation14 + $0xc] ss:$16 sps:$4 sm:$0xff]  }
  0x62   :  { %1004 = vmatprep.subr.bf16.mxu0 %v3394_v5  ;;  %v193_v30 = vmul.f32 %v2605_v18, %v3398_v21  ;;  %530 = vmatprep.subr.bf16.mxu1 %v2775_v20  ;;  %v227_v31 = vmul.f32 %v2608_v12, %v3404_v29  ;;  %v228_v32 = vmul.f32 %v2609_v13, %v3404_v29  ;;  %v3410_v33 = vstv %s3396_s23  ;;  %v2685_v4 = vld [vmem:[#allocation12 + $0x10] sm:$0xff]   ;;  %p3256_p10 = por %p3255_p9, %p3254_p8 }
  0x63   :  { %v241_v34 = vmul.f32 %v2636_v19, %v3404_v29  ;;  %v292_v37 = vmul.f32 %v2640_v16, %v3410_v33  ;;  %v293_v38 = vmul.f32 %v2641_v22, %v3410_v33  ;;  %v242_v39 = vmul.f32 %v2637_v23, %v3404_v29  ;;  %v3437_v16 = vld [vmem:[#allocation16 + $0xc0] ss:$16 sps:$4 sm:$0xff]   ;;  %v2679_v22 = vld [vmem:[#allocation10 + $0x18] sm:$0xff]  }
  0x64   :  { %v306_v40 = vmul.f32 %v2668_v24, %v3410_v33  ;;  %v243_v41 = vadd.f32 %v227_v31, %v178_v25  ;;  %v244_v42 = vadd.f32 %v228_v32, %v179_v26  ;;  %v307_v44 = vmul.f32 %v2669_v28, %v3410_v33  ;;  %v2777_v23 = vld [vmem:[#allocation14 + $0x8] ss:$16 sps:$4 sm:$0xff]   ;;  %v3442_v26 = vld [vmem:[#allocation16 + $0xa4] ss:$16 sps:$4 sm:$0xff]   ;;  %p3257_p11 = pnand %p3256_p10, %p3250_p7 }
  0x65   :  { %v257_v43 = vadd.f32 %v241_v34, %v192_v27  ;;  %v258_v45 = vadd.f32 %v242_v39, %v193_v30  ;;  %v180_v59 = vmul.f32 %v2580_v46, %v3398_v21  ;;  %v181_v60 = vmul.f32 %v2581_v47, %v3398_v21  ;;  %v3446_v30 = vld [vmem:[#allocation16 + $0xec] ss:$16 sps:$4 sm:$0xff]  }
  0x66   :  { %v308_v50 = vadd.f32 %v292_v37, %v243_v41  ;;  %v309_v51 = vadd.f32 %v293_v38, %v244_v42  ;;  %v229_v61 = vmul.f32 %v2612_v48, %v3404_v29  ;;  %v230_v0 = vmul.f32 %v2613_v55, %v3404_v29  ;;  %v3455_v41 = vld [vmem:[#allocation16 + $0xa0] ss:$16 sps:$4 sm:$0xff]  }
  0x67   :  { %v322_v52 = vadd.f32 %v306_v40, %v257_v43  ;;  %v323_v57 = vadd.f32 %v307_v44, %v258_v45  ;;  %v2645_v3 = vunpack.c.h.bf16 %v2684_v49  ;;  %v2584_v9 = vunpack.c.l.bf16 %v2671_v56  ;;  %v2686_v40 = vld [vmem:[#allocation12 + $0x18] sm:$0xff]  }
  0x68   :  { %v3425_v63 = vpack.c.bf16 %v309_v51, %v308_v50  ;;  %v245_v8 = vadd.f32 %v229_v61, %v180_v59  ;;  %v2585_v10 = vunpack.c.h.bf16 %v2671_v56  ;;  %v246_v11 = vadd.f32 %v230_v0, %v181_v60  ;;  %v3457_v44 = vld [vmem:[#allocation16 + $0xe8] ss:$16 sps:$4 sm:$0xff]   ;;  %v3460_v45 = vld [vmem:[#allocation16 + $0xcc] ss:$16 sps:$4 sm:$0xff]   ;;  %v3474_v59 = vld [vmem:[#allocation16 + $0x80] ss:$16 sps:$4 sm:$0xff]  }
  0x69   :  { %v3428_v6 = vpack.c.bf16 %v323_v57, %v322_v52  ;;  %v294_v12 = vmul.f32 %v2644_v1, %v3410_v33  ;;  %v295_v13 = vmul.f32 %v2645_v3, %v3410_v33  ;;  %v2616_v14 = vunpack.c.l.bf16 %v2678_v62  ;;  %v2673_v52 = vld [vmem:[#allocation6 + $0x20] sm:$0xff]   ;;  %v3478_v60 = vld [vmem:[#allocation16 + $0xc8] ss:$16 sps:$4 sm:$0xff]  }
  0x6a   :  { %2459 = vmatmul.mubr.msk.bf16.vlgmr.msra.gmra.mxu0 %vm380_vm0, %v3425_v63  ;;  %v182_v17 = vmul.f32 %v2584_v9, %v3398_v21  ;;  %v183_v18 = vmul.f32 %v2585_v10, %v3398_v21  ;;  %v2617_v19 = vunpack.c.h.bf16 %v2678_v62  ;;  %v2648_v20 = vunpack.c.l.bf16 %v2685_v4  ;;  %v3469_v57 = vld [vmem:[#allocation16 + $0x84] ss:$16 sps:$4 sm:$0xff]  }
  0x6b   :  { %2466 = vmatmul.mubr.msk.bf16.vlgmr.msra.gmra.mxu1 %vm380_vm0, %v3428_v6  ;;  %1005 = vmatpush1.bf16.msra.mxu0 %v3418_v54  ;;  %v310_v24 = vadd.f32 %v294_v12, %v245_v8  ;;  %v311_v25 = vadd.f32 %v295_v13, %v246_v11  ;;  %v231_v27 = vmul.f32 %v2616_v14, %v3404_v29  ;;  %v2649_v28 = vunpack.c.h.bf16 %v2685_v4  ;;  %v3480_v62 = vld [vmem:[#allocation16 + $0x64] ss:$16 sps:$4 sm:$0xff]   ;;  %v3492_v12 = vld [vmem:[#allocation16 + $0xa8] ss:$16 sps:$4 sm:$0xff]   ;;  %v3494_v13 = vld [vmem:[#allocation16 + $0x60] ss:$16 sps:$4 sm:$0xff]  }
  0x6c   :  { %531 = vmatpush1.bf16.msra.mxu1 %v2773_v53  ;;  %1006 = vmatprep.subr.bf16.mxu0 %v3420_v58  ;;  %v232_v31 = vmul.f32 %v2617_v19, %v3404_v29  ;;  %v296_v32 = vmul.f32 %v2648_v20, %v3410_v33  ;;  %v2588_v34 = vunpack.c.l.bf16 %v2672_v15  ;;  %v2589_v35 = vunpack.c.h.bf16 %v2672_v15  ;;  %v2680_v53 = vld [vmem:[#allocation10 + $0x20] sm:$0xff]  }
  0x6d   :  { %532 = vmatprep.subr.bf16.mxu1 %v2779_v7  ;;  %447 = vmatprep.mubr.bf16.mxu0 %v4339_v2  ;;  %v3451_v36 = vpack.c.bf16 %v311_v25, %v310_v24  ;;  %v247_v37 = vadd.f32 %v231_v27, %v182_v17  ;;  %v297_v38 = vmul.f32 %v2649_v28, %v3410_v33  ;;  %v2620_v39 = vunpack.c.l.bf16 %v2679_v22  ;;  %v3486_v7 = vld [vmem:[#allocation16 + $0xac] ss:$16 sps:$4 sm:$0xff]   ;;  %v2687_v11 = vld [vmem:[#allocation12 + $0x20] sm:$0xff]  }
  0x6e   :  { %550 = vmatprep.mubr.bf16.mxu1 %v4339_v2  ;;  %v248_v42 = vadd.f32 %v232_v31, %v183_v18  ;;  %v2621_v43 = vunpack.c.h.bf16 %v2679_v22  ;;  %v184_v46 = vmul.f32 %v2588_v34, %v3398_v21  ;;  %v185_v48 = vmul.f32 %v2589_v35, %v3398_v21  ;;  %v3500_v17 = vld [vmem:[#allocation16 + $0x8c] ss:$16 sps:$4 sm:$0xff]   ;;  %v3507_v27 = vld [vmem:[#allocation16 + $0x44] ss:$16 sps:$4 sm:$0xff]   ;;  %v3517_v34 = vld [vmem:[#allocation16 + $0x88] ss:$16 sps:$4 sm:$0xff]  }
  0x6f   :  { %1007 = vmatpush1.bf16.msra.mxu0 %v3437_v16  ;;  %v233_v47 = vmul.f32 %v2620_v39, %v3404_v29  ;;  %v2652_v50 = vunpack.c.l.bf16 %v2686_v40  ;;  %v2653_v51 = vunpack.c.h.bf16 %v2686_v40  ;;  %v312_v55 = vadd.f32 %v296_v32, %v247_v37  ;;  %v2674_v22 = vld [vmem:[#allocation6 + $0x28] sm:$0xff]   ;;  %v781_v31 = vld [vmem:[%s4326_s0] sm:$0xff] }
  0x70   :  { %533 = vmatpush1.bf16.msra.mxu1 %v2777_v23  ;;  %1008 = vmatprep.subr.bf16.mxu0 %v3442_v26  ;;  %v234_v49 = vmul.f32 %v2621_v43, %v3404_v29  ;;  %v313_v56 = vadd.f32 %v297_v38, %v248_v42  ;;  %v2592_v0 = vunpack.c.l.bf16 %v2673_v52  ;;  %v2624_v1 = vunpack.c.l.bf16 %v2680_v53  ;;  %v2681_v28 = vld [vmem:[#allocation10 + $0x28] sm:$0xff]   ;;  %v3524_v38 = vld [vmem:[#allocation16 + $0x40] ss:$16 sps:$4 sm:$0xff]  }
  0x71   :  { %1047 = vmatprep.subr.bf16.mxu1 %v3446_v30  ;;  %v249_v61 = vadd.f32 %v233_v47, %v184_v46  ;;  %v298_v3 = vmul.f32 %v2652_v50, %v3410_v33  ;;  %v299_v4 = vmul.f32 %v2653_v51, %v3410_v33  ;;  %v2593_v9 = vunpack.c.h.bf16 %v2673_v52  ;;  %v3526_v42 = vld [vmem:[#allocation16 + $0x6c] ss:$16 sps:$4 sm:$0xff]   ;;  %v3537_v52 = vld [vmem:[#allocation16 + $0x68] ss:$16 sps:$4 sm:$0xff]  }
  0x72   :  { %2460 = vmatmul.mubr.msk.bf16.gmra.mxu0 %vm380_vm0, %v3451_v36  ;;  %v3488_v8 = vpack.c.bf16 %v313_v56, %v312_v55  ;;  %v2625_v10 = vunpack.c.h.bf16 %v2680_v53  ;;  %v186_v14 = vmul.f32 %v2592_v0, %v3398_v21  ;;  %v235_v15 = vmul.f32 %v2624_v1, %v3404_v29  ;;  %v782_v50 = vld [vmem:[%s4326_s0 + $0x8] sm:$0xff]  ;;  %v3543_v1 = vld [vmem:[#allocation16 + $0x20] ss:$16 sps:$4 sm:$0xff]  }
  0x73   :  { %2467 = vmatmul.mubr.msk.bf16.vlgmr.msra.gmra.mxu1 %vm380_vm0, %v3425_v63  ;;  %1009 = vmatpush1.bf16.msra.mxu0 %v3455_v41  ;;  %v250_v63 = vadd.f32 %v234_v49, %v185_v48  ;;  %v314_v18 = vadd.f32 %v298_v3, %v249_v61  ;;  %v2656_v20 = vunpack.c.l.bf16 %v2687_v11  ;;  %v187_v23 = vmul.f32 %v2593_v9, %v3398_v21  ;;  %v2688_v48 = vld [vmem:[#allocation12 + $0x28] sm:$0xff]   ;;  %v3530_v49 = vld [vmem:[#allocation16 + $0x24] ss:$16 sps:$4 sm:$0xff]  }
  0x74   :  { %1048 = vmatpush1.bf16.msra.mxu1 %v3457_v44  ;;  %457 = vmatprep.mubr.bf16.mxu0 %v4339_v2  ;;  %v236_v24 = vmul.f32 %v2625_v10, %v3404_v29  ;;  %v2657_v25 = vunpack.c.h.bf16 %v2687_v11  ;;  %v251_v32 = vadd.f32 %v235_v15, %v186_v14  ;;  %v2596_v35 = vunpack.c.l.bf16 %v2674_v22  ;;  %v3545_v3 = vld [vmem:[#allocation16 + $0x4c] ss:$16 sps:$4 sm:$0xff]   ;;  %v2682_v14 = vld [vmem:[#allocation10 + $0x30] sm:$0xff]  }
  0x75   :  { %560 = vmatprep.mubr.bf16.mxu1 %v4339_v2  ;;  %1049 = vmatprep.subr.bf16.mxu1 %v3460_v45  ;;  %v315_v19 = vadd.f32 %v299_v4, %v250_v63  ;;  %v2597_v39 = vunpack.c.h.bf16 %v2674_v22  ;;  %v2628_v40 = vunpack.c.l.bf16 %v2681_v28  ;;  %v2629_v47 = vunpack.c.h.bf16 %v2681_v28  ;;  %v2675_v63 = vld [vmem:[#allocation6 + $0x30] sm:$0xff]  }
  0x76   :  { %1010 = vmatprep.subr.bf16.mxu0 %v3469_v57  ;;  %v252_v43 = vadd.f32 %v236_v24, %v187_v23  ;;  %v301_v46 = vmul.f32 %v2657_v25, %v3410_v33  ;;  %vm783_vm1 = vcmp.ne.s32.totalorder %v781_v31, 50  ;;  %v188_v51 = vmul.f32 %v2596_v35, %v3398_v21  ;;  %v3552_v15 = vld [vmem:[#allocation16 + $0x4] ss:$16 sps:$4 sm:$0xff]   ;;  %v3566_v28 = vld [vmem:[#allocation16] ss:$16 sps:$4 sm:$0xff]  }
  0x77   :  { %1011 = vmatpush1.bf16.msra.mxu0 %v3474_v59  ;;  %v3519_v37 = vpack.c.bf16 %v315_v19, %v314_v18  ;;  %v4337_v53 = vmov 0.0   ;;  %vm789_vm2 = vcmask 64512   ;;  %v237_v61 = vmul.f32 %v2628_v40, %v3404_v29  ;;  %v3569_v31 = vld [vmem:[#allocation16 + $0x2c] ss:$16 sps:$4 sm:$0xff]   ;;  %v2689_v40 = vld [vmem:[#allocation12 + $0x30] sm:$0xff]  }
  0x78   :  { %1050 = vmatpush1.bf16.msra.mxu1 %v3478_v60  ;;  %1012 = vmatprep.subr.bf16.mxu0 %v3480_v62  ;;  %v2475_v55 = vsel %vm783_vm1, 1.0, %v4337_v53  ;;  %v2660_v0 = vunpack.c.l.bf16 %v2688_v48  ;;  %vm784_vm3 = vcmp.ne.s32.totalorder %v782_v50, 50  ;;  %v317_v4 = vadd.f32 %v301_v46, %v252_v43  ;;  %v3575_v46 = vld [vmem:[#allocation16 + $0x28] ss:$16 sps:$4 sm:$0xff]  }
  0x79   :  { %1051 = vmatprep.subr.bf16.mxu1 %v3486_v7  ;;  %v189_v9 = vmul.f32 %v2597_v39, %v3398_v21  ;;  %v238_v10 = vmul.f32 %v2629_v47, %v3404_v29  ;;  %v2661_v11 = vunpack.c.h.bf16 %v2688_v48  ;;  %v790_v18 = vsel %vm789_vm2, %v2475_v55, 0.0  ;;  %v3581_v55 = vld [vmem:[#allocation16 + $0xc] ss:$16 sps:$4 sm:$0xff]  }
  0x7a   :  { %2461 = vmatmul.mubr.msk.bf16.gmra.mxu0 %vm380_vm0, %v3488_v8  ;;  %v2600_v19 = vunpack.c.l.bf16 %v2675_v63  ;;  %v2476_v22 = vsel %vm784_vm3, 1.0, %v4337_v53  ;;  %v253_v23 = vadd.f32 %v237_v61, %v188_v51  ;;  %v302_v24 = vmul.f32 %v2660_v0, %v3410_v33  ;;  %791 = vadd.xlane.f32.xlu0 %v790_v18 }
  0x7b   :  { %2468 = vmatmul.mubr.msk.bf16.gmra.mxu1 %vm380_vm0, %v3451_v36  ;;  %467 = vmatprep.mubr.bf16.mxu0 %v4339_v2  ;;  %v300_v36 = vmul.f32 %v2656_v20, %v3410_v33  ;;  %v3560_v20 = vld [vmem:[#allocation16 + $0x48] ss:$16 sps:$4 sm:$0xff]   ;;  %v2632_v25 = vunpack.c.l.bf16 %v2682_v14  ;;  %v254_v35 = vadd.f32 %v238_v10, %v189_v9  ;;  %v2633_v39 = vunpack.c.h.bf16 %v2682_v14 }
  0x7c   :  { %570 = vmatprep.mubr.bf16.mxu1 %v4339_v2  ;;  %1052 = vmatpush1.bf16.msra.mxu1 %v3492_v12  ;;  %v793_v43 = vsel %vm789_vm2, %v2476_v22, 0.0  ;;  %v318_v47 = vadd.f32 %v302_v24, %v253_v23  ;;  %v190_v48 = vmul.f32 %v2600_v19, %v3398_v21  ;;  %v2664_v51 = vunpack.c.l.bf16 %v2689_v40  ;;  %v631_v23 = vld [vmem:[%s4333_s7] sm:$0xf] }
  0x7d   :  { %1013 = vmatpush1.bf16.msra.mxu0 %v3494_v13  ;;  %1053 = vmatprep.subr.bf16.mxu1 %v3500_v17  ;;  %v316_v56 = vadd.f32 %v300_v36, %v251_v32  ;;  %v303_v36 = vmul.f32 %v2661_v11, %v3410_v33  ;;  %v239_v61 = vmul.f32 %v2632_v25, %v3404_v29 }
  0x7e   :  { %1014 = vmatprep.subr.bf16.mxu0 %v3507_v27  ;;  %v240_v0 = vmul.f32 %v2633_v39, %v3404_v29  ;;  %794 = vadd.xlane.f32.xlu0 %v793_v43 }
  0x7f   :  { %v328_v32 = vpack.c.bf16 %v317_v4, %v316_v56  ;;  %v319_v56 = vadd.f32 %v303_v36, %v254_v35  ;;  %v304_v4 = vmul.f32 %v2664_v51, %v3410_v33  ;;  %v255_v9 = vadd.f32 %v239_v61, %v190_v48 }
  0x80   :  { %1054 = vmatpush1.bf16.msra.mxu1 %v3517_v34 }
  0x81   :  { %1015 = vmatpush1.bf16.msra.mxu0 %v3524_v38  ;;  %1055 = vmatprep.subr.bf16.mxu1 %v3526_v42  ;;  %v329_v29 = vpack.c.bf16 %v319_v56, %v318_v47 }
  0x82   :  { %2462 = vmatmul.mubr.msk.bf16.gmra.mxu0 %vm380_vm0, %v3519_v37  ;;  %1016 = vmatprep.subr.bf16.mxu0 %v3530_v49 }
  0x83   :  { %2469 = vmatmul.mubr.msk.bf16.gmra.mxu1 %vm380_vm0, %v3488_v8  ;;  %477 = vmatprep.mubr.bf16.mxu0 %v4339_v2  ;;  %v2601_v8 = vunpack.c.h.bf16 %v2675_v63  ;;  %v2665_v63 = vunpack.c.h.bf16 %v2689_v40 }
  0x84   :  { %580 = vmatprep.mubr.bf16.mxu1 %v4339_v2  ;;  %1056 = vmatpush1.bf16.msra.mxu1 %v3537_v52 }
  0x85   :  { %1017 = vmatpush1.bf16.msra.mxu0 %v3543_v1  ;;  %1057 = vmatprep.subr.bf16.mxu1 %v3545_v3  ;;  %v191_v50 = vmul.f32 %v2601_v8, %v3398_v21  ;;  %v3591_v21 = vld [vmem:[#allocation16 + $0x8] ss:$16 sps:$4 sm:$0xff]   ;;  %v305_v11 = vmul.f32 %v2665_v63, %v3410_v33  ;;  %v3296_v33 = vmov 0.0|0.0  }
  0x86   :  { %1018 = vmatprep.subr.bf16.mxu0 %v3552_v15 }
  0x87   :  { %v256_v10 = vadd.f32 %v240_v0, %v191_v50 }
  0x88   :  { %1058 = vmatpush1.bf16.msra.mxu1 %v3560_v20 }
  0x89   :  { %1019 = vmatpush1.bf16.msra.mxu0 %v3566_v28  ;;  %1059 = vmatprep.subr.bf16.mxu1 %v3569_v31  ;;  %v321_v14 = vadd.f32 %v305_v11, %v256_v10 }
  0x8a   :  { %2463 = vmatmul.mubr.msk.bf16.gmra.mxu0 %vm380_vm0, %v328_v32  ;;  %1168 = vmatprep.subr.bf16.mxu0 %v3394_v5 }
  0x8b   :  { %2470 = vmatmul.mubr.msk.bf16.gmra.mxu1 %vm380_vm0, %v3519_v37  ;;  %487 = vmatprep.mubr.bf16.mxu0 %v4339_v2  ;;  %v320_v37 = vadd.f32 %v304_v4, %v255_v9 }
  0x8c   :  { %590 = vmatprep.mubr.bf16.mxu1 %v4339_v2  ;;  %1060 = vmatpush1.bf16.msra.mxu1 %v3575_v46 }
  0x8d   :  { %1061 = vmatprep.subr.bf16.mxu1 %v3581_v55  ;;  %v330_v18 = vpack.c.bf16 %v321_v14, %v320_v37 }
  0x90   :  { %1062 = vmatpush1.bf16.msra.mxu1 %v3591_v21 }
  0x91   :  { %1211 = vmatprep.subr.bf16.mxu1 %v3446_v30 }
  0x92   :  { %2464 = vmatmul.mubr.msk.bf16.gmra.mxu0 %vm380_vm0, %v329_v29 }
  0x93   :  { %2471 = vmatmul.mubr.msk.bf16.gmra.mxu1 %vm380_vm0, %v328_v32  ;;  %497 = vmatprep.mubr.bf16.mxu0 %v4339_v2 }
  0x94   :  { %600 = vmatprep.mubr.bf16.mxu1 %v4339_v2 }
  0x9a   :  { %2465 = vmatmul.mubr.msk.bf16.gmra.mxu0 %vm380_vm0, %v330_v18 }
  0x9b   :  { %2472 = vmatmul.mubr.msk.bf16.gmra.mxu1 %vm380_vm0, %v329_v29  ;;  %1036 = vmatprep.mubr.bf16.mxu0 %v4339_v2 }
  0x9c   :  { %610 = vmatprep.mubr.bf16.mxu1 %v4339_v2 }
  0xa2   :  { %1037 = vmatmul.mubr.bf16.vlgmr.msra.gmra.mxu0 %v3296_v33 }
  0xa3   :  { %2473 = vmatmul.mubr.msk.bf16.gmra.mxu1 %vm380_vm0, %v330_v18  ;;  %1169 = vmatpush1.bf16.msra.mxu0 %v3418_v54 }
  0xa4   :  { %620 = vmatprep.mubr.bf16.mxu1 %v4339_v2  ;;  %1170 = vmatprep.subr.bf16.mxu0 %v3420_v58 }
  0xa5   :  { %1200 = vmatprep.mubr.bf16.mxu0 %v4339_v2 }
  0xa7   :  { %1171 = vmatpush1.bf16.msra.mxu0 %v3437_v16 }
  0xa8   :  { %1172 = vmatprep.subr.bf16.mxu0 %v3442_v26 }
  0xab   :  { %2474 = vmatmul.mubr.msk.bf16.gmra.mxu1 %vm380_vm0, %v3428_v6  ;;  %1173 = vmatpush1.bf16.msra.mxu0 %v3455_v41  ;;  %v633_v6 = vlaneseq }
  0xac   :  { %1079 = vmatprep.mubr.bf16.mxu1 %v4339_v2  ;;  %1174 = vmatprep.subr.bf16.mxu0 %v3469_v57 }
  0xaf   :  { %1175 = vmatpush1.bf16.msra.mxu0 %v3474_v59 }
  0xb0   :  { %1176 = vmatprep.subr.bf16.mxu0 %v3480_v62 }
  0xb3   :  { %1080 = vmatmul.mubr.bf16.vlgmr.msra.gmra.mxu1 %v3296_v33  ;;  %1177 = vmatpush1.bf16.msra.mxu0 %v3494_v13 }
  0xb4   :  { %1212 = vmatpush1.bf16.msra.mxu1 %v3457_v44  ;;  %1178 = vmatprep.subr.bf16.mxu0 %v3507_v27 }
  0xb5   :  { %1213 = vmatprep.subr.bf16.mxu1 %v3460_v45  ;;  %1243 = vmatprep.mubr.bf16.mxu1 %v4339_v2 }
  0xb7   :  { %1179 = vmatpush1.bf16.msra.mxu0 %v3524_v38 }
  0xb8   :  { %1214 = vmatpush1.bf16.msra.mxu1 %v3478_v60  ;;  %1180 = vmatprep.subr.bf16.mxu0 %v3530_v49 }
  0xb9   :  { %1215 = vmatprep.subr.bf16.mxu1 %v3486_v7 }
  0xbb   :  { %1181 = vmatpush1.bf16.msra.mxu0 %v3543_v1 }
  0xbc   :  { %1216 = vmatpush1.bf16.msra.mxu1 %v3492_v12  ;;  %1182 = vmatprep.subr.bf16.mxu0 %v3552_v15 }
  0xbd   :  { %1217 = vmatprep.subr.bf16.mxu1 %v3500_v17 }
  0xbf   :  { %1183 = vmatpush1.bf16.msra.mxu0 %v3566_v28 }
  0xc0   :  { %1218 = vmatpush1.bf16.msra.mxu1 %v3517_v34  ;;  %1333 = vmatprep.subr.bf16.mxu0 %v3394_v5  ;;  %v634_v5 = vshrl.u32 %v633_v6, 7 }
  0xc1   :  { %1219 = vmatprep.subr.bf16.mxu1 %v3526_v42 }
  0xc2   :  { %v635_v19 = vsub.s32 0, %v634_v5  ;;  %v639_v22 = vsub.s32 1, %v634_v5  ;;  %v643_v10 = vsub.s32 2, %v634_v5  ;;  %v647_v18 = vsub.s32 3, %v634_v5 }
  0xc4   :  { %1220 = vmatpush1.bf16.msra.mxu1 %v3537_v52  ;;  %v3651_v8 = vrot.slane %v631_v23, %v635_v19  ;;  %v3653_v25 = vrot.slane %v631_v23, %v639_v22  ;;  %v3693_v22 = vrot.slane %v631_v23, %v643_v10 }
  0xc5   :  { %1221 = vmatprep.subr.bf16.mxu1 %v3545_v3 }
  0xc8   :  { %1222 = vmatpush1.bf16.msra.mxu1 %v3560_v20 }
  0xc9   :  { %1223 = vmatprep.subr.bf16.mxu1 %v3569_v31 }
  0xcc   :  { %1224 = vmatpush1.bf16.msra.mxu1 %v3575_v46 }
  0xcd   :  { %1225 = vmatprep.subr.bf16.mxu1 %v3581_v55 }
  0xd0   :  { %1226 = vmatpush1.bf16.msra.mxu1 %v3591_v21 }
  0xd1   :  { %1376 = vmatprep.subr.bf16.mxu1 %v3446_v30 }
 0x12a   :  { %v3649_v24 = vpop.f32.mrf.mxu0 }
 0x12b   :  { %v509_v32 = vpop.f32.mrf.mxu1 }
 0x12c   :  { %v3656_v35 = vadd.f32 %v3651_v8, %v509_v32  ;;  %v3658_v36 = vpop.f32.mrf.mxu0 }
 0x12d   :  { %v511_v39 = vpop.f32.mrf.mxu1 }
 0x12e   :  { %4341 = vst [vmem:[#allocation26_spill] sm:$0xff] %v3656_v35  ;;  %v3661_v40 = vadd.f32 %v3653_v25, %v511_v39  ;;  %v3663_v43 = vpop.f32.mrf.mxu0 }
 0x12f   :  { %v513_v47 = vpop.f32.mrf.mxu1 }
 0x130   :  { %4342 = vst [vmem:[#allocation27_spill] sm:$0xff] %v3661_v40  ;;  %v3666_v48 = vadd.f32 %v3651_v8, %v513_v47  ;;  %v3668_v50 = vpop.f32.mrf.mxu0 }
 0x131   :  { %v515_v51 = vpop.f32.mrf.mxu1 }
 0x132   :  { %4343 = vst [vmem:[#allocation28_spill] sm:$0xff] %v3666_v48  ;;  %v3671_v56 = vadd.f32 %v3653_v25, %v515_v51  ;;  %v449_v61 = vpop.f32.mrf.mxu0  ;;  %v3698_v51 = vrot.slane %v631_v23, %v647_v18 }
 0x133   :  { %v3674_v0 = vadd.f32 %v3651_v8, %v449_v61  ;;  %v3676_v63 = vpop.f32.mrf.mxu1 }
 0x134   :  { %4344 = vst [vmem:[#allocation29_spill] sm:$0xff] %v3671_v56  ;;  %v451_v4 = vpop.f32.mrf.mxu0 }
 0x135   :  { %v3679_v29 = vadd.f32 %v3653_v25, %v451_v4  ;;  %v3681_v9 = vpop.f32.mrf.mxu1 }
 0x136   :  { %v453_v11 = vpop.f32.mrf.mxu0 }
 0x137   :  { %v3684_v37 = vadd.f32 %v3651_v8, %v453_v11  ;;  %v3686_v14 = vpop.f32.mrf.mxu1 }
 0x138   :  { %v455_v33 = vpop.f32.mrf.mxu0 }
 0x139   :  { %v3689_v6 = vadd.f32 %v3653_v25, %v455_v33  ;;  %v3691_v19 = vpop.f32.mrf.mxu1 }
 0x13a   :  { %v459_v32 = vpop.f32.mrf.mxu0 }
 0x13b   :  { %v3696_v39 = vadd.f32 %v3651_v8, %v459_v32  ;;  %v562_v47 = vpop.f32.mrf.mxu1 }
 0x13c   :  { %v3701_v61 = vadd.f32 %v3693_v22, %v562_v47  ;;  %v461_v4 = vpop.f32.mrf.mxu0 }
 0x13d   :  { %4345 = vst [vmem:[#allocation30_spill] sm:$0xff] %v3696_v39  ;;  %v3704_v5 = vadd.f32 %v3653_v25, %v461_v4  ;;  %v564_v11 = vpop.f32.mrf.mxu1 }
 0x13e   :  { %v3707_v33 = vadd.f32 %v3698_v51, %v564_v11  ;;  %v463_v10 = vpop.f32.mrf.mxu0 }
 0x13f   :  { %4346 = vst [vmem:[#allocation31_spill] sm:$0xff] %v3704_v5  ;;  %v3710_v53 = vadd.f32 %v3651_v8, %v463_v10  ;;  %v566_v32 = vpop.f32.mrf.mxu1 }
 0x140   :  { %v3713_v2 = vadd.f32 %v3693_v22, %v566_v32  ;;  %v465_v23 = vpop.f32.mrf.mxu0 }
 0x141   :  { %4347 = vst [vmem:[#allocation32_spill] sm:$0xff] %v3710_v53  ;;  %v3716_v18 = vadd.f32 %v3653_v25, %v465_v23  ;;  %v568_v47 = vpop.f32.mrf.mxu1 }
 0x142   :  { %v3719_v4 = vadd.f32 %v3698_v51, %v568_v47  ;;  %v469_v56 = vpop.f32.mrf.mxu0 }
 0x143   :  { %4348 = vst [vmem:[#allocation33_spill] sm:$0xff] %v3716_v18  ;;  %v3722_v11 = vadd.f32 %v3651_v8, %v469_v56  ;;  %v572_v48 = vpop.f32.mrf.mxu1 }
 0x144   :  { %v3725_v10 = vadd.f32 %v3693_v22, %v572_v48  ;;  %v471_v40 = vpop.f32.mrf.mxu0 }
 0x145   :  { %4349 = vst [vmem:[#allocation34_spill] sm:$0xff] %v3722_v11  ;;  %v3728_v32 = vadd.f32 %v3653_v25, %v471_v40  ;;  %v574_v35 = vpop.f32.mrf.mxu1 }
 0x146   :  { %4350 = vst [vmem:[#allocation35_spill] sm:$0xff] %v3725_v10  ;;  %v3731_v23 = vadd.f32 %v3698_v51, %v574_v35  ;;  %v473_v18 = vpop.f32.mrf.mxu0 }
 0x147   :  { %4351 = vst [vmem:[#allocation36_spill] sm:$0xff] %v3728_v32  ;;  %v3734_v47 = vadd.f32 %v3651_v8, %v473_v18  ;;  %v576_v53 = vpop.f32.mrf.mxu1 }
 0x148   :  { %4352 = vst [vmem:[#allocation37_spill] sm:$0xff] %v3731_v23  ;;  %v3737_v56 = vadd.f32 %v3693_v22, %v576_v53  ;;  %v475_v11 = vpop.f32.mrf.mxu0 }
 0x149   :  { %4353 = vst [vmem:[#allocation38_spill] sm:$0xff] %v3734_v47  ;;  %v3740_v48 = vadd.f32 %v3653_v25, %v475_v11  ;;  %v578_v10 = vpop.f32.mrf.mxu1 }
 0x14a   :  { %4354 = vst [vmem:[#allocation39_spill] sm:$0xff] %v3737_v56  ;;  %v3743_v40 = vadd.f32 %v3698_v51, %v578_v10  ;;  %v479_v32 = vpop.f32.mrf.mxu0 }
 0x14b   :  { %4355 = vst [vmem:[#allocation40_spill] sm:$0xff] %v3740_v48  ;;  %v3746_v35 = vadd.f32 %v3651_v8, %v479_v32  ;;  %v582_v23 = vpop.f32.mrf.mxu1 }
 0x14c   :  { %4356 = vst [vmem:[#allocation41_spill] sm:$0xff] %v3743_v40  ;;  %v3749_v18 = vadd.f32 %v3693_v22, %v582_v23  ;;  %v481_v47 = vpop.f32.mrf.mxu0 }
 0x14d   :  { %4357 = vst [vmem:[#allocation42_spill] sm:$0xff] %v3746_v35  ;;  %v3752_v53 = vadd.f32 %v3653_v25, %v481_v47  ;;  %v584_v56 = vpop.f32.mrf.mxu1 }
 0x14e   :  { %4358 = vst [vmem:[#allocation43_spill] sm:$0xff] %v3749_v18  ;;  %v3755_v11 = vadd.f32 %v3698_v51, %v584_v56  ;;  %v483_v48 = vpop.f32.mrf.mxu0 }
 0x14f   :  { %4359 = vst [vmem:[#allocation44_spill] sm:$0xff] %v3752_v53  ;;  %v3758_v10 = vadd.f32 %v3651_v8, %v483_v48  ;;  %v586_v40 = vpop.f32.mrf.mxu1 }
 0x150   :  { %4360 = vst [vmem:[#allocation45_spill] sm:$0xff] %v3755_v11  ;;  %v3761_v32 = vadd.f32 %v3693_v22, %v586_v40  ;;  %v485_v35 = vpop.f32.mrf.mxu0 }
 0x151   :  { %4361 = vst [vmem:[#allocation46_spill] sm:$0xff] %v3758_v10  ;;  %v3764_v23 = vadd.f32 %v3653_v25, %v485_v35  ;;  %v588_v18 = vpop.f32.mrf.mxu1 }
 0x152   :  { %4362 = vst [vmem:[#allocation47_spill] sm:$0xff] %v3761_v32  ;;  %v3767_v47 = vadd.f32 %v3698_v51, %v588_v18  ;;  %v489_v53 = vpop.f32.mrf.mxu0 }
 0x153   :  { %4363 = vst [vmem:[#allocation48_spill] sm:$0xff] %v3764_v23  ;;  %v3770_v56 = vadd.f32 %v3651_v8, %v489_v53  ;;  %v592_v11 = vpop.f32.mrf.mxu1 }
 0x154   :  { %4364 = vst [vmem:[#allocation49_spill] sm:$0xff] %v3767_v47  ;;  %v3773_v48 = vadd.f32 %v3693_v22, %v592_v11  ;;  %v491_v10 = vpop.f32.mrf.mxu0 }
 0x155   :  { %4365 = vst [vmem:[#allocation50_spill] sm:$0xff] %v3770_v56  ;;  %v3776_v40 = vadd.f32 %v3653_v25, %v491_v10  ;;  %v594_v32 = vpop.f32.mrf.mxu1 }
 0x156   :  { %4366 = vst [vmem:[#allocation51_spill] sm:$0xff] %v3773_v48  ;;  %v3779_v35 = vadd.f32 %v3698_v51, %v594_v32  ;;  %v493_v23 = vpop.f32.mrf.mxu0 }
 0x157   :  { %4367 = vst [vmem:[#allocation52_spill] sm:$0xff] %v3776_v40  ;;  %v3782_v18 = vadd.f32 %v3651_v8, %v493_v23  ;;  %v596_v47 = vpop.f32.mrf.mxu1 }
 0x158   :  { %4368 = vst [vmem:[#allocation53_spill] sm:$0xff] %v3779_v35  ;;  %v3785_v53 = vadd.f32 %v3693_v22, %v596_v47  ;;  %v495_v56 = vpop.f32.mrf.mxu0 }
 0x159   :  { %4369 = vst [vmem:[#allocation54_spill] sm:$0xff] %v3782_v18  ;;  %v3788_v11 = vadd.f32 %v3653_v25, %v495_v56  ;;  %v598_v48 = vpop.f32.mrf.mxu1 }
 0x15a   :  { %4370 = vst [vmem:[#allocation55_spill] sm:$0xff] %v3785_v53  ;;  %v3791_v10 = vadd.f32 %v3698_v51, %v598_v48  ;;  %v499_v40 = vpop.f32.mrf.mxu0 }
 0x15b   :  { %4371 = vst [vmem:[#allocation56_spill] sm:$0xff] %v3788_v11  ;;  %v3794_v32 = vadd.f32 %v3651_v8, %v499_v40  ;;  %v602_v35 = vpop.f32.mrf.mxu1 }
 0x15c   :  { %4372 = vst [vmem:[#allocation57_spill] sm:$0xff] %v3791_v10  ;;  %v3797_v23 = vadd.f32 %v3693_v22, %v602_v35  ;;  %v501_v18 = vpop.f32.mrf.mxu0  ;;  %v653_v35 = vadd.f32 %v3651_v8, %v3649_v24  ;;  %v657_v24 = vadd.f32 %v3651_v8, %v3663_v43 }
 0x15d   :  { %4373 = vst [vmem:[#allocation58_spill] sm:$0xff] %v3794_v32  ;;  %v3800_v47 = vadd.f32 %v3653_v25, %v501_v18  ;;  %v604_v53 = vpop.f32.mrf.mxu1 }
 0x15e   :  { %4374 = vst [vmem:[#allocation59_spill] sm:$0xff] %v3797_v23  ;;  %v3803_v56 = vadd.f32 %v3698_v51, %v604_v53  ;;  %v503_v11 = vpop.f32.mrf.mxu0 }
 0x15f   :  { %4375 = vst [vmem:[#allocation60_spill] sm:$0xff] %v3800_v47  ;;  %v3806_v48 = vadd.f32 %v3651_v8, %v503_v11  ;;  %v606_v10 = vpop.f32.mrf.mxu1  ;;  %v654_v11 = vadd.f32 %v3653_v25, %v3658_v36 }
 0x160   :  { %4376 = vst [vmem:[#allocation61_spill] sm:$0xff] %v3803_v56  ;;  %v3809_v40 = vadd.f32 %v3693_v22, %v606_v10  ;;  %v505_v32 = vpop.f32.mrf.mxu0 }
 0x161   :  { %4377 = vst [vmem:[#allocation62_spill] sm:$0xff] %v3806_v48  ;;  %v3814_v23 = vadd.f32 %v3653_v25, %v505_v32  ;;  %v608_v18 = vpop.f32.mrf.mxu1 }
 0x162   :  { %4378 = vst [vmem:[#allocation63_spill] sm:$0xff] %v3809_v40  ;;  %v3817_v47 = vadd.f32 %v3698_v51, %v608_v18  ;;  %v1038_v53 = vpop.f32.mrf.mxu0 }
 0x163   :  { %4379 = vst [vmem:[#allocation64_spill] sm:$0xff] %v3814_v23  ;;  %v612_v48 = vpop.f32.mrf.mxu1  ;;  %v1090_v56 = vadd.f32 %v1038_v53, %v653_v35 }
 0x164   :  { %4380 = vst [vmem:[#allocation65_spill] sm:$0xff] %v3817_v47  ;;  %v3822_v10 = vadd.f32 %v3693_v22, %v612_v48  ;;  %v1040_v40 = vpop.f32.mrf.mxu0  ;;  %v658_v47 = vadd.f32 %v3653_v25, %v3668_v50 }
 0x165   :  { %v2509_v5 = vmul.f32 -1.442695, %v1090_v56  ;;  %v614_v32 = vpop.f32.mrf.mxu1  ;;  %v1091_v23 = vadd.f32 %v1040_v40, %v654_v11 }
 0x166   :  { %4381 = vst [vmem:[#allocation66_spill] sm:$0xff] %v3822_v10  ;;  %v3827_v39 = vadd.f32 %v3698_v51, %v614_v32  ;;  %v1042_v18 = vpop.f32.mrf.mxu0 }
 0x167   :  { %2825 = vpow2.f32 %v2509_v5  ;;  %v2511_v36 = vmul.f32 -1.442695, %v1091_v23  ;;  %v616_v35 = vpop.f32.mrf.mxu1  ;;  %v1094_v53 = vadd.f32 %v1042_v18, %v657_v24 }
 0x168   :  { %v3832_v48 = vadd.f32 %v3693_v22, %v616_v35  ;;  %v1044_v10 = vpop.f32.mrf.mxu0 }
 0x169   :  { %2827 = vpow2.f32 %v2511_v36  ;;  %v2510_v8 = vmul.f32 -1.442695, %v1094_v53  ;;  %v618_v43 = vpop.f32.mrf.mxu1  ;;  %v1095_v56 = vadd.f32 %v1044_v10, %v658_v47  ;;  %v655_v47 = vadd.f32 %v3693_v22, %v3676_v63 }
 0x16a   :  { %4382 = vst [vmem:[#allocation67_spill] sm:$0xff] %v3832_v48  ;;  %v3835_v40 = vadd.f32 %v3698_v51, %v618_v43  ;;  %v656_v53 = vadd.f32 %v3698_v51, %v3681_v9  ;;  %v4404_v48 = vld [vmem:[#allocation47_spill] sm:$0xff] }
 0x16b   :  { %2829 = vpow2.f32 %v2510_v8  ;;  %v2512_v11 = vmul.f32 -1.442695, %v1095_v56  ;;  %v622_v32 = vpop.f32.mrf.mxu1 }
 0x16c   :  { %v3838_v25 = vadd.f32 %v3693_v22, %v622_v32  ;;  %v659_v32 = vadd.f32 %v3693_v22, %v3686_v14 }
 0x16d   :  { %2831 = vpow2.f32 %v2512_v11  ;;  %v624_v50 = vpop.f32.mrf.mxu1 }
 0x16e   :  { %4383 = vst [vmem:[#allocation68_spill] sm:$0xff] %v3838_v25  ;;  %v3841_v5 = vadd.f32 %v3698_v51, %v624_v50 }
 0x16f   :  { %v626_v23 = vpop.f32.mrf.mxu1 }
 0x170   :  { %4384 = vst [vmem:[#allocation69_spill] sm:$0xff] %v3841_v5  ;;  %v3844_v24 = vadd.f32 %v3693_v22, %v626_v23 }
 0x171   :  { %v628_v18 = vpop.f32.mrf.mxu1 }
 0x172   :  { %4385 = vst [vmem:[#allocation70_spill] sm:$0xff] %v3844_v24  ;;  %v3849_v10 = vadd.f32 %v3698_v51, %v628_v18  ;;  %v660_v18 = vadd.f32 %v3698_v51, %v3691_v19 }
 0x173   :  { %v1081_v36 = vpop.f32.mrf.mxu1 }
 0x174   :  { %4386 = vst [vmem:[#allocation71_spill] sm:$0xff] %v3849_v10  ;;  %v2826_v35 = vpop.eup %2825  ;;  %v1092_v8 = vadd.f32 %v1081_v36, %v655_v47 }
 0x175   :  { %v1104_v43 = vadd.f32 1.0, %v2826_v35  ;;  %v1083_v56 = vpop.f32.mrf.mxu1 }
 0x176   :  { %v2828_v11 = vpop.eup %2827  ;;  %v1093_v50 = vadd.f32 %v1083_v56, %v656_v53 }
 0x177   :  { %2833 = vrcp.f32 %v1104_v43  ;;  %v1116_v23 = vadd.f32 1.0, %v2828_v11  ;;  %v1085_v24 = vpop.f32.mrf.mxu1 }
 0x178   :  { %v2830_v63 = vpop.eup %2829  ;;  %2835 = vtanh.f32 %v1092_v8  ;;  %v2513_v10 = vmul.f32 -1.442695, %v1093_v50  ;;  %v1096_v25 = vadd.f32 %v1085_v24, %v659_v32 }
 0x179   :  { %2837 = vrcp.f32 %v1116_v23  ;;  %v1105_v9 = vadd.f32 1.0, %v2830_v63  ;;  %v1087_v47 = vpop.f32.mrf.mxu1 }
 0x17a   :  { %v2832_v36 = vpop.eup %2831  ;;  %2839 = vpow2.f32 %v2513_v10  ;;  %v1097_v35 = vadd.f32 %v1087_v47, %v660_v18 }
 0x17b   :  { %2841 = vrcp.f32 %v1105_v9  ;;  %v1117_v5 = vadd.f32 1.0, %v2832_v36 }
 0x17c   :  { %2843 = vtanh.f32 %v1096_v25  ;;  %v2514_v14 = vmul.f32 -1.442695, %v1097_v35 }
 0x17d   :  { %2845 = vrcp.f32 %v1117_v5 }
 0x17e   :  { %2847 = vpow2.f32 %v2514_v14 }
 0x184   :  { %v2834_v22 = vpop.eup %2833 }
 0x185   :  { %v2836_v53 = vpop.eup %2835 }
 0x186   :  { %v2838_v43 = vpop.eup %2837  ;;  %v1138_v51 = vmul.f32 %v2836_v53, %v2834_v22  ;;  %v4387_v53 = vmov 0  }
 0x187   :  { %v2840_v56 = vpop.eup %2839  ;;  %v1136_v19 = vmul.f32 0.0, %v2838_v43 }
 0x188   :  { %v2842_v8 = vpop.eup %2841  ;;  %v1130_v24 = vadd.f32 1.0, %v2840_v56 }
 0x189   :  { %v2844_v11 = vpop.eup %2843  ;;  %v3857_v32 = vadd.f32 %v1138_v51, %v1136_v19 }
 0x18a   :  { %v2846_v50 = vpop.eup %2845  ;;  %v1139_v63 = vmul.f32 %v2844_v11, %v2842_v8  ;;  %2849 = vrcp.f32 %v1130_v24 }
 0x18b   :  { %v2848_v10 = vpop.eup %2847  ;;  %v1137_v23 = vmul.f32 0.0, %v2846_v50  ;;  %2851 = vtanh.f32 %v3857_v32 }
 0x18c   :  { %v1131_v25 = vadd.f32 1.0, %v2848_v10 }
 0x18d   :  { %v3860_v5 = vadd.f32 %v1139_v63, %v1137_v23 }
 0x18e   :  { %2853 = vrcp.f32 %v1131_v25 }
 0x18f   :  { %2855 = vtanh.f32 %v3860_v5 }
 0x197   :  { %v2850_v18 = vpop.eup %2849 }
 0x198   :  { %v2852_v9 = vpop.eup %2851 }
 0x199   :  { %v3863_v35 = vmul.f32 %v2852_v9, %v2850_v18 }
 0x19b   :  { %v2854_v47 = vpop.eup %2853 }
 0x19c   :  { %v2856_v36 = vpop.eup %2855 }
 0x19d   :  { %v3865_v14 = vmul.f32 %v2856_v36, %v2854_v47 }
 0x19f   :  { %v1167_v22 = vpack.c.bf16 %v3865_v14, %v3863_v35 }
 0x1a1   :  { %1201 = vmatmul.mubr.bf16.vlgmr.msra.gmra.mxu0 %v1167_v22  ;;  %1244 = vmatmul.mubr.bf16.vlgmr.msra.gmra.mxu1 %v1167_v22 }
 0x1a2   :  { %1334 = vmatpush1.bf16.msra.mxu0 %v3418_v54  ;;  %1377 = vmatpush1.bf16.msra.mxu1 %v3457_v44  ;;  %v3901_v54 = vld [vmem:[#allocation16 + $0xe4] ss:$16 sps:$4 sm:$0xff]  }
 0x1a3   :  { %1335 = vmatprep.subr.bf16.mxu0 %v3420_v58  ;;  %1378 = vmatprep.subr.bf16.mxu1 %v3460_v45 }
 0x1a4   :  { %1365 = vmatprep.mubr.bf16.mxu0 %v4387_v53  ;;  %1408 = vmatprep.mubr.bf16.mxu1 %v4387_v53 }
 0x1a6   :  { %1336 = vmatpush1.bf16.msra.mxu0 %v3437_v16  ;;  %1379 = vmatpush1.bf16.msra.mxu1 %v3478_v60 }
 0x1a7   :  { %1337 = vmatprep.subr.bf16.mxu0 %v3442_v26  ;;  %1380 = vmatprep.subr.bf16.mxu1 %v3486_v7 }
 0x1aa   :  { %1338 = vmatpush1.bf16.msra.mxu0 %v3455_v41  ;;  %1381 = vmatpush1.bf16.msra.mxu1 %v3492_v12 }
 0x1ab   :  { %1339 = vmatprep.subr.bf16.mxu0 %v3469_v57  ;;  %1382 = vmatprep.subr.bf16.mxu1 %v3500_v17 }
 0x1ae   :  { %1340 = vmatpush1.bf16.msra.mxu0 %v3474_v59  ;;  %1383 = vmatpush1.bf16.msra.mxu1 %v3517_v34 }
 0x1af   :  { %1341 = vmatprep.subr.bf16.mxu0 %v3480_v62  ;;  %1384 = vmatprep.subr.bf16.mxu1 %v3526_v42 }
 0x1b2   :  { %1342 = vmatpush1.bf16.msra.mxu0 %v3494_v13  ;;  %1385 = vmatpush1.bf16.msra.mxu1 %v3537_v52 }
 0x1b3   :  { %1343 = vmatprep.subr.bf16.mxu0 %v3507_v27  ;;  %1386 = vmatprep.subr.bf16.mxu1 %v3545_v3 }
 0x1b6   :  { %1344 = vmatpush1.bf16.msra.mxu0 %v3524_v38  ;;  %1387 = vmatpush1.bf16.msra.mxu1 %v3560_v20 }
 0x1b7   :  { %1345 = vmatprep.subr.bf16.mxu0 %v3530_v49  ;;  %1388 = vmatprep.subr.bf16.mxu1 %v3569_v31 }
 0x1ba   :  { %1346 = vmatpush1.bf16.msra.mxu0 %v3543_v1  ;;  %1389 = vmatpush1.bf16.msra.mxu1 %v3575_v46 }
 0x1bb   :  { %1347 = vmatprep.subr.bf16.mxu0 %v3552_v15  ;;  %1390 = vmatprep.subr.bf16.mxu1 %v3581_v55 }
 0x1be   :  { %1348 = vmatpush1.bf16.msra.mxu0 %v3566_v28  ;;  %1391 = vmatpush1.bf16.msra.mxu1 %v3591_v21 }
 0x1bf   :  { %1498 = vmatprep.subr.bf16.mxu0 %v3901_v54  ;;  %1541 = vmatprep.subr.bf16.mxu1 %v3446_v30 }
 0x261   :  { %v1202_v58 = vpop.f32.mrf.mxu0  ;;  %v1245_v26 = vpop.f32.mrf.mxu1 }
 0x262   :  { %v1254_v16 = vadd.f32 %v1202_v58, %v3674_v0 }
 0x263   :  { %v1204_v41 = vpop.f32.mrf.mxu0  ;;  %v1247_v60 = vpop.f32.mrf.mxu1 }
 0x264   :  { %v2517_v44 = vmul.f32 -1.442695, %v1254_v16  ;;  %v1255_v45 = vadd.f32 %v1204_v41, %v3679_v29  ;;  %v1257_v0 = vadd.f32 %v1247_v60, %v3707_v33  ;;  %v1256_v29 = vadd.f32 %v1245_v26, %v3701_v61 }
 0x265   :  { %v1206_v57 = vpop.f32.mrf.mxu0  ;;  %v1249_v30 = vpop.f32.mrf.mxu1 }
 0x266   :  { %2857 = vpow2.f32 %v2517_v44  ;;  %v2519_v59 = vmul.f32 -1.442695, %v1255_v45  ;;  %v1258_v62 = vadd.f32 %v1206_v57, %v3684_v37  ;;  %v2521_v56 = vmul.f32 -1.442695, %v1257_v0  ;;  %v3921_v57 = vpop.xlane.xlu0 %791 }
 0x267   :  { %v1208_v7 = vpop.f32.mrf.mxu0  ;;  %v1251_v43 = vpop.f32.mrf.mxu1  ;;  %v1260_v37 = vadd.f32 %v1249_v30, %v3713_v2  ;;  %vm1148_vm4 = vcmp.gt.f32.partialorder %v3921_v57, 0.0  ;;  %vm1313_vm5 = vcmp.gt.f32.partialorder %v3921_v57, 1.0  ;;  %vm1478_vm8 = vcmp.gt.f32.partialorder %v3921_v57, 2.0 }
 0x268   :  { %2859 = vpow2.f32 %v2519_v59  ;;  %v2518_v12 = vmul.f32 -1.442695, %v1258_v62  ;;  %v1259_v13 = vadd.f32 %v1208_v7, %v3689_v6  ;;  %v1261_v19 = vadd.f32 %v1251_v43, %v3719_v4 }
 0x269   :  { %v4388_v62 = vmov 0.0   ;;  %vm1643_vm10 = vcmp.gt.f32.partialorder %v3921_v57, 3.0  ;;  %vm1808_vm12 = vcmp.gt.f32.partialorder %v3921_v57, 4.0  ;;  %vm1973_vm14 = vcmp.gt.f32.partialorder %v3921_v57, 5.0 }
 0x26a   :  { %2861 = vpow2.f32 %v2518_v12  ;;  %v2520_v17 = vmul.f32 -1.442695, %v1259_v13  ;;  %v2522_v6 = vmul.f32 -1.442695, %v1261_v19  ;;  %v2515_v7 = vsel %vm1148_vm4, 1.0, %v4388_v62 }
 0x26b   :  { %v1154_v30 = vmul.f32 %v2515_v7, %v3863_v35  ;;  %v3942_v35 = vld [vmem:[#allocation16 + $0xe8] ss:$16 sps:$4 sm:$0xff]   ;;  %vm2138_vm0 = vcmp.gt.f32.partialorder %v3921_v57, 6.0  ;;  %vm2303_vm2 = vcmp.gt.f32.partialorder %v3921_v57, 7.0 }
 0x26c   :  { %2863 = vpow2.f32 %v2520_v17 }
 0x26d   :  { %2865 = vtanh.f32 %v1256_v29 }
 0x26e   :  { %2867 = vpow2.f32 %v2521_v56 }
 0x273   :  { %v2858_v51 = vpop.eup %2857 }
 0x274   :  { %v1268_v8 = vadd.f32 1.0, %v2858_v51 }
 0x275   :  { %v2860_v24 = vpop.eup %2859 }
 0x276   :  { %2869 = vrcp.f32 %v1268_v8  ;;  %v1280_v11 = vadd.f32 1.0, %v2860_v24 }
 0x277   :  { %v2862_v50 = vpop.eup %2861  ;;  %2871 = vtanh.f32 %v1260_v37 }
 0x278   :  { %2873 = vrcp.f32 %v1280_v11  ;;  %v1269_v33 = vadd.f32 1.0, %v2862_v50  ;;  %v3945_v11 = vld [vmem:[#allocation16 + $0xc4] ss:$16 sps:$4 sm:$0xff]   ;;  %v3948_v50 = vld [vmem:[#allocation16 + $0xcc] ss:$16 sps:$4 sm:$0xff]  }
 0x279   :  { %v2864_v10 = vpop.eup %2863  ;;  %2875 = vpow2.f32 %v2522_v6  ;;  %v3939_v6 = vld [vmem:[#allocation16 + $0xe0] ss:$16 sps:$4 sm:$0xff]  }
 0x27a   :  { %2877 = vrcp.f32 %v1269_v33  ;;  %v1281_v61 = vadd.f32 1.0, %v2864_v10  ;;  %v2866_v4 = vpop.eup %2865  ;;  %v3956_v33 = vld [vmem:[#allocation16 + $0xc8] ss:$16 sps:$4 sm:$0xff]   ;;  %v3959_v10 = vld [vmem:[#allocation16 + $0xa4] ss:$16 sps:$4 sm:$0xff]  }
 0x27b   :  { %v2868_v23 = vpop.eup %2867 }
 0x27c   :  { %2879 = vrcp.f32 %v1281_v61  ;;  %v1294_v9 = vadd.f32 1.0, %v2868_v23  ;;  %v3962_v61 = vld [vmem:[#allocation16 + $0xac] ss:$16 sps:$4 sm:$0xff]   ;;  %v3968_v23 = vld [vmem:[#allocation16 + $0xa8] ss:$16 sps:$4 sm:$0xff]  }
 0x27e   :  { %2881 = vrcp.f32 %v1294_v9  ;;  %v3985_v9 = vld [vmem:[#allocation16 + $0x60] ss:$16 sps:$4 sm:$0xff]  }
 0x283   :  { %v2870_v63 = vpop.eup %2869 }
 0x284   :  { %v2872_v2 = vpop.eup %2871  ;;  %v1302_v25 = vmul.f32 %v2870_v63, %v2866_v4  ;;  %v3965_v4 = vld [vmem:[#allocation16 + $0xa0] ss:$16 sps:$4 sm:$0xff]   ;;  %v3971_v63 = vld [vmem:[#allocation16 + $0x84] ss:$16 sps:$4 sm:$0xff]  }
 0x285   :  { %v2874_v18 = vpop.eup %2873 }
 0x286   :  { %v2876_v47 = vpop.eup %2875  ;;  %v1300_v36 = vmul.f32 %v2874_v18, %v3857_v32  ;;  %v3925_v32 = vpop.xlane.xlu0 %794  ;;  %v3981_v18 = vld [vmem:[#allocation16 + $0x64] ss:$16 sps:$4 sm:$0xff]  }
 0x287   :  { %v2878_v22 = vpop.eup %2877  ;;  %v1295_v41 = vadd.f32 1.0, %v2876_v47  ;;  %vm1149_vm6 = vcmp.gt.f32.partialorder %v3925_v32, 0.0  ;;  %vm1314_vm7 = vcmp.gt.f32.partialorder %v3925_v32, 1.0  ;;  %vm1479_vm9 = vcmp.gt.f32.partialorder %v3925_v32, 2.0 }
 0x288   :  { %v3914_v58 = vadd.f32 %v1302_v25, %v1300_v36  ;;  %v1303_v16 = vmul.f32 %v2878_v22, %v2872_v2  ;;  %v2516_v43 = vsel %vm1149_vm6, 1.0, %v4388_v62  ;;  %v2524_v29 = vsel %vm1314_vm7, 1.0, %v4388_v62  ;;  %v3974_v2 = vld [vmem:[#allocation16 + $0x8c] ss:$16 sps:$4 sm:$0xff]   ;;  %v3977_v25 = vld [vmem:[#allocation16 + $0x80] ss:$16 sps:$4 sm:$0xff]  }
 0x289   :  { %v2880_v26 = vpop.eup %2879  ;;  %v1155_v51 = vmul.f32 %v2516_v43, %v3865_v14  ;;  %v3953_v14 = vld [vmem:[#allocation16 + $0xc0] ss:$16 sps:$4 sm:$0xff]   ;;  %v4392_v36 = vld [vmem:[#allocation33_spill] sm:$0xff]  ;;  %vm1644_vm11 = vcmp.gt.f32.partialorder %v3925_v32, 3.0  ;;  %vm1809_vm13 = vcmp.gt.f32.partialorder %v3925_v32, 4.0  ;;  %vm1974_vm15 = vcmp.gt.f32.partialorder %v3925_v32, 5.0 }
 0x28a   :  { %v1301_v44 = vmul.f32 %v2880_v26, %v3860_v5  ;;  %2883 = vtanh.f32 %v3914_v58  ;;  %v2523_v5 = vsel %vm1313_vm5, 1.0, %v4388_v62  ;;  %vm2139_vm1 = vcmp.gt.f32.partialorder %v3925_v32, 6.0 }
 0x28b   :  { %2885 = vrcp.f32 %v1295_v41  ;;  %v2882_v59 = vpop.eup %2881  ;;  %v4393_v41 = vld [vmem:[#allocation37_spill] sm:$0xff]  ;;  %vm2304_vm3 = vcmp.gt.f32.partialorder %v3925_v32, 7.0 }
 0x28c   :  { %v3918_v45 = vadd.f32 %v1303_v16, %v1301_v44 }
 0x28e   :  { %2887 = vtanh.f32 %v3918_v45 }
 0x297   :  { %v2884_v60 = vpop.eup %2883 }
 0x298   :  { %v1308_v12 = vmul.f32 %v2884_v60, %v2882_v59  ;;  %v2886_v13 = vpop.eup %2885  ;;  %v4394_v60 = vld [vmem:[#allocation35_spill] sm:$0xff] }
 0x29a   :  { %v1319_v17 = vmul.f32 %v2523_v5, %v1308_v12 }
 0x29b   :  { %v2888_v0 = vpop.eup %2887 }
 0x29c   :  { %v1309_v56 = vmul.f32 %v2888_v0, %v2886_v13  ;;  %v3934_v19 = vadd.f32 %v1319_v17, %v1154_v30  ;;  %v4396_v17 = vld [vmem:[#allocation39_spill] sm:$0xff] }
 0x29e   :  { %v1320_v37 = vmul.f32 %v2524_v29, %v1309_v56  ;;  %v1332_v8 = vpack.c.bf16 %v1309_v56, %v1308_v12  ;;  %v4395_v12 = vld [vmem:[#allocation41_spill] sm:$0xff] }
 0x2a0   :  { %v3937_v24 = vadd.f32 %v1320_v37, %v1155_v51  ;;  %1366 = vmatmul.mubr.bf16.vlgmr.msra.gmra.mxu0 %v1332_v8  ;;  %1409 = vmatmul.mubr.bf16.vlgmr.msra.gmra.mxu1 %v1332_v8 }
 0x2a1   :  { %1499 = vmatpush1.bf16.msra.mxu0 %v3939_v6  ;;  %1542 = vmatpush1.bf16.msra.mxu1 %v3942_v35 }
 0x2a2   :  { %1500 = vmatprep.subr.bf16.mxu0 %v3945_v11  ;;  %1543 = vmatprep.subr.bf16.mxu1 %v3948_v50 }
 0x2a3   :  { %1530 = vmatprep.mubr.bf16.mxu0 %v4387_v53  ;;  %1573 = vmatprep.mubr.bf16.mxu1 %v4387_v53 }
 0x2a5   :  { %1501 = vmatpush1.bf16.msra.mxu0 %v3953_v14  ;;  %1544 = vmatpush1.bf16.msra.mxu1 %v3956_v33 }
 0x2a6   :  { %1502 = vmatprep.subr.bf16.mxu0 %v3959_v10  ;;  %1545 = vmatprep.subr.bf16.mxu1 %v3962_v61 }
 0x2a9   :  { %1503 = vmatpush1.bf16.msra.mxu0 %v3965_v4  ;;  %1546 = vmatpush1.bf16.msra.mxu1 %v3968_v23 }
 0x2aa   :  { %1504 = vmatprep.subr.bf16.mxu0 %v3971_v63  ;;  %1547 = vmatprep.subr.bf16.mxu1 %v3974_v2 }
 0x2ad   :  { %1505 = vmatpush1.bf16.msra.mxu0 %v3977_v25  ;;  %1548 = vmatpush1.bf16.msra.mxu1 %v3517_v34 }
 0x2ae   :  { %1506 = vmatprep.subr.bf16.mxu0 %v3981_v18  ;;  %1549 = vmatprep.subr.bf16.mxu1 %v3526_v42 }
 0x2b1   :  { %1507 = vmatpush1.bf16.msra.mxu0 %v3985_v9  ;;  %1550 = vmatpush1.bf16.msra.mxu1 %v3537_v52 }
 0x2b2   :  { %1508 = vmatprep.subr.bf16.mxu0 %v3507_v27  ;;  %1551 = vmatprep.subr.bf16.mxu1 %v3545_v3  ;;  %v4002_v27 = vld [vmem:[#allocation16 + $0xec] ss:$16 sps:$4 sm:$0xff]  }
 0x2b3   :  { %v4390_v3 = vld [vmem:[#allocation31_spill] sm:$0xff] }
 0x2b5   :  { %1509 = vmatpush1.bf16.msra.mxu0 %v3524_v38  ;;  %1552 = vmatpush1.bf16.msra.mxu1 %v3560_v20  ;;  %v4389_v38 = vld [vmem:[#allocation30_spill] sm:$0xff] }
 0x2b6   :  { %1510 = vmatprep.subr.bf16.mxu0 %v3530_v49  ;;  %1553 = vmatprep.subr.bf16.mxu1 %v3569_v31 }
 0x2b9   :  { %1511 = vmatpush1.bf16.msra.mxu0 %v3543_v1  ;;  %1554 = vmatpush1.bf16.msra.mxu1 %v3575_v46  ;;  %v4391_v46 = vld [vmem:[#allocation32_spill] sm:$0xff] }
 0x2ba   :  { %1512 = vmatprep.subr.bf16.mxu0 %v3552_v15  ;;  %1555 = vmatprep.subr.bf16.mxu1 %v3581_v55 }
 0x2bd   :  { %1513 = vmatpush1.bf16.msra.mxu0 %v3566_v28  ;;  %1556 = vmatpush1.bf16.msra.mxu1 %v3591_v21 }
 0x2be   :  { %1663 = vmatprep.subr.bf16.mxu0 %v3901_v54  ;;  %1706 = vmatprep.subr.bf16.mxu1 %v4002_v27 }
 0x360   :  { %v1367_v34 = vpop.f32.mrf.mxu0  ;;  %v1410_v49 = vpop.f32.mrf.mxu1 }
 0x361   :  { %v1419_v42 = vadd.f32 %v1367_v34, %v4389_v38  ;;  %v1421_v7 = vadd.f32 %v1410_v49, %v4394_v60 }
 0x362   :  { %v1369_v52 = vpop.f32.mrf.mxu0  ;;  %v1412_v28 = vpop.f32.mrf.mxu1 }
 0x363   :  { %v2525_v1 = vmul.f32 -1.442695, %v1419_v42  ;;  %v1420_v15 = vadd.f32 %v1369_v52, %v4390_v3  ;;  %v1422_v44 = vadd.f32 %v1412_v28, %v4393_v41  ;;  %v2531_v41 = vsel %vm1478_vm8, 1.0, %v4388_v62 }
 0x364   :  { %v1371_v20 = vpop.f32.mrf.mxu0  ;;  %v1414_v16 = vpop.f32.mrf.mxu1 }
 0x365   :  { %2889 = vpow2.f32 %v2525_v1  ;;  %v2527_v31 = vmul.f32 -1.442695, %v1420_v15  ;;  %v1423_v55 = vadd.f32 %v1371_v20, %v4391_v46  ;;  %v2529_v5 = vmul.f32 -1.442695, %v1422_v44 }
 0x366   :  { %v1373_v21 = vpop.f32.mrf.mxu0  ;;  %v1416_v59 = vpop.f32.mrf.mxu1  ;;  %v1425_v0 = vadd.f32 %v1414_v16, %v4396_v17 }
 0x367   :  { %2891 = vpow2.f32 %v2527_v31  ;;  %v2526_v47 = vmul.f32 -1.442695, %v1423_v55  ;;  %v1424_v22 = vadd.f32 %v1373_v21, %v4392_v36  ;;  %v1426_v13 = vadd.f32 %v1416_v59, %v4395_v12 }
 0x369   :  { %2893 = vpow2.f32 %v2526_v47  ;;  %v2528_v26 = vmul.f32 -1.442695, %v1424_v22  ;;  %v2530_v56 = vmul.f32 -1.442695, %v1426_v13 }
 0x36b   :  { %2895 = vpow2.f32 %v2528_v26 }
 0x36c   :  { %2897 = vtanh.f32 %v1421_v7 }
 0x36d   :  { %2899 = vpow2.f32 %v2529_v5 }
 0x372   :  { %v2890_v30 = vpop.eup %2889 }
 0x373   :  { %v1433_v43 = vadd.f32 1.0, %v2890_v30 }
 0x374   :  { %v2892_v29 = vpop.eup %2891 }
 0x375   :  { %2901 = vrcp.f32 %v1433_v43  ;;  %v1445_v51 = vadd.f32 1.0, %v2892_v29  ;;  %v4057_v43 = vld [vmem:[#allocation16 + $0x44] ss:$16 sps:$4 sm:$0xff]   ;;  %v4060_v29 = vld [vmem:[#allocation16 + $0x4c] ss:$16 sps:$4 sm:$0xff]  }
 0x376   :  { %v2894_v37 = vpop.eup %2893  ;;  %2903 = vtanh.f32 %v1425_v0  ;;  %v4054_v0 = vld [vmem:[#allocation16 + $0x68] ss:$16 sps:$4 sm:$0xff]  }
 0x377   :  { %2905 = vrcp.f32 %v1445_v51  ;;  %v1434_v8 = vadd.f32 1.0, %v2894_v37  ;;  %v4066_v51 = vld [vmem:[#allocation16 + $0x48] ss:$16 sps:$4 sm:$0xff]   ;;  %v4069_v37 = vld [vmem:[#allocation16 + $0x24] ss:$16 sps:$4 sm:$0xff]  }
 0x378   :  { %v2896_v34 = vpop.eup %2895  ;;  %2907 = vpow2.f32 %v2530_v56  ;;  %v4063_v56 = vld [vmem:[#allocation16 + $0x40] ss:$16 sps:$4 sm:$0xff]  }
 0x379   :  { %2909 = vrcp.f32 %v1434_v8  ;;  %v1446_v38 = vadd.f32 1.0, %v2896_v34  ;;  %v2898_v42 = vpop.eup %2897  ;;  %v4072_v8 = vld [vmem:[#allocation16 + $0x2c] ss:$16 sps:$4 sm:$0xff]   ;;  %v4075_v34 = vld [vmem:[#allocation16 + $0x20] ss:$16 sps:$4 sm:$0xff]  }
 0x37a   :  { %v2900_v49 = vpop.eup %2899 }
 0x37b   :  { %2911 = vrcp.f32 %v1446_v38  ;;  %v1459_v20 = vadd.f32 1.0, %v2900_v49  ;;  %v4078_v38 = vld [vmem:[#allocation16 + $0x28] ss:$16 sps:$4 sm:$0xff]   ;;  %v4084_v49 = vld [vmem:[#allocation16 + $0xc] ss:$16 sps:$4 sm:$0xff]  }
 0x37d   :  { %2913 = vrcp.f32 %v1459_v20 }
 0x382   :  { %v2902_v52 = vpop.eup %2901 }
 0x383   :  { %v2904_v1 = vpop.eup %2903  ;;  %v1467_v3 = vmul.f32 %v2902_v52, %v2898_v42  ;;  %v4081_v42 = vld [vmem:[#allocation16 + $0x4] ss:$16 sps:$4 sm:$0xff]   ;;  %v4087_v52 = vld [vmem:[#allocation16] ss:$16 sps:$4 sm:$0xff]  }
 0x384   :  { %v2906_v15 = vpop.eup %2905 }
 0x385   :  { %v2908_v31 = vpop.eup %2907  ;;  %v1465_v28 = vmul.f32 %v2906_v15, %v3914_v58  ;;  %v4397_v15 = vld [vmem:[#allocation34_spill] sm:$0xff] }
 0x386   :  { %v2910_v46 = vpop.eup %2909  ;;  %v1460_v36 = vadd.f32 1.0, %v2908_v31 }
 0x387   :  { %v4014_v55 = vadd.f32 %v1467_v3, %v1465_v28  ;;  %v1468_v21 = vmul.f32 %v2910_v46, %v2904_v1  ;;  %v4090_v1 = vld [vmem:[#allocation16 + $0x8] ss:$16 sps:$4 sm:$0xff]  }
 0x388   :  { %v2912_v47 = vpop.eup %2911 }
 0x389   :  { %v1466_v22 = vmul.f32 %v2912_v47, %v3918_v45  ;;  %2915 = vtanh.f32 %v4014_v55  ;;  %v2532_v45 = vsel %vm1479_vm9, 1.0, %v4388_v62 }
 0x38a   :  { %2917 = vrcp.f32 %v1460_v36  ;;  %v2914_v26 = vpop.eup %2913 }
 0x38b   :  { %v4018_v16 = vadd.f32 %v1468_v21, %v1466_v22  ;;  %v4398_v21 = vld [vmem:[#allocation36_spill] sm:$0xff] }
 0x38d   :  { %2919 = vtanh.f32 %v4018_v16 }
 0x396   :  { %v2916_v58 = vpop.eup %2915 }
 0x397   :  { %v1473_v44 = vmul.f32 %v2916_v58, %v2914_v26  ;;  %v2918_v59 = vpop.eup %2917  ;;  %v4399_v58 = vld [vmem:[#allocation38_spill] sm:$0xff] }
 0x399   :  { %v1484_v60 = vmul.f32 %v2531_v41, %v1473_v44 }
 0x39a   :  { %v2920_v7 = vpop.eup %2919 }
 0x39b   :  { %v1474_v5 = vmul.f32 %v2920_v7, %v2918_v59  ;;  %v4026_v12 = vadd.f32 %v1484_v60, %v3934_v19  ;;  %v4046_v19 = vld [vmem:[#allocation16 + $0x88] ss:$16 sps:$4 sm:$0xff]   ;;  %v4400_v60 = vld [vmem:[#allocation40_spill] sm:$0xff] }
 0x39d   :  { %v1485_v13 = vmul.f32 %v2532_v45, %v1474_v5  ;;  %v1497_v30 = vpack.c.bf16 %v1474_v5, %v1473_v44 }
 0x39f   :  { %v4029_v17 = vadd.f32 %v1485_v13, %v3937_v24  ;;  %1531 = vmatmul.mubr.bf16.vlgmr.msra.gmra.mxu0 %v1497_v30  ;;  %1574 = vmatmul.mubr.bf16.vlgmr.msra.gmra.mxu1 %v1497_v30  ;;  %v4050_v24 = vld [vmem:[#allocation16 + $0x6c] ss:$16 sps:$4 sm:$0xff]  }
 0x3a0   :  { %1664 = vmatpush1.bf16.msra.mxu0 %v3939_v6  ;;  %1707 = vmatpush1.bf16.msra.mxu1 %v3942_v35  ;;  %v4401_v13 = vld [vmem:[#allocation45_spill] sm:$0xff] }
 0x3a1   :  { %1665 = vmatprep.subr.bf16.mxu0 %v3945_v11  ;;  %1708 = vmatprep.subr.bf16.mxu1 %v3948_v50 }
 0x3a2   :  { %1695 = vmatprep.mubr.bf16.mxu0 %v4387_v53  ;;  %1738 = vmatprep.mubr.bf16.mxu1 %v4387_v53 }
 0x3a4   :  { %1666 = vmatpush1.bf16.msra.mxu0 %v3953_v14  ;;  %1709 = vmatpush1.bf16.msra.mxu1 %v3956_v33 }
 0x3a5   :  { %1667 = vmatprep.subr.bf16.mxu0 %v3959_v10  ;;  %1710 = vmatprep.subr.bf16.mxu1 %v3962_v61 }
 0x3a8   :  { %1668 = vmatpush1.bf16.msra.mxu0 %v3965_v4  ;;  %1711 = vmatpush1.bf16.msra.mxu1 %v3968_v23 }
 0x3a9   :  { %1669 = vmatprep.subr.bf16.mxu0 %v3971_v63  ;;  %1712 = vmatprep.subr.bf16.mxu1 %v3974_v2 }
 0x3ac   :  { %1670 = vmatpush1.bf16.msra.mxu0 %v3977_v25  ;;  %1713 = vmatpush1.bf16.msra.mxu1 %v4046_v19 }
 0x3ad   :  { %1671 = vmatprep.subr.bf16.mxu0 %v3981_v18  ;;  %1714 = vmatprep.subr.bf16.mxu1 %v4050_v24 }
 0x3b0   :  { %1672 = vmatpush1.bf16.msra.mxu0 %v3985_v9  ;;  %1715 = vmatpush1.bf16.msra.mxu1 %v4054_v0 }
 0x3b1   :  { %1673 = vmatprep.subr.bf16.mxu0 %v4057_v43  ;;  %1716 = vmatprep.subr.bf16.mxu1 %v4060_v29 }
 0x3b4   :  { %1674 = vmatpush1.bf16.msra.mxu0 %v4063_v56  ;;  %1717 = vmatpush1.bf16.msra.mxu1 %v4066_v51 }
 0x3b5   :  { %1675 = vmatprep.subr.bf16.mxu0 %v4069_v37  ;;  %1718 = vmatprep.subr.bf16.mxu1 %v4072_v8 }
 0x3b8   :  { %1676 = vmatpush1.bf16.msra.mxu0 %v4075_v34  ;;  %1719 = vmatpush1.bf16.msra.mxu1 %v4078_v38 }
 0x3b9   :  { %1677 = vmatprep.subr.bf16.mxu0 %v4081_v42  ;;  %1720 = vmatprep.subr.bf16.mxu1 %v4084_v49 }
 0x3bc   :  { %1678 = vmatpush1.bf16.msra.mxu0 %v4087_v52  ;;  %1721 = vmatpush1.bf16.msra.mxu1 %v4090_v1 }
 0x3bd   :  { %1828 = vmatprep.subr.bf16.mxu0 %v3901_v54  ;;  %1871 = vmatprep.subr.bf16.mxu1 %v4002_v27 }
 0x45f   :  { %v1532_v3 = vpop.f32.mrf.mxu0  ;;  %v1575_v31 = vpop.f32.mrf.mxu1 }
 0x460   :  { %v1584_v20 = vadd.f32 %v1532_v3, %v4397_v15  ;;  %v4402_v15 = vld [vmem:[#allocation43_spill] sm:$0xff] }
 0x461   :  { %v1534_v28 = vpop.f32.mrf.mxu0  ;;  %v1577_v26 = vpop.f32.mrf.mxu1 }
 0x462   :  { %v2533_v46 = vmul.f32 -1.442695, %v1584_v20  ;;  %v1585_v47 = vadd.f32 %v1534_v28, %v4398_v21  ;;  %v1587_v30 = vadd.f32 %v1577_v26, %v4401_v13  ;;  %v1586_v20 = vadd.f32 %v1575_v31, %v4402_v15 }
 0x463   :  { %v1536_v36 = vpop.f32.mrf.mxu0  ;;  %v1579_v45 = vpop.f32.mrf.mxu1 }
 0x464   :  { %2921 = vpow2.f32 %v2533_v46  ;;  %v2535_v22 = vmul.f32 -1.442695, %v1585_v47  ;;  %v1588_v41 = vadd.f32 %v1536_v36, %v4399_v58  ;;  %v2537_v28 = vmul.f32 -1.442695, %v1587_v30  ;;  %v4403_v46 = vld [vmem:[#allocation49_spill] sm:$0xff] }
 0x465   :  { %v1538_v44 = vpop.f32.mrf.mxu0  ;;  %v1581_v3 = vpop.f32.mrf.mxu1  ;;  %v1590_v36 = vadd.f32 %v1579_v45, %v4404_v48 }
 0x466   :  { %2923 = vpow2.f32 %v2535_v22  ;;  %v2534_v59 = vmul.f32 -1.442695, %v1588_v41  ;;  %v1589_v7 = vadd.f32 %v1538_v44, %v4400_v60  ;;  %v1591_v21 = vadd.f32 %v1581_v3, %v4403_v46 }
 0x468   :  { %2925 = vpow2.f32 %v2534_v59  ;;  %v2536_v5 = vmul.f32 -1.442695, %v1589_v7  ;;  %v2538_v41 = vmul.f32 -1.442695, %v1591_v21 }
 0x46a   :  { %2927 = vpow2.f32 %v2536_v5 }
 0x46b   :  { %2929 = vtanh.f32 %v1586_v20 }
 0x46c   :  { %2931 = vpow2.f32 %v2537_v28 }
 0x471   :  { %v2922_v47 = vpop.eup %2921 }
 0x472   :  { %v1598_v58 = vadd.f32 1.0, %v2922_v47 }
 0x473   :  { %v2924_v22 = vpop.eup %2923 }
 0x474   :  { %2933 = vrcp.f32 %v1598_v58  ;;  %v1610_v44 = vadd.f32 1.0, %v2924_v22 }
 0x475   :  { %v2926_v59 = vpop.eup %2925  ;;  %2935 = vtanh.f32 %v1590_v36 }
 0x476   :  { %2937 = vrcp.f32 %v1610_v44  ;;  %v1599_v26 = vadd.f32 1.0, %v2926_v59  ;;  %v2539_v44 = vsel %vm1643_vm10, 1.0, %v4388_v62 }
 0x477   :  { %v2928_v60 = vpop.eup %2927  ;;  %2939 = vpow2.f32 %v2538_v41 }
 0x478   :  { %2941 = vrcp.f32 %v1599_v26  ;;  %v1611_v31 = vadd.f32 1.0, %v2928_v60  ;;  %v2930_v7 = vpop.eup %2929 }
 0x479   :  { %v2932_v5 = vpop.eup %2931 }
 0x47a   :  { %2943 = vrcp.f32 %v1611_v31  ;;  %v1624_v3 = vadd.f32 1.0, %v2932_v5 }
 0x47c   :  { %2945 = vrcp.f32 %v1624_v3 }
 0x481   :  { %v2934_v13 = vpop.eup %2933 }
 0x482   :  { %v2936_v48 = vpop.eup %2935  ;;  %v1632_v45 = vmul.f32 %v2934_v13, %v2930_v7 }
 0x483   :  { %v2938_v30 = vpop.eup %2937 }
 0x484   :  { %v2940_v15 = vpop.eup %2939  ;;  %v1630_v20 = vmul.f32 %v2938_v30, %v4014_v55 }
 0x485   :  { %v2942_v28 = vpop.eup %2941  ;;  %v1625_v36 = vadd.f32 1.0, %v2940_v15 }
 0x486   :  { %v4104_v46 = vadd.f32 %v1632_v45, %v1630_v20  ;;  %v1633_v21 = vmul.f32 %v2942_v28, %v2936_v48  ;;  %v4406_v28 = vld [vmem:[#allocation44_spill] sm:$0xff] }
 0x487   :  { %v2944_v47 = vpop.eup %2943 }
 0x488   :  { %v1631_v58 = vmul.f32 %v2944_v47, %v4018_v16  ;;  %2947 = vtanh.f32 %v4104_v46  ;;  %v2540_v16 = vsel %vm1644_vm11, 1.0, %v4388_v62 }
 0x489   :  { %2949 = vrcp.f32 %v1625_v36  ;;  %v2946_v41 = vpop.eup %2945 }
 0x48a   :  { %v4108_v22 = vadd.f32 %v1633_v21, %v1631_v58 }
 0x48c   :  { %2951 = vtanh.f32 %v4108_v22 }
 0x495   :  { %v2948_v55 = vpop.eup %2947 }
 0x496   :  { %v1638_v59 = vmul.f32 %v2948_v55, %v2946_v41  ;;  %v2950_v26 = vpop.eup %2949  ;;  %v4407_v41 = vld [vmem:[#allocation46_spill] sm:$0xff] }
 0x498   :  { %v1649_v60 = vmul.f32 %v2539_v44, %v1638_v59 }
 0x499   :  { %v2952_v31 = vpop.eup %2951 }
 0x49a   :  { %v1639_v7 = vmul.f32 %v2952_v31, %v2950_v26  ;;  %v4116_v5 = vadd.f32 %v1649_v60, %v4026_v12  ;;  %v4408_v26 = vld [vmem:[#allocation48_spill] sm:$0xff] }
 0x49c   :  { %v1650_v13 = vmul.f32 %v2540_v16, %v1639_v7  ;;  %v1662_v48 = vpack.c.bf16 %v1639_v7, %v1638_v59  ;;  %v4409_v7 = vld [vmem:[#allocation53_spill] sm:$0xff] }
 0x49e   :  { %v4119_v45 = vadd.f32 %v1650_v13, %v4029_v17  ;;  %1696 = vmatmul.mubr.bf16.vlgmr.msra.gmra.mxu0 %v1662_v48  ;;  %1739 = vmatmul.mubr.bf16.vlgmr.msra.gmra.mxu1 %v1662_v48  ;;  %v4405_v17 = vld [vmem:[#allocation42_spill] sm:$0xff] }
 0x49f   :  { %1829 = vmatpush1.bf16.msra.mxu0 %v3939_v6  ;;  %1872 = vmatpush1.bf16.msra.mxu1 %v3942_v35 }
 0x4a0   :  { %1830 = vmatprep.subr.bf16.mxu0 %v3945_v11  ;;  %1873 = vmatprep.subr.bf16.mxu1 %v3948_v50 }
 0x4a1   :  { %1860 = vmatprep.mubr.bf16.mxu0 %v4387_v53  ;;  %1903 = vmatprep.mubr.bf16.mxu1 %v4387_v53 }
 0x4a3   :  { %1831 = vmatpush1.bf16.msra.mxu0 %v3953_v14  ;;  %1874 = vmatpush1.bf16.msra.mxu1 %v3956_v33 }
 0x4a4   :  { %1832 = vmatprep.subr.bf16.mxu0 %v3959_v10  ;;  %1875 = vmatprep.subr.bf16.mxu1 %v3962_v61 }
 0x4a7   :  { %1833 = vmatpush1.bf16.msra.mxu0 %v3965_v4  ;;  %1876 = vmatpush1.bf16.msra.mxu1 %v3968_v23 }
 0x4a8   :  { %1834 = vmatprep.subr.bf16.mxu0 %v3971_v63  ;;  %1877 = vmatprep.subr.bf16.mxu1 %v3974_v2 }
 0x4ab   :  { %1835 = vmatpush1.bf16.msra.mxu0 %v3977_v25  ;;  %1878 = vmatpush1.bf16.msra.mxu1 %v4046_v19 }
 0x4ac   :  { %1836 = vmatprep.subr.bf16.mxu0 %v3981_v18  ;;  %1879 = vmatprep.subr.bf16.mxu1 %v4050_v24 }
 0x4af   :  { %1837 = vmatpush1.bf16.msra.mxu0 %v3985_v9  ;;  %1880 = vmatpush1.bf16.msra.mxu1 %v4054_v0 }
 0x4b0   :  { %1838 = vmatprep.subr.bf16.mxu0 %v4057_v43  ;;  %1881 = vmatprep.subr.bf16.mxu1 %v4060_v29 }
 0x4b3   :  { %1839 = vmatpush1.bf16.msra.mxu0 %v4063_v56  ;;  %1882 = vmatpush1.bf16.msra.mxu1 %v4066_v51 }
 0x4b4   :  { %1840 = vmatprep.subr.bf16.mxu0 %v4069_v37  ;;  %1883 = vmatprep.subr.bf16.mxu1 %v4072_v8 }
 0x4b7   :  { %1841 = vmatpush1.bf16.msra.mxu0 %v4075_v34  ;;  %1884 = vmatpush1.bf16.msra.mxu1 %v4078_v38 }
 0x4b8   :  { %1842 = vmatprep.subr.bf16.mxu0 %v4081_v42  ;;  %1885 = vmatprep.subr.bf16.mxu1 %v4084_v49 }
 0x4bb   :  { %1843 = vmatpush1.bf16.msra.mxu0 %v4087_v52  ;;  %1886 = vmatpush1.bf16.msra.mxu1 %v4090_v1 }
 0x4bc   :  { %1993 = vmatprep.subr.bf16.mxu0 %v3901_v54  ;;  %2036 = vmatprep.subr.bf16.mxu1 %v4002_v27 }
 0x55e   :  { %v1697_v12 = vpop.f32.mrf.mxu0  ;;  %v1740_v3 = vpop.f32.mrf.mxu1 }
 0x55f   :  { %v1749_v30 = vadd.f32 %v1697_v12, %v4405_v17  ;;  %v4410_v12 = vld [vmem:[#allocation51_spill] sm:$0xff] }
 0x560   :  { %v1699_v15 = vpop.f32.mrf.mxu0  ;;  %v1742_v58 = vpop.f32.mrf.mxu1  ;;  %v1751_v17 = vadd.f32 %v1740_v3, %v4410_v12 }
 0x561   :  { %v2541_v20 = vmul.f32 -1.442695, %v1749_v30  ;;  %v1750_v21 = vadd.f32 %v1699_v15, %v4406_v28  ;;  %v1752_v13 = vadd.f32 %v1742_v58, %v4409_v7  ;;  %v4411_v15 = vld [vmem:[#allocation57_spill] sm:$0xff] }
 0x562   :  { %v1701_v47 = vpop.f32.mrf.mxu0  ;;  %v1744_v31 = vpop.f32.mrf.mxu1 }
 0x563   :  { %2953 = vpow2.f32 %v2541_v20  ;;  %v2543_v36 = vmul.f32 -1.442695, %v1750_v21  ;;  %v1753_v55 = vadd.f32 %v1701_v47, %v4407_v41  ;;  %v2545_v30 = vmul.f32 -1.442695, %v1752_v13  ;;  %v4412_v21 = vld [vmem:[#allocation55_spill] sm:$0xff] }
 0x564   :  { %v1703_v44 = vpop.f32.mrf.mxu0  ;;  %v1746_v48 = vpop.f32.mrf.mxu1  ;;  %v1755_v47 = vadd.f32 %v1744_v31, %v4412_v21 }
 0x565   :  { %2955 = vpow2.f32 %v2543_v36  ;;  %v2542_v59 = vmul.f32 -1.442695, %v1753_v55  ;;  %v1754_v60 = vadd.f32 %v1703_v44, %v4408_v26  ;;  %v1756_v20 = vadd.f32 %v1746_v48, %v4411_v15 }
 0x567   :  { %2957 = vpow2.f32 %v2542_v59  ;;  %v2544_v16 = vmul.f32 -1.442695, %v1754_v60  ;;  %v2546_v55 = vmul.f32 -1.442695, %v1756_v20 }
 0x569   :  { %2959 = vpow2.f32 %v2544_v16 }
 0x56a   :  { %2961 = vtanh.f32 %v1751_v17 }
 0x56b   :  { %2963 = vpow2.f32 %v2545_v30 }
 0x570   :  { %v2954_v28 = vpop.eup %2953 }
 0x571   :  { %v1763_v41 = vadd.f32 1.0, %v2954_v28 }
 0x572   :  { %v2956_v36 = vpop.eup %2955 }
 0x573   :  { %2965 = vrcp.f32 %v1763_v41  ;;  %v1775_v44 = vadd.f32 1.0, %v2956_v36 }
 0x574   :  { %v2958_v59 = vpop.eup %2957  ;;  %2967 = vtanh.f32 %v1755_v47 }
 0x575   :  { %2969 = vrcp.f32 %v1775_v44  ;;  %v1764_v58 = vadd.f32 1.0, %v2958_v59  ;;  %v2547_v44 = vsel %vm1808_vm12, 1.0, %v4388_v62 }
 0x576   :  { %v2960_v26 = vpop.eup %2959  ;;  %2971 = vpow2.f32 %v2546_v55 }
 0x577   :  { %2973 = vrcp.f32 %v1764_v58  ;;  %v1776_v3 = vadd.f32 1.0, %v2960_v26  ;;  %v2962_v60 = vpop.eup %2961 }
 0x578   :  { %v2964_v16 = vpop.eup %2963 }
 0x579   :  { %2975 = vrcp.f32 %v1776_v3  ;;  %v1789_v12 = vadd.f32 1.0, %v2964_v16 }
 0x57b   :  { %2977 = vrcp.f32 %v1789_v12 }
 0x580   :  { %v2966_v7 = vpop.eup %2965 }
 0x581   :  { %v2968_v31 = vpop.eup %2967  ;;  %v1797_v13 = vmul.f32 %v2966_v7, %v2962_v60 }
 0x582   :  { %v2970_v48 = vpop.eup %2969 }
 0x583   :  { %v2972_v17 = vpop.eup %2971  ;;  %v1795_v30 = vmul.f32 %v2970_v48, %v4104_v46 }
 0x584   :  { %v2974_v15 = vpop.eup %2973  ;;  %v1790_v47 = vadd.f32 1.0, %v2972_v17 }
 0x585   :  { %v4164_v20 = vadd.f32 %v1797_v13, %v1795_v30  ;;  %v1798_v28 = vmul.f32 %v2974_v15, %v2968_v31  ;;  %v4414_v15 = vld [vmem:[#allocation52_spill] sm:$0xff] }
 0x586   :  { %v2976_v21 = vpop.eup %2975 }
 0x587   :  { %v1796_v41 = vmul.f32 %v2976_v21, %v4108_v22  ;;  %2979 = vtanh.f32 %v4164_v20  ;;  %v2548_v22 = vsel %vm1809_vm13, 1.0, %v4388_v62 }
 0x588   :  { %2981 = vrcp.f32 %v1790_v47  ;;  %v2978_v55 = vpop.eup %2977 }
 0x589   :  { %v4168_v36 = vadd.f32 %v1798_v28, %v1796_v41 }
 0x58b   :  { %2983 = vtanh.f32 %v4168_v36 }
 0x594   :  { %v2980_v46 = vpop.eup %2979 }
 0x595   :  { %v1803_v59 = vmul.f32 %v2980_v46, %v2978_v55  ;;  %v2982_v58 = vpop.eup %2981  ;;  %v4415_v55 = vld [vmem:[#allocation54_spill] sm:$0xff] }
 0x597   :  { %v1814_v26 = vmul.f32 %v2547_v44, %v1803_v59 }
 0x598   :  { %v2984_v3 = vpop.eup %2983 }
 0x599   :  { %v1804_v60 = vmul.f32 %v2984_v3, %v2982_v58  ;;  %v4176_v16 = vadd.f32 %v1814_v26, %v4116_v5  ;;  %v4417_v3 = vld [vmem:[#allocation61_spill] sm:$0xff] }
 0x59b   :  { %v1815_v7 = vmul.f32 %v2548_v22, %v1804_v60  ;;  %v1827_v31 = vpack.c.bf16 %v1804_v60, %v1803_v59 }
 0x59d   :  { %v4179_v13 = vadd.f32 %v1815_v7, %v4119_v45  ;;  %1861 = vmatmul.mubr.bf16.vlgmr.msra.gmra.mxu0 %v1827_v31  ;;  %1904 = vmatmul.mubr.bf16.vlgmr.msra.gmra.mxu1 %v1827_v31  ;;  %v4413_v45 = vld [vmem:[#allocation50_spill] sm:$0xff]  ;;  %v4418_v7 = vld [vmem:[#allocation59_spill] sm:$0xff] }
 0x59e   :  { %1994 = vmatpush1.bf16.msra.mxu0 %v3939_v6  ;;  %2037 = vmatpush1.bf16.msra.mxu1 %v3942_v35 }
 0x59f   :  { %1995 = vmatprep.subr.bf16.mxu0 %v3945_v11  ;;  %2038 = vmatprep.subr.bf16.mxu1 %v3948_v50 }
 0x5a0   :  { %2025 = vmatprep.mubr.bf16.mxu0 %v4387_v53  ;;  %2068 = vmatprep.mubr.bf16.mxu1 %v4387_v53 }
 0x5a2   :  { %1996 = vmatpush1.bf16.msra.mxu0 %v3953_v14  ;;  %2039 = vmatpush1.bf16.msra.mxu1 %v3956_v33 }
 0x5a3   :  { %1997 = vmatprep.subr.bf16.mxu0 %v3959_v10  ;;  %2040 = vmatprep.subr.bf16.mxu1 %v3962_v61 }
 0x5a6   :  { %1998 = vmatpush1.bf16.msra.mxu0 %v3965_v4  ;;  %2041 = vmatpush1.bf16.msra.mxu1 %v3968_v23 }
 0x5a7   :  { %1999 = vmatprep.subr.bf16.mxu0 %v3971_v63  ;;  %2042 = vmatprep.subr.bf16.mxu1 %v3974_v2 }
 0x5aa   :  { %2000 = vmatpush1.bf16.msra.mxu0 %v3977_v25  ;;  %2043 = vmatpush1.bf16.msra.mxu1 %v4046_v19 }
 0x5ab   :  { %2001 = vmatprep.subr.bf16.mxu0 %v3981_v18  ;;  %2044 = vmatprep.subr.bf16.mxu1 %v4050_v24 }
 0x5ae   :  { %2002 = vmatpush1.bf16.msra.mxu0 %v3985_v9  ;;  %2045 = vmatpush1.bf16.msra.mxu1 %v4054_v0 }
 0x5af   :  { %2003 = vmatprep.subr.bf16.mxu0 %v4057_v43  ;;  %2046 = vmatprep.subr.bf16.mxu1 %v4060_v29 }
 0x5b2   :  { %2004 = vmatpush1.bf16.msra.mxu0 %v4063_v56  ;;  %2047 = vmatpush1.bf16.msra.mxu1 %v4066_v51 }
 0x5b3   :  { %2005 = vmatprep.subr.bf16.mxu0 %v4069_v37  ;;  %2048 = vmatprep.subr.bf16.mxu1 %v4072_v8 }
 0x5b6   :  { %2006 = vmatpush1.bf16.msra.mxu0 %v4075_v34  ;;  %2049 = vmatpush1.bf16.msra.mxu1 %v4078_v38 }
 0x5b7   :  { %2007 = vmatprep.subr.bf16.mxu0 %v4081_v42  ;;  %2050 = vmatprep.subr.bf16.mxu1 %v4084_v49 }
 0x5ba   :  { %2008 = vmatpush1.bf16.msra.mxu0 %v4087_v52  ;;  %2051 = vmatpush1.bf16.msra.mxu1 %v4090_v1 }
 0x5bb   :  { %2158 = vmatprep.subr.bf16.mxu0 %v3901_v54  ;;  %2201 = vmatprep.subr.bf16.mxu1 %v4002_v27  ;;  %v4416_v54 = vld [vmem:[#allocation56_spill] sm:$0xff] }
 0x65d   :  { %v1862_v5 = vpop.f32.mrf.mxu0  ;;  %v1905_v12 = vpop.f32.mrf.mxu1 }
 0x65e   :  { %v1914_v48 = vadd.f32 %v1862_v5, %v4413_v45  ;;  %v1916_v31 = vadd.f32 %v1905_v12, %v4418_v7  ;;  %v4419_v45 = vld [vmem:[#allocation65_spill] sm:$0xff] }
 0x65f   :  { %v1864_v17 = vpop.f32.mrf.mxu0  ;;  %v1907_v41 = vpop.f32.mrf.mxu1 }
 0x660   :  { %v2549_v30 = vmul.f32 -1.442695, %v1914_v48  ;;  %v1915_v28 = vadd.f32 %v1864_v17, %v4414_v15  ;;  %v1917_v22 = vadd.f32 %v1907_v41, %v4417_v3 }
 0x661   :  { %v1866_v21 = vpop.f32.mrf.mxu0  ;;  %v1909_v27 = vpop.f32.mrf.mxu1 }
 0x662   :  { %2985 = vpow2.f32 %v2549_v30  ;;  %v2551_v47 = vmul.f32 -1.442695, %v1915_v28  ;;  %v1918_v46 = vadd.f32 %v1866_v21, %v4415_v55  ;;  %v2553_v5 = vmul.f32 -1.442695, %v1917_v22  ;;  %v4420_v30 = vld [vmem:[#allocation63_spill] sm:$0xff] }
 0x663   :  { %v1868_v44 = vpop.f32.mrf.mxu0  ;;  %v1911_v60 = vpop.f32.mrf.mxu1  ;;  %v1920_v15 = vadd.f32 %v1909_v27, %v4420_v30 }
 0x664   :  { %2987 = vpow2.f32 %v2551_v47  ;;  %v2550_v59 = vmul.f32 -1.442695, %v1918_v46  ;;  %v1919_v58 = vadd.f32 %v1868_v44, %v4416_v54  ;;  %v1921_v48 = vadd.f32 %v1911_v60, %v4419_v45 }
 0x666   :  { %2989 = vpow2.f32 %v2550_v59  ;;  %v2552_v26 = vmul.f32 -1.442695, %v1919_v58  ;;  %v2554_v47 = vmul.f32 -1.442695, %v1921_v48 }
 0x668   :  { %2991 = vpow2.f32 %v2552_v26 }
 0x669   :  { %2993 = vtanh.f32 %v1916_v31 }
 0x66a   :  { %2995 = vpow2.f32 %v2553_v5 }
 0x66f   :  { %v2986_v17 = vpop.eup %2985 }
 0x670   :  { %v1928_v28 = vadd.f32 1.0, %v2986_v17 }
 0x671   :  { %v2988_v21 = vpop.eup %2987 }
 0x672   :  { %2997 = vrcp.f32 %v1928_v28  ;;  %v1940_v55 = vadd.f32 1.0, %v2988_v21  ;;  %v2555_v21 = vsel %vm1973_vm14, 1.0, %v4388_v62 }
 0x673   :  { %v2990_v46 = vpop.eup %2989  ;;  %2999 = vtanh.f32 %v1920_v15 }
 0x674   :  { %3001 = vrcp.f32 %v1940_v55  ;;  %v1929_v41 = vadd.f32 1.0, %v2990_v46 }
 0x675   :  { %v2992_v44 = vpop.eup %2991  ;;  %3003 = vpow2.f32 %v2554_v47 }
 0x676   :  { %3005 = vrcp.f32 %v1929_v41  ;;  %v1941_v12 = vadd.f32 1.0, %v2992_v44  ;;  %v2994_v59 = vpop.eup %2993 }
 0x677   :  { %v2996_v54 = vpop.eup %2995 }
 0x678   :  { %3007 = vrcp.f32 %v1941_v12  ;;  %v1954_v22 = vadd.f32 1.0, %v2996_v54 }
 0x67a   :  { %3009 = vrcp.f32 %v1954_v22 }
 0x67f   :  { %v2998_v58 = vpop.eup %2997 }
 0x680   :  { %v3000_v27 = vpop.eup %2999  ;;  %v1962_v26 = vmul.f32 %v2998_v58, %v2994_v59 }
 0x681   :  { %v3002_v3 = vpop.eup %3001 }
 0x682   :  { %v3004_v60 = vpop.eup %3003  ;;  %v1960_v7 = vmul.f32 %v3002_v3, %v4164_v20 }
 0x683   :  { %v3006_v31 = vpop.eup %3005  ;;  %v1955_v17 = vadd.f32 1.0, %v3004_v60 }
 0x684   :  { %v4224_v5 = vadd.f32 %v1962_v26, %v1960_v7  ;;  %v1963_v45 = vmul.f32 %v3006_v31, %v3000_v27 }
 0x685   :  { %v3008_v48 = vpop.eup %3007 }
 0x686   :  { %v1961_v30 = vmul.f32 %v3008_v48, %v4168_v36  ;;  %3011 = vtanh.f32 %v4224_v5  ;;  %v2556_v36 = vsel %vm1974_vm15, 1.0, %v4388_v62 }
 0x687   :  { %3013 = vrcp.f32 %v1955_v17  ;;  %v3010_v28 = vpop.eup %3009 }
 0x688   :  { %v4228_v15 = vadd.f32 %v1963_v45, %v1961_v30 }
 0x68a   :  { %3015 = vtanh.f32 %v4228_v15 }
 0x693   :  { %v3012_v20 = vpop.eup %3011 }
 0x694   :  { %v1968_v47 = vmul.f32 %v3012_v20, %v3010_v28  ;;  %v3014_v55 = vpop.eup %3013 }
 0x696   :  { %v1979_v46 = vmul.f32 %v2555_v21, %v1968_v47 }
 0x697   :  { %v3016_v41 = vpop.eup %3015 }
 0x698   :  { %v1969_v44 = vmul.f32 %v3016_v41, %v3014_v55  ;;  %v4236_v12 = vadd.f32 %v1979_v46, %v4176_v16 }
 0x69a   :  { %v1980_v59 = vmul.f32 %v2556_v36, %v1969_v44  ;;  %v1992_v54 = vpack.c.bf16 %v1969_v44, %v1968_v47  ;;  %v2563_v36 = vsel %vm2138_vm0, 1.0, %v4388_v62 }
 0x69c   :  { %2026 = vmatmul.mubr.bf16.vlgmr.msra.gmra.mxu0 %v1992_v54  ;;  %2069 = vmatmul.mubr.bf16.vlgmr.msra.gmra.mxu1 %v1992_v54  ;;  %v4239_v58 = vadd.f32 %v1980_v59, %v4179_v13 }
 0x69d   :  { %2159 = vmatpush1.bf16.msra.mxu0 %v3939_v6  ;;  %2202 = vmatpush1.bf16.msra.mxu1 %v3942_v35  ;;  %v4421_v6 = vld [vmem:[#allocation58_spill] sm:$0xff] }
 0x69e   :  { %2160 = vmatprep.subr.bf16.mxu0 %v3945_v11  ;;  %2203 = vmatprep.subr.bf16.mxu1 %v3948_v50 }
 0x69f   :  { %2190 = vmatprep.mubr.bf16.mxu0 %v4387_v53  ;;  %2233 = vmatprep.mubr.bf16.mxu1 %v4387_v53 }
 0x6a1   :  { %2161 = vmatpush1.bf16.msra.mxu0 %v3953_v14  ;;  %2204 = vmatpush1.bf16.msra.mxu1 %v3956_v33  ;;  %v4422_v33 = vld [vmem:[#allocation60_spill] sm:$0xff] }
 0x6a2   :  { %2162 = vmatprep.subr.bf16.mxu0 %v3959_v10  ;;  %2205 = vmatprep.subr.bf16.mxu1 %v3962_v61 }
 0x6a5   :  { %2163 = vmatpush1.bf16.msra.mxu0 %v3965_v4  ;;  %2206 = vmatpush1.bf16.msra.mxu1 %v3968_v23 }
 0x6a6   :  { %2164 = vmatprep.subr.bf16.mxu0 %v3971_v63  ;;  %2207 = vmatprep.subr.bf16.mxu1 %v3974_v2  ;;  %v4423_v63 = vld [vmem:[#allocation62_spill] sm:$0xff] }
 0x6a9   :  { %2165 = vmatpush1.bf16.msra.mxu0 %v3977_v25  ;;  %2208 = vmatpush1.bf16.msra.mxu1 %v4046_v19 }
 0x6aa   :  { %2166 = vmatprep.subr.bf16.mxu0 %v3981_v18  ;;  %2209 = vmatprep.subr.bf16.mxu1 %v4050_v24 }
 0x6ad   :  { %2167 = vmatpush1.bf16.msra.mxu0 %v3985_v9  ;;  %2210 = vmatpush1.bf16.msra.mxu1 %v4054_v0  ;;  %v4424_v9 = vld [vmem:[#allocation64_spill] sm:$0xff] }
 0x6ae   :  { %2168 = vmatprep.subr.bf16.mxu0 %v4057_v43  ;;  %2211 = vmatprep.subr.bf16.mxu1 %v4060_v29 }
 0x6b1   :  { %2169 = vmatpush1.bf16.msra.mxu0 %v4063_v56  ;;  %2212 = vmatpush1.bf16.msra.mxu1 %v4066_v51  ;;  %v4425_v56 = vld [vmem:[#allocation66_spill] sm:$0xff] }
 0x6b2   :  { %2170 = vmatprep.subr.bf16.mxu0 %v4069_v37  ;;  %2213 = vmatprep.subr.bf16.mxu1 %v4072_v8 }
 0x6b5   :  { %2171 = vmatpush1.bf16.msra.mxu0 %v4075_v34  ;;  %2214 = vmatpush1.bf16.msra.mxu1 %v4078_v38  ;;  %v4426_v38 = vld [vmem:[#allocation67_spill] sm:$0xff] }
 0x6b6   :  { %2172 = vmatprep.subr.bf16.mxu0 %v4081_v42  ;;  %2215 = vmatprep.subr.bf16.mxu1 %v4084_v49 }
 0x6b9   :  { %2173 = vmatpush1.bf16.msra.mxu0 %v4087_v52  ;;  %2216 = vmatpush1.bf16.msra.mxu1 %v4090_v1 }
 0x75c   :  { %v2027_v53 = vpop.f32.mrf.mxu0  ;;  %v2070_v11 = vpop.f32.mrf.mxu1 }
 0x75d   :  { %v2079_v35 = vadd.f32 %v2027_v53, %v4421_v6  ;;  %v2081_v51 = vadd.f32 %v2070_v11, %v4425_v56  ;;  %v4427_v56 = vld [vmem:[#allocation26_spill] sm:$0xff] }
 0x75e   :  { %v2029_v50 = vpop.f32.mrf.mxu0  ;;  %v2072_v23 = vpop.f32.mrf.mxu1 }
 0x75f   :  { %v2557_v14 = vmul.f32 -1.442695, %v2079_v35  ;;  %v2080_v10 = vadd.f32 %v2029_v50, %v4422_v33  ;;  %v2082_v43 = vadd.f32 %v2072_v23, %v3827_v39  ;;  %v2343_v33 = vld [vmem:[#allocation17 + $0x78] sm:$0xff]  ;;  %v2338_v23 = vld [vmem:[#allocation17 + $0x50] sm:$0xff] }
 0x760   :  { %v2031_v61 = vpop.f32.mrf.mxu0  ;;  %v2074_v24 = vpop.f32.mrf.mxu1  ;;  %2709 = vmatprep.subr.mxu0 %v2343_v33 }
 0x761   :  { %3017 = vpow2.f32 %v2557_v14  ;;  %v2559_v4 = vmul.f32 -1.442695, %v2080_v10  ;;  %v2083_v2 = vadd.f32 %v2031_v61, %v4423_v63  ;;  %v2561_v37 = vmul.f32 -1.442695, %v2082_v43  ;;  %v2342_v10 = vld [vmem:[#allocation17 + $0x70] sm:$0xff]  ;;  %v2341_v61 = vld [vmem:[#allocation17 + $0x68] sm:$0xff] }
 0x762   :  { %v2033_v25 = vpop.f32.mrf.mxu0  ;;  %v2076_v29 = vpop.f32.mrf.mxu1  ;;  %v2085_v42 = vadd.f32 %v2074_v24, %v4426_v38  ;;  %v2337_v63 = vld [vmem:[#allocation17 + $0x48] sm:$0xff]  ;;  %v2330_v24 = vld [vmem:[#allocation17 + $0x10] sm:$0xff]  ;;  %v2328_v43 = vld [vmem:[#allocation17] sm:$0xff] }
 0x763   :  { %3019 = vpow2.f32 %v2559_v4  ;;  %v2558_v18 = vmul.f32 -1.442695, %v2083_v2  ;;  %v2084_v19 = vadd.f32 %v2033_v25, %v4424_v9  ;;  %v2086_v8 = vadd.f32 %v2076_v29, %v3835_v40  ;;  %v2340_v4 = vld [vmem:[#allocation17 + $0x60] sm:$0xff]  ;;  %v2335_v2 = vld [vmem:[#allocation17 + $0x38] sm:$0xff]  ;;  %v2334_v25 = vld [vmem:[#allocation17 + $0x30] sm:$0xff] }
 0x764   :  { %v2332_v9 = vld [vmem:[#allocation17 + $0x20] sm:$0xff]  ;;  %v4428_v38 = vld [vmem:[#allocation27_spill] sm:$0xff] }
 0x765   :  { %3021 = vpow2.f32 %v2558_v18  ;;  %v2560_v0 = vmul.f32 -1.442695, %v2084_v19  ;;  %v2562_v1 = vmul.f32 -1.442695, %v2086_v8  ;;  %v2333_v18 = vld [vmem:[#allocation17 + $0x28] sm:$0xff]  ;;  %v2331_v19 = vld [vmem:[#allocation17 + $0x18] sm:$0xff] }
 0x767   :  { %3023 = vpow2.f32 %v2560_v0  ;;  %v2329_v0 = vld [vmem:[#allocation17 + $0x8] sm:$0xff] }
 0x768   :  { %3025 = vtanh.f32 %v2081_v51 }
 0x769   :  { %3027 = vpow2.f32 %v2561_v37 }
 0x76e   :  { %v3018_v34 = vpop.eup %3017 }
 0x76f   :  { %v2093_v49 = vadd.f32 1.0, %v3018_v34 }
 0x770   :  { %v3020_v52 = vpop.eup %3019 }
 0x771   :  { %3029 = vrcp.f32 %v2093_v49  ;;  %v2105_v16 = vadd.f32 1.0, %v3020_v52 }
 0x772   :  { %v3022_v13 = vpop.eup %3021  ;;  %3031 = vtanh.f32 %v2085_v42 }
 0x773   :  { %3033 = vrcp.f32 %v2105_v16  ;;  %v2094_v39 = vadd.f32 1.0, %v3022_v13  ;;  %v4429_v16 = vld [vmem:[#allocation28_spill] sm:$0xff] }
 0x774   :  { %v3024_v27 = vpop.eup %3023  ;;  %3035 = vpow2.f32 %v2562_v1 }
 0x775   :  { %3037 = vrcp.f32 %v2094_v39  ;;  %v2106_v26 = vadd.f32 1.0, %v3024_v27  ;;  %v3026_v40 = vpop.eup %3025 }
 0x776   :  { %v3028_v3 = vpop.eup %3027 }
 0x777   :  { %3039 = vrcp.f32 %v2106_v26  ;;  %v2119_v45 = vadd.f32 1.0, %v3028_v3  ;;  %v4430_v26 = vld [vmem:[#allocation29_spill] sm:$0xff] }
 0x779   :  { %3041 = vrcp.f32 %v2119_v45  ;;  %v4432_v45 = vld [vmem:[#allocation68_spill] sm:$0xff] }
 0x77e   :  { %v3030_v22 = vpop.eup %3029 }
 0x77f   :  { %v3032_v60 = vpop.eup %3031  ;;  %v2127_v7 = vmul.f32 %v3030_v22, %v3026_v40 }
 0x780   :  { %v3034_v31 = vpop.eup %3033 }
 0x781   :  { %v3036_v48 = vpop.eup %3035  ;;  %v2125_v17 = vmul.f32 %v3034_v31, %v4224_v5 }
 0x782   :  { %v3038_v30 = vpop.eup %3037  ;;  %v2120_v47 = vadd.f32 1.0, %v3036_v48 }
 0x783   :  { %v4282_v28 = vadd.f32 %v2127_v7, %v2125_v17  ;;  %v2128_v20 = vmul.f32 %v3038_v30, %v3032_v60  ;;  %v4431_v60 = vld [vmem:[#allocation69_spill] sm:$0xff]  ;;  %v4433_v30 = vld [vmem:[#allocation71_spill] sm:$0xff] }
 0x784   :  { %v3040_v21 = vpop.eup %3039 }
 0x785   :  { %v2126_v55 = vmul.f32 %v3040_v21, %v4228_v15  ;;  %3043 = vtanh.f32 %v4282_v28  ;;  %v2564_v15 = vsel %vm2139_vm1, 1.0, %v4388_v62 }
 0x786   :  { %3045 = vrcp.f32 %v2120_v47  ;;  %v3042_v41 = vpop.eup %3041  ;;  %v4434_v47 = vld [vmem:[#allocation70_spill] sm:$0xff] }
 0x787   :  { %v4286_v46 = vadd.f32 %v2128_v20, %v2126_v55 }
 0x789   :  { %3047 = vtanh.f32 %v4286_v46 }
 0x792   :  { %v3044_v5 = vpop.eup %3043 }
 0x793   :  { %v2133_v44 = vmul.f32 %v3044_v5, %v3042_v41  ;;  %v3046_v59 = vpop.eup %3045 }
 0x795   :  { %v2144_v54 = vmul.f32 %v2563_v36, %v2133_v44 }
 0x796   :  { %v3048_v53 = vpop.eup %3047 }
 0x797   :  { %v2134_v6 = vmul.f32 %v3048_v53, %v3046_v59  ;;  %v4294_v35 = vadd.f32 %v2144_v54, %v4236_v12  ;;  %v2339_v12 = vld [vmem:[#allocation17 + $0x58] sm:$0xff] }
 0x799   :  { %v2145_v11 = vmul.f32 %v2564_v15, %v2134_v6  ;;  %v2157_v50 = vpack.c.bf16 %v2134_v6, %v2133_v44 }
 0x79b   :  { %2191 = vmatmul.mubr.bf16.vlgmr.msra.gmra.mxu0 %v2157_v50  ;;  %2234 = vmatmul.mubr.bf16.vlgmr.msra.gmra.mxu1 %v2157_v50  ;;  %v4297_v14 = vadd.f32 %v2145_v11, %v4239_v58  ;;  %v2336_v58 = vld [vmem:[#allocation17 + $0x40] sm:$0xff] }
 0x79c   :  { %2710 = vmatpush3.msra.mxu0 %v2343_v33 }
 0x79d   :  { %2711 = vmatprep.subr.mxu0 %v2342_v10 }
 0x79e   :  { %2712 = vmatpush3.msra.mxu0 %v2342_v10 }
 0x79f   :  { %2713 = vmatprep.subr.mxu0 %v2341_v61 }
 0x7a0   :  { %2714 = vmatpush3.msra.mxu0 %v2341_v61 }
 0x7a1   :  { %2715 = vmatprep.subr.mxu0 %v2340_v4 }
 0x7a2   :  { %2716 = vmatpush3.msra.mxu0 %v2340_v4 }
 0x7a3   :  { %2717 = vmatprep.subr.mxu0 %v2339_v12 }
 0x7a4   :  { %2718 = vmatpush3.msra.mxu0 %v2339_v12 }
 0x7a5   :  { %2719 = vmatprep.subr.mxu0 %v2338_v23 }
 0x7a6   :  { %2720 = vmatpush3.msra.mxu0 %v2338_v23 }
 0x7a7   :  { %2721 = vmatprep.subr.mxu0 %v2337_v63 }
 0x7a8   :  { %2722 = vmatpush3.msra.mxu0 %v2337_v63 }
 0x7a9   :  { %2723 = vmatprep.subr.mxu0 %v2336_v58 }
 0x7aa   :  { %2724 = vmatpush3.msra.mxu0 %v2336_v58 }
 0x7ab   :  { %2725 = vmatprep.subr.mxu0 %v2335_v2 }
 0x7ac   :  { %2726 = vmatpush3.msra.mxu0 %v2335_v2 }
 0x7ad   :  { %2727 = vmatprep.subr.mxu0 %v2334_v25 }
 0x7ae   :  { %2728 = vmatpush3.msra.mxu0 %v2334_v25 }
 0x7af   :  { %2729 = vmatprep.subr.mxu0 %v2333_v18 }
 0x7b0   :  { %2730 = vmatpush3.msra.mxu0 %v2333_v18 }
 0x7b1   :  { %2731 = vmatprep.subr.mxu0 %v2332_v9 }
 0x7b2   :  { %2732 = vmatpush3.msra.mxu0 %v2332_v9 }
 0x7b3   :  { %2733 = vmatprep.subr.mxu0 %v2331_v19 }
 0x7b4   :  { %2734 = vmatpush3.msra.mxu0 %v2331_v19 }
 0x7b5   :  { %2735 = vmatprep.subr.mxu0 %v2330_v24 }
 0x7b6   :  { %2736 = vmatpush3.msra.mxu0 %v2330_v24  ;;  %v2322_v24 = vmax.f32 %v3921_v57, 1.0 }
 0x7b7   :  { %2737 = vmatprep.subr.mxu0 %v2329_v0 }
 0x7b8   :  { %2738 = vmatpush3.msra.mxu0 %v2329_v0  ;;  %v2323_v0 = vmax.f32 %v3925_v32, 1.0 }
 0x7b9   :  { %2739 = vmatprep.subr.mxu0 %v2328_v43 }
 0x7ba   :  { %2740 = vmatpush3.msra.mxu0 %v2328_v43 }
 0x85b   :  { %v2192_v29 = vpop.f32.mrf.mxu0  ;;  %v2235_v37 = vpop.f32.mrf.mxu1 }
 0x85c   :  { %v2244_v51 = vadd.f32 %v2192_v29, %v4427_v56  ;;  %v2246_v48 = vadd.f32 %v2235_v37, %v4432_v45  ;;  %v2571_v56 = vsel %vm2303_vm2, 1.0, %v4388_v62 }
 0x85d   :  { %v2194_v8 = vpop.f32.mrf.mxu0  ;;  %v2237_v1 = vpop.f32.mrf.mxu1 }
 0x85e   :  { %v2565_v34 = vmul.f32 -1.442695, %v2244_v51  ;;  %v2245_v42 = vadd.f32 %v2194_v8, %v4428_v38  ;;  %v2247_v7 = vadd.f32 %v2237_v1, %v4431_v60 }
 0x85f   :  { %v2196_v49 = vpop.f32.mrf.mxu0  ;;  %v2239_v3 = vpop.f32.mrf.mxu1 }
 0x860   :  { %3049 = vpow2.f32 %v2565_v34  ;;  %v2567_v52 = vmul.f32 -1.442695, %v2245_v42  ;;  %v2248_v13 = vadd.f32 %v2196_v49, %v4429_v16  ;;  %v2569_v17 = vmul.f32 -1.442695, %v2247_v7 }
 0x861   :  { %v2198_v39 = vpop.f32.mrf.mxu0  ;;  %v2241_v31 = vpop.f32.mrf.mxu1  ;;  %v2250_v55 = vadd.f32 %v2239_v3, %v4434_v47  ;;  %v2572_v42 = vsel %vm2304_vm3, 1.0, %v4388_v62 }
 0x862   :  { %3051 = vpow2.f32 %v2567_v52  ;;  %v2566_v27 = vmul.f32 -1.442695, %v2248_v13  ;;  %v2249_v40 = vadd.f32 %v2198_v39, %v4430_v26  ;;  %v2251_v20 = vadd.f32 %v2241_v31, %v4433_v30  ;;  %v2573_v13 = vld [vmem:[%s4335_s9] ss:$0 sm:$0xff] }
 0x864   :  { %3053 = vpow2.f32 %v2566_v27  ;;  %v2568_v22 = vmul.f32 -1.442695, %v2249_v40  ;;  %v2570_v36 = vmul.f32 -1.442695, %v2251_v20 }
 0x866   :  { %3055 = vpow2.f32 %v2568_v22 }
 0x867   :  { %3057 = vtanh.f32 %v2246_v48 }
 0x868   :  { %3059 = vpow2.f32 %v2569_v17 }
 0x86d   :  { %v3050_v21 = vpop.eup %3049 }
 0x86e   :  { %v2258_v41 = vadd.f32 1.0, %v3050_v21 }
 0x86f   :  { %v3052_v5 = vpop.eup %3051 }
 0x870   :  { %3061 = vrcp.f32 %v2258_v41  ;;  %v2270_v44 = vadd.f32 1.0, %v3052_v5 }
 0x871   :  { %v3054_v59 = vpop.eup %3053  ;;  %3063 = vtanh.f32 %v2250_v55 }
 0x872   :  { %3065 = vrcp.f32 %v2270_v44  ;;  %v2259_v54 = vadd.f32 1.0, %v3054_v59 }
 0x873   :  { %v3056_v53 = vpop.eup %3055  ;;  %3067 = vpow2.f32 %v2570_v36 }
 0x874   :  { %3069 = vrcp.f32 %v2259_v54  ;;  %v2271_v15 = vadd.f32 1.0, %v3056_v53  ;;  %v3058_v6 = vpop.eup %3057 }
 0x875   :  { %v3060_v11 = vpop.eup %3059 }
 0x876   :  { %3071 = vrcp.f32 %v2271_v15  ;;  %v2284_v4 = vadd.f32 1.0, %v3060_v11 }
 0x878   :  { %3073 = vrcp.f32 %v2284_v4 }
 0x87d   :  { %v3062_v50 = vpop.eup %3061 }
 0x87e   :  { %v3064_v33 = vpop.eup %3063  ;;  %v2292_v10 = vmul.f32 %v3062_v50, %v3058_v6 }
 0x87f   :  { %v3066_v61 = vpop.eup %3065 }
 0x880   :  { %v3068_v12 = vpop.eup %3067  ;;  %v2290_v23 = vmul.f32 %v3066_v61, %v4282_v28 }
 0x881   :  { %v3070_v63 = vpop.eup %3069  ;;  %v2285_v18 = vadd.f32 1.0, %v3068_v12 }
 0x882   :  { %v2294_v58 = vadd.f32 %v2292_v10, %v2290_v23  ;;  %v2293_v2 = vmul.f32 %v3070_v63, %v3064_v33 }
 0x883   :  { %v3072_v25 = vpop.eup %3071 }
 0x884   :  { %3075 = vtanh.f32 %v2294_v58  ;;  %v2291_v9 = vmul.f32 %v3072_v25, %v4286_v46 }
 0x885   :  { %3077 = vrcp.f32 %v2285_v18  ;;  %v3074_v43 = vpop.eup %3073 }
 0x886   :  { %v2295_v19 = vadd.f32 %v2293_v2, %v2291_v9 }
 0x888   :  { %3079 = vtanh.f32 %v2295_v19 }
 0x889   :  { %3081 = vrcp.f32 %v2322_v24 }
 0x88a   :  { %3083 = vrcp.f32 %v2323_v0 }
 0x891   :  { %v3076_v28 = vpop.eup %3075 }
 0x892   :  { %v2298_v29 = vmul.f32 %v3076_v28, %v3074_v43  ;;  %v3078_v51 = vpop.eup %3077 }
 0x894   :  { %v2309_v37 = vmul.f32 %v2571_v56, %v2298_v29 }
 0x895   :  { %v3080_v46 = vpop.eup %3079 }
 0x896   :  { %v2311_v8 = vadd.f32 %v2309_v37, %v4294_v35  ;;  %v2299_v34 = vmul.f32 %v3080_v46, %v3078_v51  ;;  %v3082_v38 = vpop.eup %3081 }
 0x897   :  { %v3084_v1 = vpop.eup %3083 }
 0x898   :  { %v2325_v49 = vmul.f32 %v3082_v38, %v2311_v8  ;;  %v2310_v52 = vmul.f32 %v2572_v42, %v2299_v34 }
 0x89a   :  { %2741 = vmatprep.mubr.f32.mxu0 %v2325_v49  ;;  %v2312_v57 = vadd.f32 %v2310_v52, %v4297_v14 }
 0x89c   :  { %v2327_v16 = vmul.f32 %v3084_v1, %v2312_v57 }
 0x89e   :  { %2742 = vmatmul.mubr.f32.vlgmr.msra.gmra.mxu0 %v2327_v16 }
 0x95e   :  { %v2743_v32 = vpop.f32.mrf.mxu0 }
 0x95f   :  { %v2423_v35 = vadd.f32 %v2743_v32, %v2573_v13 }
 0x960   :  { %v2417_v39 = vpop.f32.mrf.mxu0 }
 0x961   :  { %2427 = vst [vmem:[#allocation19 + $0x8] sm:$0xff] %v2423_v35  ;;  %v2418_v27 = vadd.f32 %v2573_v13, %v2417_v39 }
 0x963   :  { %2426 = vst [vmem:[#allocation19] sm:$0xff] %v2418_v27 }
 0x964   :  { %3260 = shalt.err (!%p3257_p11)
}
 0x965   :  { %2439 = dma.vmem_to_hbm [thread:$0]  %s2434_s15, 256, %s4336_s10, [#allocation8], %s3292_s27, %s3292_s27, %s3293_s28  }
 0x966   :  { %3279 = dma.done.wait [#allocation8], 256  }
 0x967   :  { %3280 = vsyncadd [#allocation8], 4294967040 }
 0x968   :  { %2443 = vsyncpa [#allocation7], 1 }
 0x969   :  { %2444 = vsyncpa [#allocation11], 1 }
 0x96a   :  { %2445 = vsyncpa [#allocation15], 1 }
 0x96b   :  { %2446 = vsyncpa [#allocation18], 1 }
 0x96c   :  { %2447 = vsyncpa [#allocation8], 1 }
 0x96d   :  { %2448 = vsyncpa [#allocation9], 1 }

</bundles_post_ra>
